<compile_context>
chip_gen: v6e
topology: v6e:2x2x1
jax: 0.10.0
libtpu: 0.0.40
codegen_flags: <defaults>
</compile_context>

<pallas_src>
import jax
import jax.numpy as jnp
from jax.experimental import pallas as pl
from jax.experimental.pallas import tpu as pltpu

IN_DIM = 2074
K_PAD = 2176             # 17 * 128 -> lane-aligned contraction dim
H1 = 512
H2 = 256
HID = H1 + H2            # 768  (multiple of 128/256 -> clean MXU tiles)
OUT_DIM = 20
OUT_PAD = 128            # lane-dense output slab; sliced back to 20 in wrapper


def _round_up(v, m):
    return ((v + m - 1) // m) * m


def _ensemble_kernel(x_ref, w13_ref, b13_ref, w24_ref, b24_ref, o_ref):
    # x tile arrives as f32 (no wrapper-side convert pass over HBM); the
    # f32->bf16 cast happens in VMEM right before the MXU feed.
    x = x_ref[...].astype(jnp.bfloat16)

    # Fused first layer for both branches: (TB, 768), f32 MXU accumulation.
    h = jnp.dot(x, w13_ref[...], preferred_element_type=jnp.float32) + b13_ref[...]
    h = jnp.maximum(h, 0.0)

    # Fused second layer (0.5 scale already folded into W24/b24): (TB, 128).
    y = jnp.dot(h.astype(jnp.bfloat16), w24_ref[...],
                preferred_element_type=jnp.float32) + b24_ref[...]

    o_ref[...] = y


def pack_params(params):
    """Fuse the two branches into one GEMM pair, cast weights to bf16, and
    prepare both an exact-K (2074) and a K-padded (2176) first-layer weight."""
    w1, b1, w2, b2, w3, b3, w4, b4 = params

    w13 = jnp.concatenate([w1, w3], axis=1)           # (2074, 768)
    b13 = jnp.concatenate([b1, b3], axis=1)           # (1, 768)

    w24 = jnp.concatenate([w2, w4], axis=0) * 0.5     # (768, 20), 0.5 folded in
    b24 = (b2 + b4) * 0.5                             # (1, 20)

    # K-padded W13 (extra rows are zero -> padded x columns contribute nothing).
    w13_pad = jnp.zeros((K_PAD, HID), jnp.float32).at[:IN_DIM, :].set(w13)

    # Pad output dim to 128 lanes (unmasked stores); extra columns are zero.
    w24p = jnp.zeros((HID, OUT_PAD), jnp.float32).at[:, :OUT_DIM].set(w24)
    b24p = jnp.zeros((1, OUT_PAD), jnp.float32).at[:, :OUT_DIM].set(b24)

    return {
        "w13": w13.astype(jnp.bfloat16),          # (2074, 768) bf16
        "w13_pad": w13_pad.astype(jnp.bfloat16),  # (2176, 768) bf16
        "b13": b13.astype(jnp.float32),           # biases stay f32 (post-accum add)
        "w24": w24p.astype(jnp.bfloat16),         # (768, 128) bf16
        "b24": b24p.astype(jnp.float32),          # (1, 128) f32
    }


def logo_classifier_ensemble(x, packed):
    """x: (B, ...) flattening to 2074 features. Returns (B, 20) float32."""
    B = x.shape[0]
    x = x.reshape(B, -1)
    assert x.shape[1] == IN_DIM, f"expected {IN_DIM} features, got {x.shape[1]}"
    x = x.astype(jnp.float32)   # no bf16 convert pass; cast happens in-kernel

    # --- batch tile selection ---
    # Big tiles amortize the ~0.35us per-grid-step overhead; cap so the grid
    # has >= 2 steps whenever B >= 32 (v7x megacore sharding); granule 16 rows
    # (bf16 sublane pack) instead of 8.
    half = _round_up(max(1, (B + 1) // 2), 16)
    TB = max(16, min(1024, half))
    B_pad = _round_up(B, TB)

    if B_pad != B:
        # A pad pass over x is required anyway for the batch dim; fold the K
        # alignment (2074 -> 2176) into the same single pad op.
        x = jnp.pad(x, ((0, B_pad - B), (0, K_PAD - IN_DIM)))
        w13 = packed["w13_pad"]
    else:
        # Don't introduce an HBM pad pass just for K alignment; Mosaic masks
        # the K=2074 tail of the first GEMM instead.
        w13 = packed["w13"]
    K = x.shape[1]

    b13, w24, b24 = packed["b13"], packed["w24"], packed["b24"]
    grid = (B_pad // TB,)

    out = pl.pallas_call(
        _ensemble_kernel,
        out_shape=jax.ShapeDtypeStruct((B_pad, OUT_PAD), jnp.float32),
        grid=grid,
        in_specs=[
            pl.BlockSpec((TB, K), lambda i: (i, 0)),          # x: tiled over batch
            pl.BlockSpec((K, HID), lambda i: (0, 0)),         # W13: VMEM-resident
            pl.BlockSpec((1, HID), lambda i: (0, 0)),         # b13
            pl.BlockSpec((HID, OUT_PAD), lambda i: (0, 0)),   # W24
            pl.BlockSpec((1, OUT_PAD), lambda i: (0, 0)),     # b24
        ],
        out_specs=pl.BlockSpec((TB, OUT_PAD), lambda i: (i, 0)),
        compiler_params=pltpu.CompilerParams(
            dimension_semantics=("parallel",),                # shards batch grid over v7x TCs
            vmem_limit_bytes=48 * 1024 * 1024,                # f32 x tiles @ TB=1024 need ~26 MB
        ),
    )(x, w13, b13, w24, b24)

    return out[:B, :OUT_DIM]


def init_params(key):
    """Deterministic synthetic parameters (PyTorch-style uniform fan-in init),
    stored transposed vs. PyTorch, i.e. (in_dim, out_dim)."""
    ks = jax.random.split(key, 8)

    def linear(kw, kb, fan_in, fan_out):
        bound = 1.0 / jnp.sqrt(fan_in)
        w = jax.random.uniform(kw, (fan_in, fan_out), jnp.float32, -bound, bound)
        b = jax.random.uniform(kb, (1, fan_out), jnp.float32, -bound, bound)
        return w, b

    w1, b1 = linear(ks[0], ks[1], IN_DIM, H1)
    w2, b2 = linear(ks[2], ks[3], H1, OUT_DIM)
    w3, b3 = linear(ks[4], ks[5], IN_DIM, H2)
    w4, b4 = linear(ks[6], ks[7], H2, OUT_DIM)
    return (w1, b1, w2, b2, w3, b3, w4, b4)


def reference_forward(x, params):
    """Pure-JAX f32 reference matching the original (unfused) PyTorch module."""
    w1, b1, w2, b2, w3, b3, w4, b4 = params
    x = x.reshape(x.shape[0], -1).astype(jnp.float32)
    y1 = jnp.maximum(x @ w1 + b1, 0.0) @ w2 + b2
    y2 = jnp.maximum(x @ w3 + b3, 0.0) @ w4 + b4
    return (y1 + y2) / 2.0


if __name__ == "__main__":
    key = jax.random.PRNGKey(0)
    k_params, k_x1, k_x2 = jax.random.split(key, 3)

    params = init_params(k_params)
    packed = pack_params(params)

    # Case 1: tiny batch -> single grid step, batch+K padding path.
    B1 = 4
    x1 = jax.random.normal(k_x1, (B1, IN_DIM), jnp.float32)
    out1 = jax.block_until_ready(logo_classifier_ensemble(x1, packed))
    ref1 = reference_forward(x1, params)
    assert out1.shape == (B1, OUT_DIM)
    # bf16 weights/activations with f32 accumulation -> loosened tolerance vs f32 ref.
    assert jnp.allclose(out1, ref1, atol=2e-2, rtol=2e-2), "mismatch vs reference (B=4)"

    # Case 2: batch already a tile multiple -> 2-step grid, no padding path.
    B2 = 32
    x2 = jax.random.normal(k_x2, (B2, IN_DIM), jnp.float32)
    out2 = jax.block_until_ready(logo_classifier_ensemble(x2, packed))
    ref2 = reference_forward(x2, params)
    assert out2.shape == (B2, OUT_DIM)
    assert jnp.allclose(out2, ref2, atol=2e-2, rtol=2e-2), "mismatch vs reference (B=32)"

    print("KERNEL_OK")
</pallas_src>

<mosaic_0001>
module attributes {stable_mosaic.version = 11 : i64} {
  func.func @_ensemble_kernel(%arg0: i32, %arg1: memref<16x2176xf32, #tpu.memory_space<vmem>>, %arg2: memref<2176x768xbf16, #tpu.memory_space<vmem>>, %arg3: memref<1x768xf32, #tpu.memory_space<vmem>>, %arg4: memref<768x128xbf16, #tpu.memory_space<vmem>>, %arg5: memref<1x128xf32, #tpu.memory_space<vmem>>, %arg6: memref<16x128xf32, #tpu.memory_space<vmem>>) attributes {dimension_semantics = [#tpu.dimension_semantics<parallel>], iteration_bounds = array<i64: 1>, scalar_prefetch = 0 : i64, scratch_operands = 0 : i64, tpu.core_type = #tpu.core_type<tc>, window_params = [{transform_indices = @transform_0, window_bounds = array<i64: 16, 2176>}, {pipeline_mode = #tpu.pipeline_mode<synchronous>, transform_indices = @transform_1, window_bounds = array<i64: 2176, 768>}, {pipeline_mode = #tpu.pipeline_mode<synchronous>, transform_indices = @transform_2, window_bounds = array<i64: 1, 768>}, {pipeline_mode = #tpu.pipeline_mode<synchronous>, transform_indices = @transform_3, window_bounds = array<i64: 768, 128>}, {pipeline_mode = #tpu.pipeline_mode<synchronous>, transform_indices = @transform_4, window_bounds = array<i64: 1, 128>}, {transform_indices = @transform_5, window_bounds = array<i64: 16, 128>}]} {
    %c0 = arith.constant 0 : index
    %c0_0 = arith.constant 0 : index
    %0 = vector.load %arg1[%c0, %c0_0] : memref<16x2176xf32, #tpu.memory_space<vmem>>, vector<16x2176xf32>
    %1 = arith.truncf %0 : vector<16x2176xf32> to vector<16x2176xbf16>
    %c0_1 = arith.constant 0 : index
    %c0_2 = arith.constant 0 : index
    %2 = vector.load %arg2[%c0_1, %c0_2] : memref<2176x768xbf16, #tpu.memory_space<vmem>>, vector<2176x768xbf16>
    %cst = arith.constant dense<0.000000e+00> : vector<16x768xf32>
    %3 = tpu.matmul %1, %2, %cst {dimension_numbers = #tpu.dot_dimension_numbers<[1], [0], [0], [1], [0, 0, 1, 1], [], []>} : vector<16x2176xbf16>, vector<2176x768xbf16>, vector<16x768xf32> -> vector<16x768xf32>
    %c0_3 = arith.constant 0 : index
    %c0_4 = arith.constant 0 : index
    %4 = vector.load %arg3[%c0_3, %c0_4] : memref<1x768xf32, #tpu.memory_space<vmem>>, vector<1x768xf32>
    %5 = vector.broadcast %4 : vector<1x768xf32> to vector<16x768xf32>
    %6 = arith.addf %3, %5 : vector<16x768xf32>
    %cst_5 = arith.constant 0.000000e+00 : f32
    %7 = vector.broadcast %cst_5 : f32 to vector<16x768xf32>
    %8 = arith.maximumf %6, %7 : vector<16x768xf32>
    %9 = arith.truncf %8 : vector<16x768xf32> to vector<16x768xbf16>
    %c0_6 = arith.constant 0 : index
    %c0_7 = arith.constant 0 : index
    %10 = vector.load %arg4[%c0_6, %c0_7] : memref<768x128xbf16, #tpu.memory_space<vmem>>, vector<768x128xbf16>
    %cst_8 = arith.constant dense<0.000000e+00> : vector<16x128xf32>
    %11 = tpu.matmul %9, %10, %cst_8 {dimension_numbers = #tpu.dot_dimension_numbers<[1], [0], [0], [1], [0, 0, 1, 1], [], []>} : vector<16x768xbf16>, vector<768x128xbf16>, vector<16x128xf32> -> vector<16x128xf32>
    %c0_9 = arith.constant 0 : index
    %c0_10 = arith.constant 0 : index
    %12 = vector.load %arg5[%c0_9, %c0_10] : memref<1x128xf32, #tpu.memory_space<vmem>>, vector<1x128xf32>
    %13 = vector.broadcast %12 : vector<1x128xf32> to vector<16x128xf32>
    %14 = arith.addf %11, %13 : vector<16x128xf32>
    %c0_11 = arith.constant 0 : index
    %c0_12 = arith.constant 0 : index
    %15 = vector.load %arg6[%c0_11, %c0_12] : memref<16x128xf32, #tpu.memory_space<vmem>>, vector<16x128xf32>
    tpu.vector_store %arg6[%c0_11, %c0_12], %14 {strides = array<i32>} : memref<16x128xf32, #tpu.memory_space<vmem>>, vector<16x128xf32>,
    return
  }
  func.func @transform_0(%arg0: i32) -> (i32, i32) {
    %c0_i32 = arith.constant 0 : i32
    %c0_i32_0 = arith.constant 0 : i32
    return %arg0, %c0_i32 : i32, i32
  }
  func.func @transform_1(%arg0: i32) -> (i32, i32) {
    %c0_i32 = arith.constant 0 : i32
    %c0_i32_0 = arith.constant 0 : i32
    %c0_i32_1 = arith.constant 0 : i32
    return %c0_i32, %c0_i32_0 : i32, i32
  }
  func.func @transform_2(%arg0: i32) -> (i32, i32) {
    %c0_i32 = arith.constant 0 : i32
    %c0_i32_0 = arith.constant 0 : i32
    %c0_i32_1 = arith.constant 0 : i32
    return %c0_i32, %c0_i32_0 : i32, i32
  }
  func.func @transform_3(%arg0: i32) -> (i32, i32) {
    %c0_i32 = arith.constant 0 : i32
    %c0_i32_0 = arith.constant 0 : i32
    %c0_i32_1 = arith.constant 0 : i32
    return %c0_i32, %c0_i32_0 : i32, i32
  }
  func.func @transform_4(%arg0: i32) -> (i32, i32) {
    %c0_i32 = arith.constant 0 : i32
    %c0_i32_0 = arith.constant 0 : i32
    %c0_i32_1 = arith.constant 0 : i32
    return %c0_i32, %c0_i32_0 : i32, i32
  }
  func.func @transform_5(%arg0: i32) -> (i32, i32) {
    %c0_i32 = arith.constant 0 : i32
    %c0_i32_0 = arith.constant 0 : i32
    return %arg0, %c0_i32 : i32, i32
  }
}

</mosaic_0001>

<bundles_post_ra>
// kernel: tpu_custom_call.1
= control target key start
LH: loop header
LB: loop body
LE: loop exit
PB: predicated region body
PF: predicated region fallthrough
CT: control target
= control target key end

     0   :  { %10 = vsyncpa [#allocation3], 0  ;;  %s9490_s0 = inlined_call_operand.hbm [shape: f32[16,2176], index: 0, kind: input, shape index: {}]   ;;  %s9491_s1 = inlined_call_operand.hbm [shape: bf16[2176,768], index: 1, kind: input, shape index: {}]   ;;  %s9492_s2 = inlined_call_operand.hbm [shape: f32[1,768], index: 2, kind: input, shape index: {}]   ;;  %s9493_s3 = inlined_call_operand.hbm [shape: bf16[768,128], index: 3, kind: input, shape index: {}]   ;;  %s9494_s4 = inlined_call_operand.hbm [shape: f32[1,128], index: 4, kind: input, shape index: {}]   ;;  %s9495_s5 = inlined_call_operand.hbm [shape: f32[16,128], index: 5, kind: output, shape index: {}]  }
   0x1   :  { %11 = vsyncpa [#allocation6], 0 }
   0x2   :  { %12 = vsyncpa [#allocation9], 0 }
   0x3   :  { %13 = vsyncpa [#allocation4], 0  ;;  %s9125_s18 = smov [#allocation5]  }
   0x4   :  { %s31_s19 = sshll.u32 %s9125_s18, 4  ;;  %s32_s19 = int_to_ptr.vmem [resolvable:$true] %s31_s19 }
   0x5   :  { %s9005_s20 = scalar_lea.vmem %s32_s19, 104448  ;;  %p9010_p1 = scmp.lt.s32.totalorder %s32_s19, %s32_s19 }
   0x6   :  { %p9006_p0 = scmp.ne.s32.totalorder %s32_s19, %s9005_s20  ;;  %p9011_p2 = scmp.lt.s32.totalorder %s9005_s20, %s9005_s20 }
   0x8   :  { %p9012_p3 = por %p9011_p2, %p9010_p1 }
   0xa   :  { %p9013_p4 = pnand %p9012_p3, %p9006_p0 }
   0xc   :  { %9016 = shalt.err (!%p9013_p4)
}
   0xd   :  { %s9126_s21 = smov 384   ;;  %s9127_s22 = smov 24  }
   0xe   :  { %37 = dma.hbm_to_vmem [thread:$0]  %s9491_s1, 104448, %s32_s19, [#allocation6], %s9126_s21, %s9126_s21, %s9127_s22  }
   0xf   :  { %s9128_s25 = smov [#allocation8]  }
  0x10   :  { %s53_s26 = sshll.u32 %s9128_s25, 4  ;;  %s54_s26 = int_to_ptr.vmem [resolvable:$true] %s53_s26 }
  0x11   :  { %s9025_s27 = scalar_lea.vmem %s54_s26, 6144  ;;  %p9030_p6 = scmp.lt.s32.totalorder %s54_s26, %s54_s26 }
  0x12   :  { %p9026_p5 = scmp.ne.s32.totalorder %s54_s26, %s9025_s27  ;;  %p9031_p7 = scmp.lt.s32.totalorder %s9025_s27, %s9025_s27 }
  0x14   :  { %p9032_p8 = por %p9031_p7, %p9030_p6 }
  0x16   :  { %p9033_p9 = pnand %p9032_p8, %p9026_p5 }
  0x18   :  { %9036 = shalt.err (!%p9033_p9)
}
  0x19   :  { %s9129_s28 = smov 64   ;;  %s9130_s29 = smov 4  }
  0x1a   :  { %59 = dma.hbm_to_vmem [thread:$0]  %s9493_s3, 6144, %s54_s26, [#allocation9], %s9129_s28, %s9129_s28, %s9130_s29  }
  0x1b   :  { %s9131_s7 = smov [#allocation2]  }
  0x1c   :  { %s19_s8 = sshll.u32 %s9131_s7, 4  ;;  %s20_s8 = int_to_ptr.vmem [resolvable:$true] %s19_s8 }
  0x1d   :  { %s9045_s1 = scalar_lea.vmem %s20_s8, 4352  ;;  %p9050_p11 = scmp.lt.s32.totalorder %s20_s8, %s20_s8 }
  0x1e   :  { %p9046_p10 = scmp.ne.s32.totalorder %s20_s8, %s9045_s1  ;;  %p9051_p12 = scmp.lt.s32.totalorder %s9045_s1, %s9045_s1 }
  0x20   :  { %p9052_p13 = por %p9051_p12, %p9050_p11 }
  0x22   :  { %p9053_p0 = pnand %p9052_p13, %p9046_p10 }
  0x24   :  { %9056 = shalt.err (!%p9053_p0)
}
  0x25   :  { %s9132_s9 = smov 2176   ;;  %s9133_s10 = smov 136  }
  0x26   :  { %25 = dma.hbm_to_vmem [thread:$0]  %s9490_s0, 4352, %s20_s8, [#allocation3], %s9132_s9, %s9132_s9, %s9133_s10  }
  0x27   :  { %s9134_s13 = smov [#allocation7]   ;;  %s9135_s3 = smov [#allocation10]  }
  0x28   :  { %s44_s14 = sshll.u32 %s9134_s13, 4  ;;  %s66_s15 = sshll.u32 %s9135_s3, 4  ;;  %s45_s14 = int_to_ptr.vmem [resolvable:$true] %s44_s14  ;;  %s67_s15 = int_to_ptr.vmem [resolvable:$true] %s66_s15 }
  0x29   :  { %s9065_s16 = scalar_lea.vmem %s45_s14, 96  ;;  %p9070_p2 = scmp.lt.s32.totalorder %s45_s14, %s45_s14 }
  0x2a   :  { %p9066_p1 = scmp.ne.s32.totalorder %s45_s14, %s9065_s16  ;;  %p9071_p3 = scmp.lt.s32.totalorder %s9065_s16, %s9065_s16 }
  0x2c   :  { %p9072_p4 = por %p9071_p3, %p9070_p2 }
  0x2e   :  { %p9073_p5 = pnand %p9072_p4, %p9066_p1 }
  0x30   :  { %9076 = shalt.err (!%p9073_p5)
}
  0x31   :  { %47 = dma.hbm_to_vmem [thread:$0]  %s9492_s2, 96, %s45_s14, [#allocation6]  }
  0x32   :  { %s9085_s19 = scalar_lea.vmem %s67_s15, 16  ;;  %s9089_s0 = scalar_lea.vmem %s67_s15, 32 }
  0x33   :  { %p9086_p6 = scmp.ne.s32.totalorder %s67_s15, %s9085_s19  ;;  %p9090_p7 = scmp.lt.s32.totalorder %s67_s15, %s67_s15 }
  0x34   :  { %p9091_p8 = scmp.lt.s32.totalorder %s9089_s0, %s9085_s19 }
  0x36   :  { %p9092_p9 = por %p9091_p8, %p9090_p7 }
  0x38   :  { %p9093_p10 = pnand %p9092_p9, %p9086_p6 }
  0x3a   :  { %9096 = shalt.err (!%p9093_p10)
}
  0x3b   :  { %69 = dma.hbm_to_vmem [thread:$0]  %s9494_s4, 16, %s67_s15, [#allocation9]  }
  0x3c   :  { %9117 = dma.done.wait [#allocation3], 4352  }
  0x3d   :  { %9118 = vsyncadd [#allocation3], 4294962944 }
  0x3e   :  { %9119 = dma.done.wait [#allocation6], 104544  }
  0x3f   :  { %9120 = vsyncadd [#allocation6], 4294862752 }
  0x40   :  { %9121 = dma.done.wait [#allocation9], 6160  }
  0x41   :  { %9122 = vsyncadd [#allocation9], 4294961136  ;;  %v7725_v0 = vld [vmem:[#allocation5 + $0x154] ss:$24 sps:$4 sm:$0xff]   ;;  %v7729_v2 = vld [vmem:[#allocation5 + $0x150] ss:$24 sps:$4 sm:$0xff]  }
  0x42   :  { %v7727_v1 = vld [vmem:[#allocation5 + $0x454] ss:$24 sps:$4 sm:$0xff]   ;;  %5065 = vmatprep.subr.bf16.mxu0 %v7725_v0  ;;  %v7730_v3 = vld [vmem:[#allocation5 + $0x450] ss:$24 sps:$4 sm:$0xff]   ;;  %v7731_v4 = vld [vmem:[#allocation5 + $0x124] ss:$24 sps:$4 sm:$0xff]  }
  0x43   :  { %5108 = vmatprep.subr.bf16.mxu1 %v7727_v1  ;;  %5066 = vmatpush1.bf16.msra.mxu0 %v7729_v2  ;;  %v7733_v5 = vld [vmem:[#allocation5 + $0x424] ss:$24 sps:$4 sm:$0xff]   ;;  %v7735_v6 = vld [vmem:[#allocation5 + $0x120] ss:$24 sps:$4 sm:$0xff]   ;;  %v7737_v8 = vld [vmem:[#allocation5 + $0xf4] ss:$24 sps:$4 sm:$0xff]  }
  0x44   :  { %5109 = vmatpush1.bf16.msra.mxu1 %v7730_v3  ;;  %5067 = vmatprep.subr.bf16.mxu0 %v7731_v4  ;;  %v7736_v7 = vld [vmem:[#allocation5 + $0x420] ss:$24 sps:$4 sm:$0xff]   ;;  %v7739_v9 = vld [vmem:[#allocation5 + $0x3f4] ss:$24 sps:$4 sm:$0xff]   ;;  %v7741_v10 = vld [vmem:[#allocation5 + $0xf0] ss:$24 sps:$4 sm:$0xff]  }
  0x45   :  { %5110 = vmatprep.subr.bf16.mxu1 %v7733_v5  ;;  %v7742_v11 = vld [vmem:[#allocation5 + $0x3f0] ss:$24 sps:$4 sm:$0xff]   ;;  %v7743_v12 = vld [vmem:[#allocation5 + $0xc4] ss:$24 sps:$4 sm:$0xff]   ;;  %v7747_v14 = vld [vmem:[#allocation5 + $0xc0] ss:$24 sps:$4 sm:$0xff]  }
  0x46   :  { %v7745_v13 = vld [vmem:[#allocation5 + $0x3c4] ss:$24 sps:$4 sm:$0xff]   ;;  %v7748_v15 = vld [vmem:[#allocation5 + $0x3c0] ss:$24 sps:$4 sm:$0xff]   ;;  %v7749_v16 = vld [vmem:[#allocation5 + $0x94] ss:$24 sps:$4 sm:$0xff]  }
  0x47   :  { %5068 = vmatpush1.bf16.msra.mxu0 %v7735_v6  ;;  %v7751_v17 = vld [vmem:[#allocation5 + $0x394] ss:$24 sps:$4 sm:$0xff]   ;;  %v7753_v18 = vld [vmem:[#allocation5 + $0x90] ss:$24 sps:$4 sm:$0xff]   ;;  %v7755_v20 = vld [vmem:[#allocation5 + $0x64] ss:$24 sps:$4 sm:$0xff]  }
  0x48   :  { %5111 = vmatpush1.bf16.msra.mxu1 %v7736_v7  ;;  %5069 = vmatprep.subr.bf16.mxu0 %v7737_v8  ;;  %v7754_v19 = vld [vmem:[#allocation5 + $0x390] ss:$24 sps:$4 sm:$0xff]   ;;  %v7757_v21 = vld [vmem:[#allocation5 + $0x364] ss:$24 sps:$4 sm:$0xff]   ;;  %v7759_v22 = vld [vmem:[#allocation5 + $0x60] ss:$24 sps:$4 sm:$0xff]  }
  0x49   :  { %5112 = vmatprep.subr.bf16.mxu1 %v7739_v9  ;;  %v7760_v23 = vld [vmem:[#allocation5 + $0x360] ss:$24 sps:$4 sm:$0xff]   ;;  %v7761_v24 = vld [vmem:[#allocation5 + $0x34] ss:$24 sps:$4 sm:$0xff]   ;;  %v7765_v26 = vld [vmem:[#allocation5 + $0x30] ss:$24 sps:$4 sm:$0xff]  }
  0x4a   :  { %v7763_v25 = vld [vmem:[#allocation5 + $0x334] ss:$24 sps:$4 sm:$0xff]   ;;  %v7766_v27 = vld [vmem:[#allocation5 + $0x330] ss:$24 sps:$4 sm:$0xff]   ;;  %v7767_v28 = vld [vmem:[#allocation5 + $0x4] ss:$24 sps:$4 sm:$0xff]  }
  0x4b   :  { %5070 = vmatpush1.bf16.msra.mxu0 %v7741_v10  ;;  %v7769_v29 = vld [vmem:[#allocation5 + $0x304] ss:$24 sps:$4 sm:$0xff]   ;;  %v7771_v30 = vld [vmem:[#allocation5] ss:$24 sps:$4 sm:$0xff]   ;;  %v7773_v32 = vld [vmem:[#allocation5 + $0x2d4] ss:$24 sps:$4 sm:$0xff]  }
  0x4c   :  { %5113 = vmatpush1.bf16.msra.mxu1 %v7742_v11  ;;  %5071 = vmatprep.subr.bf16.mxu0 %v7743_v12  ;;  %v7772_v31 = vld [vmem:[#allocation5 + $0x300] ss:$24 sps:$4 sm:$0xff]   ;;  %v7775_v33 = vld [vmem:[#allocation5 + $0x5d4] ss:$24 sps:$4 sm:$0xff]   ;;  %v7777_v34 = vld [vmem:[#allocation5 + $0x2d0] ss:$24 sps:$4 sm:$0xff]  }
  0x4d   :  { %5114 = vmatprep.subr.bf16.mxu1 %v7745_v13  ;;  %v7778_v35 = vld [vmem:[#allocation5 + $0x5d0] ss:$24 sps:$4 sm:$0xff]   ;;  %v7779_v36 = vld [vmem:[#allocation5 + $0x2a4] ss:$24 sps:$4 sm:$0xff]   ;;  %v7783_v38 = vld [vmem:[#allocation5 + $0x2a0] ss:$24 sps:$4 sm:$0xff]  }
  0x4e   :  { %v7781_v37 = vld [vmem:[#allocation5 + $0x5a4] ss:$24 sps:$4 sm:$0xff]   ;;  %v7784_v39 = vld [vmem:[#allocation5 + $0x5a0] ss:$24 sps:$4 sm:$0xff]   ;;  %v7785_v40 = vld [vmem:[#allocation5 + $0x274] ss:$24 sps:$4 sm:$0xff]  }
  0x4f   :  { %5072 = vmatpush1.bf16.msra.mxu0 %v7747_v14  ;;  %v7787_v41 = vld [vmem:[#allocation5 + $0x574] ss:$24 sps:$4 sm:$0xff]   ;;  %v7789_v42 = vld [vmem:[#allocation5 + $0x270] ss:$24 sps:$4 sm:$0xff]   ;;  %v7791_v44 = vld [vmem:[#allocation5 + $0x244] ss:$24 sps:$4 sm:$0xff]  }
  0x50   :  { %5115 = vmatpush1.bf16.msra.mxu1 %v7748_v15  ;;  %5073 = vmatprep.subr.bf16.mxu0 %v7749_v16  ;;  %v7790_v43 = vld [vmem:[#allocation5 + $0x570] ss:$24 sps:$4 sm:$0xff]   ;;  %v7793_v45 = vld [vmem:[#allocation5 + $0x544] ss:$24 sps:$4 sm:$0xff]   ;;  %v7795_v47 = vld [vmem:[#allocation5 + $0x240] ss:$24 sps:$4 sm:$0xff]  }
  0x51   :  { %5116 = vmatprep.subr.bf16.mxu1 %v7751_v17  ;;  %v87_v46 = vld [vmem:[#allocation2 + $0x8] sm:$0xff]  ;;  %v104_v49 = vld [vmem:[#allocation2 + $0x90] sm:$0xff]  ;;  %v89_v51 = vld [vmem:[#allocation2 + $0x18] sm:$0xff]  ;;  %s9137_s2 = smov [#allocation11]  }
  0x52   :  { %v7796_v48 = vld [vmem:[#allocation5 + $0x540] ss:$24 sps:$4 sm:$0xff]   ;;  %v9185_v50 = vpack.c.bf16 %v104_v49, %v87_v46  ;;  %v106_v52 = vld [vmem:[#allocation2 + $0xa0] sm:$0xff]  ;;  %v7803_v58 = vld [vmem:[#allocation5 + $0x1e4] ss:$24 sps:$4 sm:$0xff]   ;;  %s6765_s4 = sshll.u32 %s9137_s2, 4  ;;  %s6766_s4 = int_to_ptr.vmem [resolvable:$true] %s6765_s4 }
  0x53   :  { %5074 = vmatpush1.bf16.msra.mxu0 %v7753_v18  ;;  %v7797_v53 = vld [vmem:[#allocation5 + $0x214] ss:$24 sps:$4 sm:$0xff]   ;;  %v9187_v55 = vpack.c.bf16 %v106_v52, %v89_v51  ;;  %v7801_v56 = vld [vmem:[#allocation5 + $0x210] ss:$24 sps:$4 sm:$0xff]   ;;  %v7805_v59 = vld [vmem:[#allocation5 + $0x4e4] ss:$24 sps:$4 sm:$0xff]   ;;  %p9102_p12 = scmp.lt.s32.totalorder %s6766_s4, %s6766_s4 }
  0x54   :  { %5117 = vmatpush1.bf16.msra.mxu1 %v7754_v19  ;;  %5075 = vmatprep.subr.bf16.mxu0 %v7755_v20  ;;  %v7799_v54 = vld [vmem:[#allocation5 + $0x514] ss:$24 sps:$4 sm:$0xff]   ;;  %v7802_v57 = vld [vmem:[#allocation5 + $0x510] ss:$24 sps:$4 sm:$0xff]   ;;  %v7807_v60 = vld [vmem:[#allocation5 + $0x1e0] ss:$24 sps:$4 sm:$0xff]  }
  0x55   :  { %5118 = vmatprep.subr.bf16.mxu1 %v7757_v21  ;;  %5097 = vmatprep.mubr.bf16.mxu0 %v9185_v50  ;;  %v7808_v61 = vld [vmem:[#allocation5 + $0x4e0] ss:$24 sps:$4 sm:$0xff]   ;;  %v7809_v62 = vld [vmem:[#allocation5 + $0x1b4] ss:$24 sps:$4 sm:$0xff]   ;;  %v7813_v0 = vld [vmem:[#allocation5 + $0x1b0] ss:$24 sps:$4 sm:$0xff]  }
  0x56   :  { %5140 = vmatprep.mubr.bf16.mxu1 %v9187_v55  ;;  %v7811_v63 = vld [vmem:[#allocation5 + $0x4b4] ss:$24 sps:$4 sm:$0xff]   ;;  %v7814_v1 = vld [vmem:[#allocation5 + $0x4b0] ss:$24 sps:$4 sm:$0xff]   ;;  %v7815_v2 = vld [vmem:[#allocation5 + $0x184] ss:$24 sps:$4 sm:$0xff]  }
  0x57   :  { %5076 = vmatpush1.bf16.msra.mxu0 %v7759_v22  ;;  %v7817_v3 = vld [vmem:[#allocation5 + $0x484] ss:$24 sps:$4 sm:$0xff]   ;;  %v7819_v4 = vld [vmem:[#allocation5 + $0x180] ss:$24 sps:$4 sm:$0xff]   ;;  %v86_v6 = vld [vmem:[#allocation2] sm:$0xff]  ;;  %s9097_s22 = scalar_lea.vmem %s6766_s4, 256 }
  0x58   :  { %5119 = vmatpush1.bf16.msra.mxu1 %v7760_v23  ;;  %5077 = vmatprep.subr.bf16.mxu0 %v7761_v24  ;;  %v7820_v5 = vld [vmem:[#allocation5 + $0x480] ss:$24 sps:$4 sm:$0xff]   ;;  %v7823_v8 = vld [vmem:[#allocation5 + $0x754] ss:$24 sps:$4 sm:$0xff]   ;;  %v7821_v13 = vld [vmem:[#allocation5 + $0x750] ss:$24 sps:$4 sm:$0xff]   ;;  %p9098_p11 = scmp.ne.s32.totalorder %s6766_s4, %s9097_s22  ;;  %p9103_p13 = scmp.lt.s32.totalorder %s9097_s22, %s9097_s22 }
  0x59   :  { %5120 = vmatprep.subr.bf16.mxu1 %v7763_v25  ;;  %v103_v7 = vld [vmem:[#allocation2 + $0x88] sm:$0xff]  ;;  %v88_v9 = vld [vmem:[#allocation2 + $0x10] sm:$0xff]  ;;  %v105_v10 = vld [vmem:[#allocation2 + $0x98] sm:$0xff] }
  0x5a   :  { %v7826_v11 = vld [vmem:[#allocation5 + $0xa54] ss:$24 sps:$4 sm:$0xff]   ;;  %v9191_v12 = vpack.c.bf16 %v103_v7, %v86_v6  ;;  %v7824_v14 = vld [vmem:[#allocation5 + $0xa50] ss:$24 sps:$4 sm:$0xff]   ;;  %v9193_v15 = vpack.c.bf16 %v105_v10, %v88_v9  ;;  %v7829_v16 = vld [vmem:[#allocation5 + $0x724] ss:$24 sps:$4 sm:$0xff]   ;;  %p9104_p0 = por %p9103_p13, %p9102_p12 }
  0x5b   :  { %5078 = vmatpush1.bf16.msra.mxu0 %v7765_v26  ;;  %v7832_v17 = vld [vmem:[#allocation5 + $0xa24] ss:$24 sps:$4 sm:$0xff]   ;;  %v7827_v18 = vld [vmem:[#allocation5 + $0x720] ss:$24 sps:$4 sm:$0xff]   ;;  %v7835_v20 = vld [vmem:[#allocation5 + $0x6f4] ss:$24 sps:$4 sm:$0xff]  }
  0x5c   :  { %5121 = vmatpush1.bf16.msra.mxu1 %v7766_v27  ;;  %5079 = vmatprep.subr.bf16.mxu0 %v7767_v28  ;;  %v7830_v19 = vld [vmem:[#allocation5 + $0xa20] ss:$24 sps:$4 sm:$0xff]   ;;  %v7838_v21 = vld [vmem:[#allocation5 + $0x9f4] ss:$24 sps:$4 sm:$0xff]   ;;  %v7833_v22 = vld [vmem:[#allocation5 + $0x6f0] ss:$24 sps:$4 sm:$0xff]   ;;  %p9105_p1 = pnand %p9104_p0, %p9098_p11 }
  0x5d   :  { %5122 = vmatprep.subr.bf16.mxu1 %v7769_v29  ;;  %v7836_v23 = vld [vmem:[#allocation5 + $0x9f0] ss:$24 sps:$4 sm:$0xff]   ;;  %v7841_v24 = vld [vmem:[#allocation5 + $0x6c4] ss:$24 sps:$4 sm:$0xff]   ;;  %v7839_v26 = vld [vmem:[#allocation5 + $0x6c0] ss:$24 sps:$4 sm:$0xff]  }
  0x5e   :  { %v7844_v25 = vld [vmem:[#allocation5 + $0x9c4] ss:$24 sps:$4 sm:$0xff]   ;;  %v7842_v27 = vld [vmem:[#allocation5 + $0x9c0] ss:$24 sps:$4 sm:$0xff]   ;;  %v7847_v28 = vld [vmem:[#allocation5 + $0x694] ss:$24 sps:$4 sm:$0xff]  }
  0x5f   :  { %5080 = vmatpush1.bf16.msra.mxu0 %v7771_v30  ;;  %v7850_v29 = vld [vmem:[#allocation5 + $0x994] ss:$24 sps:$4 sm:$0xff]   ;;  %v7845_v30 = vld [vmem:[#allocation5 + $0x690] ss:$24 sps:$4 sm:$0xff]   ;;  %v7866_v49 = vld [vmem:[#allocation5 + $0x900] ss:$24 sps:$4 sm:$0xff]  }
  0x60   :  { %5123 = vmatpush1.bf16.msra.mxu1 %v7772_v31  ;;  %5081 = vmatprep.subr.bf16.mxu0 %v7773_v32  ;;  %v7848_v31 = vld [vmem:[#allocation5 + $0x990] ss:$24 sps:$4 sm:$0xff]   ;;  %v7853_v32 = vld [vmem:[#allocation5 + $0x664] ss:$24 sps:$4 sm:$0xff]   ;;  %v7871_v51 = vld [vmem:[#allocation5 + $0x8d4] ss:$24 sps:$4 sm:$0xff]  }
  0x61   :  { %5124 = vmatprep.subr.bf16.mxu1 %v7775_v33  ;;  %v7856_v33 = vld [vmem:[#allocation5 + $0x964] ss:$24 sps:$4 sm:$0xff]   ;;  %v110_v46 = vld [vmem:[#allocation2 + $0xc0] sm:$0xff]  ;;  %v7899_v10 = vld [vmem:[#allocation5 + $0x7e0] ss:$24 sps:$4 sm:$0xff]  }
  0x62   :  { %v7874_v52 = vld [vmem:[#allocation5 + $0xbd4] ss:$24 sps:$4 sm:$0xff]   ;;  %v7893_v6 = vld [vmem:[#allocation5 + $0x810] ss:$24 sps:$4 sm:$0xff]   ;;  %v7904_v9 = vld [vmem:[#allocation5 + $0xae4] ss:$24 sps:$4 sm:$0xff]  }
  0x63   :  { %5082 = vmatpush2.bf16.msra.mxu0 %v7777_v34  ;;  %v7851_v34 = vld [vmem:[#allocation5 + $0x660] ss:$24 sps:$4 sm:$0xff]   ;;  %v7896_v7 = vld [vmem:[#allocation5 + $0xb10] ss:$24 sps:$4 sm:$0xff]  }
  0x64   :  { %5125 = vmatpush2.bf16.msra.mxu1 %v7778_v35  ;;  %5083 = vmatprep.subr.bf16.mxu0 %v7779_v36  ;;  %v7854_v35 = vld [vmem:[#allocation5 + $0x960] ss:$24 sps:$4 sm:$0xff]   ;;  %v7859_v36 = vld [vmem:[#allocation5 + $0x634] ss:$24 sps:$4 sm:$0xff]  }
  0x65   :  { %5126 = vmatprep.subr.bf16.mxu1 %v7781_v37  ;;  %v7862_v37 = vld [vmem:[#allocation5 + $0x934] ss:$24 sps:$4 sm:$0xff]  }
  0x67   :  { %5084 = vmatpush2.bf16.msra.mxu0 %v7783_v38  ;;  %v7857_v38 = vld [vmem:[#allocation5 + $0x630] ss:$24 sps:$4 sm:$0xff]  }
  0x68   :  { %5127 = vmatpush2.bf16.msra.mxu1 %v7784_v39  ;;  %5085 = vmatprep.subr.bf16.mxu0 %v7785_v40  ;;  %v7860_v39 = vld [vmem:[#allocation5 + $0x930] ss:$24 sps:$4 sm:$0xff]   ;;  %v7865_v40 = vld [vmem:[#allocation5 + $0x604] ss:$24 sps:$4 sm:$0xff]  }
  0x69   :  { %5128 = vmatprep.subr.bf16.mxu1 %v7787_v41  ;;  %v91_v41 = vld [vmem:[#allocation2 + $0x28] sm:$0xff] }
  0x6b   :  { %5086 = vmatpush2.bf16.msra.mxu0 %v7789_v42  ;;  %v108_v42 = vld [vmem:[#allocation2 + $0xb0] sm:$0xff] }
  0x6c   :  { %5129 = vmatpush2.bf16.msra.mxu1 %v7790_v43  ;;  %5087 = vmatprep.subr.bf16.mxu0 %v7791_v44  ;;  %v7868_v43 = vld [vmem:[#allocation5 + $0x904] ss:$24 sps:$4 sm:$0xff]   ;;  %v9197_v44 = vpack.c.bf16 %v108_v42, %v91_v41  ;;  %v97_v41 = vld [vmem:[#allocation2 + $0x58] sm:$0xff]  ;;  %v114_v42 = vld [vmem:[#allocation2 + $0xe0] sm:$0xff] }
  0x6d   :  { %5130 = vmatprep.subr.bf16.mxu1 %v7793_v45  ;;  %v93_v45 = vld [vmem:[#allocation2 + $0x38] sm:$0xff] }
  0x6f   :  { %5088 = vmatpush2.bf16.msra.mxu0 %v7795_v47  ;;  %v9199_v47 = vpack.c.bf16 %v110_v46, %v93_v45  ;;  %v7932_v45 = vld [vmem:[#allocation5 + $0xff0] ss:$24 sps:$4 sm:$0xff]   ;;  %v9211_v46 = vpack.c.bf16 %v114_v42, %v97_v41  ;;  %v8007_v41 = vld [vmem:[#allocation5 + $0xd80] ss:$24 sps:$4 sm:$0xff]  }
  0x70   :  { %5131 = vmatpush2.bf16.msra.mxu1 %v7796_v48  ;;  %5089 = vmatprep.subr.bf16.mxu0 %v7797_v53  ;;  %v7863_v48 = vld [vmem:[#allocation5 + $0x600] ss:$24 sps:$4 sm:$0xff]   ;;  %v7869_v53 = vld [vmem:[#allocation5 + $0x8d0] ss:$24 sps:$4 sm:$0xff]  }
  0x71   :  { %5132 = vmatprep.subr.bf16.mxu1 %v7799_v54  ;;  %v7872_v54 = vld [vmem:[#allocation5 + $0xbd0] ss:$24 sps:$4 sm:$0xff]   ;;  %v8010_v42 = vld [vmem:[#allocation5 + $0x1080] ss:$24 sps:$4 sm:$0xff]  }
  0x73   :  { %5090 = vmatpush2.bf16.msra.mxu0 %v7801_v56  ;;  %v7877_v56 = vld [vmem:[#allocation5 + $0x8a4] ss:$24 sps:$4 sm:$0xff]  }
  0x74   :  { %5133 = vmatpush2.bf16.msra.mxu1 %v7802_v57  ;;  %5091 = vmatprep.subr.bf16.mxu0 %v7803_v58  ;;  %v7880_v57 = vld [vmem:[#allocation5 + $0xba4] ss:$24 sps:$4 sm:$0xff]   ;;  %v7875_v58 = vld [vmem:[#allocation5 + $0x8a0] ss:$24 sps:$4 sm:$0xff]  }
  0x75   :  { %5134 = vmatprep.subr.bf16.mxu1 %v7805_v59  ;;  %v7878_v59 = vld [vmem:[#allocation5 + $0xba0] ss:$24 sps:$4 sm:$0xff]  }
  0x77   :  { %5092 = vmatpush2.bf16.msra.mxu0 %v7807_v60  ;;  %v7883_v60 = vld [vmem:[#allocation5 + $0x874] ss:$24 sps:$4 sm:$0xff]  }
  0x78   :  { %5135 = vmatpush2.bf16.msra.mxu1 %v7808_v61  ;;  %5093 = vmatprep.subr.bf16.mxu0 %v7809_v62  ;;  %v7886_v61 = vld [vmem:[#allocation5 + $0xb74] ss:$24 sps:$4 sm:$0xff]   ;;  %v7881_v62 = vld [vmem:[#allocation5 + $0x870] ss:$24 sps:$4 sm:$0xff]  }
  0x79   :  { %5136 = vmatprep.subr.bf16.mxu1 %v7811_v63  ;;  %v7884_v63 = vld [vmem:[#allocation5 + $0xb70] ss:$24 sps:$4 sm:$0xff]  }
  0x7b   :  { %5094 = vmatpush2.bf16.msra.mxu0 %v7813_v0  ;;  %v7889_v0 = vld [vmem:[#allocation5 + $0x844] ss:$24 sps:$4 sm:$0xff]  }
  0x7c   :  { %5137 = vmatpush2.bf16.msra.mxu1 %v7814_v1  ;;  %5095 = vmatprep.subr.bf16.mxu0 %v7815_v2  ;;  %v7892_v1 = vld [vmem:[#allocation5 + $0xb44] ss:$24 sps:$4 sm:$0xff]   ;;  %v7887_v2 = vld [vmem:[#allocation5 + $0x840] ss:$24 sps:$4 sm:$0xff]  }
  0x7d   :  { %5138 = vmatprep.subr.bf16.mxu1 %v7817_v3  ;;  %v7890_v3 = vld [vmem:[#allocation5 + $0xb40] ss:$24 sps:$4 sm:$0xff]  }
  0x7f   :  { %5096 = vmatpush2.bf16.msra.mxu0 %v7819_v4  ;;  %v7895_v4 = vld [vmem:[#allocation5 + $0x814] ss:$24 sps:$4 sm:$0xff]  }
  0x80   :  { %5139 = vmatpush2.bf16.msra.mxu1 %v7820_v5  ;;  %5151 = vmatprep.subr.bf16.mxu0 %v7823_v8  ;;  %v7898_v5 = vld [vmem:[#allocation5 + $0xb14] ss:$24 sps:$4 sm:$0xff]   ;;  %v7901_v8 = vld [vmem:[#allocation5 + $0x7e4] ss:$24 sps:$4 sm:$0xff]  }
  0x81   :  { %5194 = vmatprep.subr.bf16.mxu1 %v7826_v11  ;;  %v7902_v11 = vld [vmem:[#allocation5 + $0xae0] ss:$24 sps:$4 sm:$0xff]  }
  0x82   :  { %5098 = vmatmul.mubr.bf16.vlgmr.msra.gmra.mxu0 %v9191_v12 }
  0x83   :  { %5141 = vmatmul.mubr.bf16.vlgmr.msra.gmra.mxu1 %v9193_v15  ;;  %5152 = vmatpush1.bf16.msra.mxu0 %v7821_v13  ;;  %v7907_v13 = vld [vmem:[#allocation5 + $0x7b4] ss:$24 sps:$4 sm:$0xff]  }
  0x84   :  { %5195 = vmatpush1.bf16.msra.mxu1 %v7824_v14  ;;  %5153 = vmatprep.subr.bf16.mxu0 %v7829_v16  ;;  %v7910_v14 = vld [vmem:[#allocation5 + $0xab4] ss:$24 sps:$4 sm:$0xff]   ;;  %v7905_v16 = vld [vmem:[#allocation5 + $0x7b0] ss:$24 sps:$4 sm:$0xff]  }
  0x85   :  { %5196 = vmatprep.subr.bf16.mxu1 %v7832_v17  ;;  %5183 = vmatprep.mubr.bf16.mxu0 %v9197_v44  ;;  %v7908_v17 = vld [vmem:[#allocation5 + $0xab0] ss:$24 sps:$4 sm:$0xff]  }
  0x86   :  { %5226 = vmatprep.mubr.bf16.mxu1 %v9199_v47 }
  0x87   :  { %5154 = vmatpush1.bf16.msra.mxu0 %v7827_v18  ;;  %v7913_v18 = vld [vmem:[#allocation5 + $0x784] ss:$24 sps:$4 sm:$0xff]  }
  0x88   :  { %5197 = vmatpush1.bf16.msra.mxu1 %v7830_v19  ;;  %5155 = vmatprep.subr.bf16.mxu0 %v7835_v20  ;;  %v7916_v19 = vld [vmem:[#allocation5 + $0xa84] ss:$24 sps:$4 sm:$0xff]   ;;  %v7911_v20 = vld [vmem:[#allocation5 + $0x780] ss:$24 sps:$4 sm:$0xff]  }
  0x89   :  { %5198 = vmatprep.subr.bf16.mxu1 %v7838_v21  ;;  %v7914_v21 = vld [vmem:[#allocation5 + $0xa80] ss:$24 sps:$4 sm:$0xff]  }
  0x8b   :  { %5156 = vmatpush1.bf16.msra.mxu0 %v7833_v22  ;;  %v90_v22 = vld [vmem:[#allocation2 + $0x20] sm:$0xff] }
  0x8c   :  { %5199 = vmatpush1.bf16.msra.mxu1 %v7836_v23  ;;  %5157 = vmatprep.subr.bf16.mxu0 %v7841_v24  ;;  %v107_v23 = vld [vmem:[#allocation2 + $0xa8] sm:$0xff]  ;;  %v7919_v24 = vld [vmem:[#allocation5 + $0xd54] ss:$24 sps:$4 sm:$0xff]  }
  0x8d   :  { %5200 = vmatprep.subr.bf16.mxu1 %v7844_v25  ;;  %v92_v25 = vld [vmem:[#allocation2 + $0x30] sm:$0xff] }
  0x8f   :  { %5158 = vmatpush1.bf16.msra.mxu0 %v7839_v26  ;;  %v109_v26 = vld [vmem:[#allocation2 + $0xb8] sm:$0xff] }
  0x90   :  { %5201 = vmatpush1.bf16.msra.mxu1 %v7842_v27  ;;  %5159 = vmatprep.subr.bf16.mxu0 %v7847_v28  ;;  %v7922_v27 = vld [vmem:[#allocation5 + $0x1054] ss:$24 sps:$4 sm:$0xff]   ;;  %v9203_v28 = vpack.c.bf16 %v107_v23, %v90_v22  ;;  %v7983_v22 = vld [vmem:[#allocation5 + $0xe40] ss:$24 sps:$4 sm:$0xff]  }
  0x91   :  { %5202 = vmatprep.subr.bf16.mxu1 %v7850_v29  ;;  %v7917_v29 = vld [vmem:[#allocation5 + $0xd50] ss:$24 sps:$4 sm:$0xff]   ;;  %v7986_v23 = vld [vmem:[#allocation5 + $0x1140] ss:$24 sps:$4 sm:$0xff]  }
  0x93   :  { %5160 = vmatpush1.bf16.msra.mxu0 %v7845_v30  ;;  %v7920_v30 = vld [vmem:[#allocation5 + $0x1050] ss:$24 sps:$4 sm:$0xff]  }
  0x94   :  { %5203 = vmatpush1.bf16.msra.mxu1 %v7848_v31  ;;  %5161 = vmatprep.subr.bf16.mxu0 %v7853_v32  ;;  %v9205_v31 = vpack.c.bf16 %v109_v26, %v92_v25  ;;  %v7925_v32 = vld [vmem:[#allocation5 + $0xd24] ss:$24 sps:$4 sm:$0xff]   ;;  %v7994_v25 = vld [vmem:[#allocation5 + $0x1114] ss:$24 sps:$4 sm:$0xff]   ;;  %v7989_v26 = vld [vmem:[#allocation5 + $0xe10] ss:$24 sps:$4 sm:$0xff]  }
  0x95   :  { %5204 = vmatprep.subr.bf16.mxu1 %v7856_v33  ;;  %v7928_v33 = vld [vmem:[#allocation5 + $0x1024] ss:$24 sps:$4 sm:$0xff]  }
  0x97   :  { %5162 = vmatpush1.bf16.msra.mxu0 %v7851_v34  ;;  %v7923_v34 = vld [vmem:[#allocation5 + $0xd20] ss:$24 sps:$4 sm:$0xff]  }
  0x98   :  { %5205 = vmatpush1.bf16.msra.mxu1 %v7854_v35  ;;  %5163 = vmatprep.subr.bf16.mxu0 %v7859_v36  ;;  %v7926_v35 = vld [vmem:[#allocation5 + $0x1020] ss:$24 sps:$4 sm:$0xff]   ;;  %v7931_v36 = vld [vmem:[#allocation5 + $0xcf4] ss:$24 sps:$4 sm:$0xff]  }
  0x99   :  { %5206 = vmatprep.subr.bf16.mxu1 %v7862_v37  ;;  %v7934_v37 = vld [vmem:[#allocation5 + $0xff4] ss:$24 sps:$4 sm:$0xff]  }
  0x9b   :  { %5164 = vmatpush1.bf16.msra.mxu0 %v7857_v38  ;;  %v95_v38 = vld [vmem:[#allocation2 + $0x48] sm:$0xff] }
  0x9c   :  { %5207 = vmatpush1.bf16.msra.mxu1 %v7860_v39  ;;  %5165 = vmatprep.subr.bf16.mxu0 %v7865_v40  ;;  %v112_v39 = vld [vmem:[#allocation2 + $0xd0] sm:$0xff] }
  0x9d   :  { %5208 = vmatprep.subr.bf16.mxu1 %v7868_v43  ;;  %v9209_v40 = vpack.c.bf16 %v112_v39, %v95_v38  ;;  %v7929_v43 = vld [vmem:[#allocation5 + $0xcf0] ss:$24 sps:$4 sm:$0xff]   ;;  %v8009_v38 = vld [vmem:[#allocation5 + $0xd84] ss:$24 sps:$4 sm:$0xff]  }
  0x9e   :  { %v8012_v39 = vld [vmem:[#allocation5 + $0x1084] ss:$24 sps:$4 sm:$0xff]  }
  0x9f   :  { %5166 = vmatpush1.bf16.msra.mxu0 %v7863_v48  ;;  %v7937_v48 = vld [vmem:[#allocation5 + $0xcc4] ss:$24 sps:$4 sm:$0xff]  }
  0xa0   :  { %5209 = vmatpush1.bf16.msra.mxu1 %v7866_v49  ;;  %5167 = vmatprep.subr.bf16.mxu0 %v7871_v51  ;;  %v7940_v49 = vld [vmem:[#allocation5 + $0xfc4] ss:$24 sps:$4 sm:$0xff]   ;;  %v7935_v51 = vld [vmem:[#allocation5 + $0xcc0] ss:$24 sps:$4 sm:$0xff]  }
  0xa1   :  { %5210 = vmatprep.subr.bf16.mxu1 %v7874_v52  ;;  %v7938_v52 = vld [vmem:[#allocation5 + $0xfc0] ss:$24 sps:$4 sm:$0xff]  }
  0xa3   :  { %5168 = vmatpush2.bf16.msra.mxu0 %v7869_v53  ;;  %v7943_v53 = vld [vmem:[#allocation5 + $0xc94] ss:$24 sps:$4 sm:$0xff]  }
  0xa4   :  { %5211 = vmatpush2.bf16.msra.mxu1 %v7872_v54  ;;  %5169 = vmatprep.subr.bf16.mxu0 %v7877_v56  ;;  %v7946_v54 = vld [vmem:[#allocation5 + $0xf94] ss:$24 sps:$4 sm:$0xff]   ;;  %v7941_v56 = vld [vmem:[#allocation5 + $0xc90] ss:$24 sps:$4 sm:$0xff]  }
  0xa5   :  { %5212 = vmatprep.subr.bf16.mxu1 %v7880_v57  ;;  %v7944_v57 = vld [vmem:[#allocation5 + $0xf90] ss:$24 sps:$4 sm:$0xff]  }
  0xa7   :  { %5170 = vmatpush2.bf16.msra.mxu0 %v7875_v58  ;;  %v7949_v58 = vld [vmem:[#allocation5 + $0xc64] ss:$24 sps:$4 sm:$0xff]  }
  0xa8   :  { %5213 = vmatpush2.bf16.msra.mxu1 %v7878_v59  ;;  %5171 = vmatprep.subr.bf16.mxu0 %v7883_v60  ;;  %v7952_v59 = vld [vmem:[#allocation5 + $0xf64] ss:$24 sps:$4 sm:$0xff]   ;;  %v7947_v60 = vld [vmem:[#allocation5 + $0xc60] ss:$24 sps:$4 sm:$0xff]  }
  0xa9   :  { %5214 = vmatprep.subr.bf16.mxu1 %v7886_v61  ;;  %v7950_v61 = vld [vmem:[#allocation5 + $0xf60] ss:$24 sps:$4 sm:$0xff]  }
  0xab   :  { %5172 = vmatpush2.bf16.msra.mxu0 %v7881_v62  ;;  %v7955_v62 = vld [vmem:[#allocation5 + $0xc34] ss:$24 sps:$4 sm:$0xff]  }
  0xac   :  { %5215 = vmatpush2.bf16.msra.mxu1 %v7884_v63  ;;  %5173 = vmatprep.subr.bf16.mxu0 %v7889_v0  ;;  %v7958_v63 = vld [vmem:[#allocation5 + $0xf34] ss:$24 sps:$4 sm:$0xff]   ;;  %v7953_v0 = vld [vmem:[#allocation5 + $0xc30] ss:$24 sps:$4 sm:$0xff]  }
  0xad   :  { %5216 = vmatprep.subr.bf16.mxu1 %v7892_v1  ;;  %v7956_v1 = vld [vmem:[#allocation5 + $0xf30] ss:$24 sps:$4 sm:$0xff]  }
  0xaf   :  { %5174 = vmatpush2.bf16.msra.mxu0 %v7887_v2  ;;  %v7961_v2 = vld [vmem:[#allocation5 + $0xc04] ss:$24 sps:$4 sm:$0xff]  }
  0xb0   :  { %5217 = vmatpush2.bf16.msra.mxu1 %v7890_v3  ;;  %5175 = vmatprep.subr.bf16.mxu0 %v7895_v4  ;;  %v7964_v3 = vld [vmem:[#allocation5 + $0xf04] ss:$24 sps:$4 sm:$0xff]   ;;  %v7959_v4 = vld [vmem:[#allocation5 + $0xc00] ss:$24 sps:$4 sm:$0xff]  }
  0xb1   :  { %5218 = vmatprep.subr.bf16.mxu1 %v7898_v5  ;;  %v7962_v5 = vld [vmem:[#allocation5 + $0xf00] ss:$24 sps:$4 sm:$0xff]  }
  0xb3   :  { %5176 = vmatpush2.bf16.msra.mxu0 %v7893_v6  ;;  %v7967_v6 = vld [vmem:[#allocation5 + $0xed4] ss:$24 sps:$4 sm:$0xff]  }
  0xb4   :  { %5219 = vmatpush2.bf16.msra.mxu1 %v7896_v7  ;;  %5177 = vmatprep.subr.bf16.mxu0 %v7901_v8  ;;  %v7970_v7 = vld [vmem:[#allocation5 + $0x11d4] ss:$24 sps:$4 sm:$0xff]   ;;  %v7965_v8 = vld [vmem:[#allocation5 + $0xed0] ss:$24 sps:$4 sm:$0xff]  }
  0xb5   :  { %5220 = vmatprep.subr.bf16.mxu1 %v7904_v9  ;;  %v7968_v9 = vld [vmem:[#allocation5 + $0x11d0] ss:$24 sps:$4 sm:$0xff]  }
  0xb7   :  { %5178 = vmatpush2.bf16.msra.mxu0 %v7899_v10  ;;  %v7973_v10 = vld [vmem:[#allocation5 + $0xea4] ss:$24 sps:$4 sm:$0xff]  }
  0xb8   :  { %5221 = vmatpush2.bf16.msra.mxu1 %v7902_v11  ;;  %5179 = vmatprep.subr.bf16.mxu0 %v7907_v13  ;;  %v7976_v11 = vld [vmem:[#allocation5 + $0x11a4] ss:$24 sps:$4 sm:$0xff]   ;;  %v7971_v13 = vld [vmem:[#allocation5 + $0xea0] ss:$24 sps:$4 sm:$0xff]  }
  0xb9   :  { %5222 = vmatprep.subr.bf16.mxu1 %v7910_v14  ;;  %v7974_v14 = vld [vmem:[#allocation5 + $0x11a0] ss:$24 sps:$4 sm:$0xff]  }
  0xbb   :  { %5180 = vmatpush2.bf16.msra.mxu0 %v7905_v16  ;;  %v7979_v16 = vld [vmem:[#allocation5 + $0xe74] ss:$24 sps:$4 sm:$0xff]  }
  0xbc   :  { %5223 = vmatpush2.bf16.msra.mxu1 %v7908_v17  ;;  %5181 = vmatprep.subr.bf16.mxu0 %v7913_v18  ;;  %v7982_v17 = vld [vmem:[#allocation5 + $0x1174] ss:$24 sps:$4 sm:$0xff]   ;;  %v7977_v18 = vld [vmem:[#allocation5 + $0xe70] ss:$24 sps:$4 sm:$0xff]  }
  0xbd   :  { %5224 = vmatprep.subr.bf16.mxu1 %v7916_v19  ;;  %v7980_v19 = vld [vmem:[#allocation5 + $0x1170] ss:$24 sps:$4 sm:$0xff]  }
  0xbf   :  { %5182 = vmatpush2.bf16.msra.mxu0 %v7911_v20  ;;  %v7985_v20 = vld [vmem:[#allocation5 + $0xe44] ss:$24 sps:$4 sm:$0xff]  }
  0xc0   :  { %5225 = vmatpush2.bf16.msra.mxu1 %v7914_v21  ;;  %5237 = vmatprep.subr.bf16.mxu0 %v7919_v24  ;;  %v7988_v21 = vld [vmem:[#allocation5 + $0x1144] ss:$24 sps:$4 sm:$0xff]   ;;  %v7991_v24 = vld [vmem:[#allocation5 + $0xe14] ss:$24 sps:$4 sm:$0xff]  }
  0xc1   :  { %5280 = vmatprep.subr.bf16.mxu1 %v7922_v27  ;;  %v7992_v27 = vld [vmem:[#allocation5 + $0x1110] ss:$24 sps:$4 sm:$0xff]  }
  0xc2   :  { %5184 = vmatmul.mubr.bf16.vlgmr.msra.gmra.mxu0 %v9203_v28 }
  0xc3   :  { %5227 = vmatmul.mubr.bf16.vlgmr.msra.gmra.mxu1 %v9205_v31  ;;  %5238 = vmatpush1.bf16.msra.mxu0 %v7917_v29  ;;  %v7997_v29 = vld [vmem:[#allocation5 + $0xde4] ss:$24 sps:$4 sm:$0xff]  }
  0xc4   :  { %5281 = vmatpush1.bf16.msra.mxu1 %v7920_v30  ;;  %5239 = vmatprep.subr.bf16.mxu0 %v7925_v32  ;;  %v8000_v30 = vld [vmem:[#allocation5 + $0x10e4] ss:$24 sps:$4 sm:$0xff]   ;;  %v7995_v32 = vld [vmem:[#allocation5 + $0xde0] ss:$24 sps:$4 sm:$0xff]  }
  0xc5   :  { %5282 = vmatprep.subr.bf16.mxu1 %v7928_v33  ;;  %5269 = vmatprep.mubr.bf16.mxu0 %v9209_v40  ;;  %v7998_v33 = vld [vmem:[#allocation5 + $0x10e0] ss:$24 sps:$4 sm:$0xff]  }
  0xc6   :  { %5312 = vmatprep.mubr.bf16.mxu1 %v9211_v46 }
  0xc7   :  { %5240 = vmatpush1.bf16.msra.mxu0 %v7923_v34  ;;  %v8003_v34 = vld [vmem:[#allocation5 + $0xdb4] ss:$24 sps:$4 sm:$0xff]  }
  0xc8   :  { %5283 = vmatpush1.bf16.msra.mxu1 %v7926_v35  ;;  %5241 = vmatprep.subr.bf16.mxu0 %v7931_v36  ;;  %v8006_v35 = vld [vmem:[#allocation5 + $0x10b4] ss:$24 sps:$4 sm:$0xff]   ;;  %v8001_v36 = vld [vmem:[#allocation5 + $0xdb0] ss:$24 sps:$4 sm:$0xff]  }
  0xc9   :  { %5284 = vmatprep.subr.bf16.mxu1 %v7934_v37  ;;  %v8004_v37 = vld [vmem:[#allocation5 + $0x10b0] ss:$24 sps:$4 sm:$0xff]  }
  0xcb   :  { %5242 = vmatpush1.bf16.msra.mxu0 %v7929_v43  ;;  %v94_v43 = vld [vmem:[#allocation2 + $0x40] sm:$0xff] }
  0xcc   :  { %5285 = vmatpush1.bf16.msra.mxu1 %v7932_v45  ;;  %5243 = vmatprep.subr.bf16.mxu0 %v7937_v48  ;;  %v111_v45 = vld [vmem:[#allocation2 + $0xc8] sm:$0xff]  ;;  %v8015_v48 = vld [vmem:[#allocation5 + $0x1354] ss:$24 sps:$4 sm:$0xff]  }
  0xcd   :  { %5286 = vmatprep.subr.bf16.mxu1 %v7940_v49  ;;  %v96_v49 = vld [vmem:[#allocation2 + $0x50] sm:$0xff] }
  0xcf   :  { %5244 = vmatpush1.bf16.msra.mxu0 %v7935_v51  ;;  %v113_v51 = vld [vmem:[#allocation2 + $0xd8] sm:$0xff] }
  0xd0   :  { %5287 = vmatpush1.bf16.msra.mxu1 %v7938_v52  ;;  %5245 = vmatprep.subr.bf16.mxu0 %v7943_v53  ;;  %v8018_v52 = vld [vmem:[#allocation5 + $0x1654] ss:$24 sps:$4 sm:$0xff]   ;;  %v99_v53 = vld [vmem:[#allocation2 + $0x68] sm:$0xff] }
  0xd1   :  { %5288 = vmatprep.subr.bf16.mxu1 %v7946_v54  ;;  %v8013_v54 = vld [vmem:[#allocation5 + $0x1350] ss:$24 sps:$4 sm:$0xff]  }
  0xd3   :  { %5246 = vmatpush1.bf16.msra.mxu0 %v7941_v56  ;;  %v116_v56 = vld [vmem:[#allocation2 + $0xf0] sm:$0xff] }
  0xd4   :  { %5289 = vmatpush1.bf16.msra.mxu1 %v7944_v57  ;;  %5247 = vmatprep.subr.bf16.mxu0 %v7949_v58  ;;  %v101_v57 = vld [vmem:[#allocation2 + $0x78] sm:$0xff]  ;;  %v9215_v58 = vpack.c.bf16 %v111_v45, %v94_v43 }
  0xd5   :  { %5290 = vmatprep.subr.bf16.mxu1 %v7952_v59  ;;  %v9217_v59 = vpack.c.bf16 %v113_v51, %v96_v49  ;;  %v8073_v43 = vld [vmem:[#allocation5 + $0x1470] ss:$24 sps:$4 sm:$0xff]   ;;  %v8084_v49 = vld [vmem:[#allocation5 + $0x1744] ss:$24 sps:$4 sm:$0xff]   ;;  %v8079_v51 = vld [vmem:[#allocation5 + $0x1440] ss:$24 sps:$4 sm:$0xff]  }
  0xd6   :  { %v8076_v45 = vld [vmem:[#allocation5 + $0x1770] ss:$24 sps:$4 sm:$0xff]  }
  0xd7   :  { %5248 = vmatpush1.bf16.msra.mxu0 %v7947_v60  ;;  %v118_v60 = vld [vmem:[#allocation2 + $0x100] sm:$0xff] }
  0xd8   :  { %5291 = vmatpush1.bf16.msra.mxu1 %v7950_v61  ;;  %5249 = vmatprep.subr.bf16.mxu0 %v7955_v62  ;;  %v8016_v61 = vld [vmem:[#allocation5 + $0x1650] ss:$24 sps:$4 sm:$0xff]   ;;  %v8021_v62 = vld [vmem:[#allocation5 + $0x1324] ss:$24 sps:$4 sm:$0xff]  }
  0xd9   :  { %5292 = vmatprep.subr.bf16.mxu1 %v7958_v63  ;;  %v8024_v63 = vld [vmem:[#allocation5 + $0x1624] ss:$24 sps:$4 sm:$0xff]  }
  0xdb   :  { %5250 = vmatpush1.bf16.msra.mxu0 %v7953_v0  ;;  %v9219_v0 = vpack.c.bf16 %v116_v56, %v99_v53  ;;  %v8087_v53 = vld [vmem:[#allocation5 + $0x1414] ss:$24 sps:$4 sm:$0xff]   ;;  %v8085_v56 = vld [vmem:[#allocation5 + $0x1410] ss:$24 sps:$4 sm:$0xff]  }
  0xdc   :  { %5293 = vmatpush1.bf16.msra.mxu1 %v7956_v1  ;;  %5251 = vmatprep.subr.bf16.mxu0 %v7961_v2  ;;  %v9221_v1 = vpack.c.bf16 %v118_v60, %v101_v57  ;;  %v8019_v2 = vld [vmem:[#allocation5 + $0x1320] ss:$24 sps:$4 sm:$0xff]   ;;  %v8088_v57 = vld [vmem:[#allocation5 + $0x1710] ss:$24 sps:$4 sm:$0xff]   ;;  %v8093_v60 = vld [vmem:[#allocation5 + $0x13e4] ss:$24 sps:$4 sm:$0xff]  }
  0xdd   :  { %5294 = vmatprep.subr.bf16.mxu1 %v7964_v3  ;;  %v8022_v3 = vld [vmem:[#allocation5 + $0x1620] ss:$24 sps:$4 sm:$0xff]  }
  0xdf   :  { %5252 = vmatpush1.bf16.msra.mxu0 %v7959_v4  ;;  %v8027_v4 = vld [vmem:[#allocation5 + $0x12f4] ss:$24 sps:$4 sm:$0xff]  }
  0xe0   :  { %5295 = vmatpush1.bf16.msra.mxu1 %v7962_v5  ;;  %5253 = vmatprep.subr.bf16.mxu0 %v7967_v6  ;;  %v8030_v5 = vld [vmem:[#allocation5 + $0x15f4] ss:$24 sps:$4 sm:$0xff]   ;;  %v8025_v6 = vld [vmem:[#allocation5 + $0x12f0] ss:$24 sps:$4 sm:$0xff]  }
  0xe1   :  { %5296 = vmatprep.subr.bf16.mxu1 %v7970_v7  ;;  %v8028_v7 = vld [vmem:[#allocation5 + $0x15f0] ss:$24 sps:$4 sm:$0xff]  }
  0xe3   :  { %5254 = vmatpush2.bf16.msra.mxu0 %v7965_v8  ;;  %v8033_v8 = vld [vmem:[#allocation5 + $0x12c4] ss:$24 sps:$4 sm:$0xff]  }
  0xe4   :  { %5297 = vmatpush2.bf16.msra.mxu1 %v7968_v9  ;;  %5255 = vmatprep.subr.bf16.mxu0 %v7973_v10  ;;  %v8036_v9 = vld [vmem:[#allocation5 + $0x15c4] ss:$24 sps:$4 sm:$0xff]   ;;  %v8031_v10 = vld [vmem:[#allocation5 + $0x12c0] ss:$24 sps:$4 sm:$0xff]  }
  0xe5   :  { %5298 = vmatprep.subr.bf16.mxu1 %v7976_v11  ;;  %v8034_v11 = vld [vmem:[#allocation5 + $0x15c0] ss:$24 sps:$4 sm:$0xff]  }
  0xe7   :  { %5256 = vmatpush2.bf16.msra.mxu0 %v7971_v13  ;;  %v8039_v13 = vld [vmem:[#allocation5 + $0x1294] ss:$24 sps:$4 sm:$0xff]  }
  0xe8   :  { %5299 = vmatpush2.bf16.msra.mxu1 %v7974_v14  ;;  %5257 = vmatprep.subr.bf16.mxu0 %v7979_v16  ;;  %v8042_v14 = vld [vmem:[#allocation5 + $0x1594] ss:$24 sps:$4 sm:$0xff]   ;;  %v8037_v16 = vld [vmem:[#allocation5 + $0x1290] ss:$24 sps:$4 sm:$0xff]  }
  0xe9   :  { %5300 = vmatprep.subr.bf16.mxu1 %v7982_v17  ;;  %v8040_v17 = vld [vmem:[#allocation5 + $0x1590] ss:$24 sps:$4 sm:$0xff]  }
  0xeb   :  { %5258 = vmatpush2.bf16.msra.mxu0 %v7977_v18  ;;  %v8045_v18 = vld [vmem:[#allocation5 + $0x1264] ss:$24 sps:$4 sm:$0xff]  }
  0xec   :  { %5301 = vmatpush2.bf16.msra.mxu1 %v7980_v19  ;;  %5259 = vmatprep.subr.bf16.mxu0 %v7985_v20  ;;  %v8048_v19 = vld [vmem:[#allocation5 + $0x1564] ss:$24 sps:$4 sm:$0xff]   ;;  %v8043_v20 = vld [vmem:[#allocation5 + $0x1260] ss:$24 sps:$4 sm:$0xff]  }
  0xed   :  { %5302 = vmatprep.subr.bf16.mxu1 %v7988_v21  ;;  %v8046_v21 = vld [vmem:[#allocation5 + $0x1560] ss:$24 sps:$4 sm:$0xff]  }
  0xef   :  { %5260 = vmatpush2.bf16.msra.mxu0 %v7983_v22  ;;  %v8051_v22 = vld [vmem:[#allocation5 + $0x1234] ss:$24 sps:$4 sm:$0xff]  }
  0xf0   :  { %5303 = vmatpush2.bf16.msra.mxu1 %v7986_v23  ;;  %5261 = vmatprep.subr.bf16.mxu0 %v7991_v24  ;;  %v8054_v23 = vld [vmem:[#allocation5 + $0x1534] ss:$24 sps:$4 sm:$0xff]   ;;  %v8049_v24 = vld [vmem:[#allocation5 + $0x1230] ss:$24 sps:$4 sm:$0xff]  }
  0xf1   :  { %5304 = vmatprep.subr.bf16.mxu1 %v7994_v25  ;;  %v8052_v25 = vld [vmem:[#allocation5 + $0x1530] ss:$24 sps:$4 sm:$0xff]  }
  0xf3   :  { %5262 = vmatpush2.bf16.msra.mxu0 %v7989_v26  ;;  %v8057_v26 = vld [vmem:[#allocation5 + $0x1204] ss:$24 sps:$4 sm:$0xff]  }
  0xf4   :  { %5305 = vmatpush2.bf16.msra.mxu1 %v7992_v27  ;;  %5263 = vmatprep.subr.bf16.mxu0 %v7997_v29  ;;  %v8060_v27 = vld [vmem:[#allocation5 + $0x1504] ss:$24 sps:$4 sm:$0xff]   ;;  %v8055_v29 = vld [vmem:[#allocation5 + $0x1200] ss:$24 sps:$4 sm:$0xff]  }
  0xf5   :  { %5306 = vmatprep.subr.bf16.mxu1 %v8000_v30  ;;  %v8058_v30 = vld [vmem:[#allocation5 + $0x1500] ss:$24 sps:$4 sm:$0xff]  }
  0xf7   :  { %5264 = vmatpush2.bf16.msra.mxu0 %v7995_v32  ;;  %v8063_v32 = vld [vmem:[#allocation5 + $0x14d4] ss:$24 sps:$4 sm:$0xff]  }
  0xf8   :  { %5307 = vmatpush2.bf16.msra.mxu1 %v7998_v33  ;;  %5265 = vmatprep.subr.bf16.mxu0 %v8003_v34  ;;  %v8066_v33 = vld [vmem:[#allocation5 + $0x17d4] ss:$24 sps:$4 sm:$0xff]   ;;  %v8061_v34 = vld [vmem:[#allocation5 + $0x14d0] ss:$24 sps:$4 sm:$0xff]  }
  0xf9   :  { %5308 = vmatprep.subr.bf16.mxu1 %v8006_v35  ;;  %v8064_v35 = vld [vmem:[#allocation5 + $0x17d0] ss:$24 sps:$4 sm:$0xff]  }
  0xfb   :  { %5266 = vmatpush2.bf16.msra.mxu0 %v8001_v36  ;;  %v8069_v36 = vld [vmem:[#allocation5 + $0x14a4] ss:$24 sps:$4 sm:$0xff]  }
  0xfc   :  { %5309 = vmatpush2.bf16.msra.mxu1 %v8004_v37  ;;  %5267 = vmatprep.subr.bf16.mxu0 %v8009_v38  ;;  %v8072_v37 = vld [vmem:[#allocation5 + $0x17a4] ss:$24 sps:$4 sm:$0xff]   ;;  %v8067_v38 = vld [vmem:[#allocation5 + $0x14a0] ss:$24 sps:$4 sm:$0xff]  }
  0xfd   :  { %5310 = vmatprep.subr.bf16.mxu1 %v8012_v39  ;;  %v8070_v39 = vld [vmem:[#allocation5 + $0x17a0] ss:$24 sps:$4 sm:$0xff]  }
  0xff   :  { %5268 = vmatpush2.bf16.msra.mxu0 %v8007_v41  ;;  %v8075_v41 = vld [vmem:[#allocation5 + $0x1474] ss:$24 sps:$4 sm:$0xff]  }
 0x100   :  { %5311 = vmatpush2.bf16.msra.mxu1 %v8010_v42  ;;  %5323 = vmatprep.subr.bf16.mxu0 %v8015_v48  ;;  %v8078_v42 = vld [vmem:[#allocation5 + $0x1774] ss:$24 sps:$4 sm:$0xff]   ;;  %v8081_v48 = vld [vmem:[#allocation5 + $0x1444] ss:$24 sps:$4 sm:$0xff]  }
 0x101   :  { %5366 = vmatprep.subr.bf16.mxu1 %v8018_v52  ;;  %v8082_v52 = vld [vmem:[#allocation5 + $0x1740] ss:$24 sps:$4 sm:$0xff]  }
 0x102   :  { %5270 = vmatmul.mubr.bf16.vlgmr.msra.gmra.mxu0 %v9215_v58 }
 0x103   :  { %5313 = vmatmul.mubr.bf16.vlgmr.msra.gmra.mxu1 %v9217_v59  ;;  %5324 = vmatpush1.bf16.msra.mxu0 %v8013_v54  ;;  %v8090_v54 = vld [vmem:[#allocation5 + $0x1714] ss:$24 sps:$4 sm:$0xff]  }
 0x104   :  { %5367 = vmatpush1.bf16.msra.mxu1 %v8016_v61  ;;  %5325 = vmatprep.subr.bf16.mxu0 %v8021_v62  ;;  %v8096_v61 = vld [vmem:[#allocation5 + $0x16e4] ss:$24 sps:$4 sm:$0xff]   ;;  %v8091_v62 = vld [vmem:[#allocation5 + $0x13e0] ss:$24 sps:$4 sm:$0xff]  }
 0x105   :  { %5368 = vmatprep.subr.bf16.mxu1 %v8024_v63  ;;  %5355 = vmatprep.mubr.bf16.mxu0 %v9219_v0  ;;  %v8094_v63 = vld [vmem:[#allocation5 + $0x16e0] ss:$24 sps:$4 sm:$0xff]  }
 0x106   :  { %5398 = vmatprep.mubr.bf16.mxu1 %v9221_v1 }
 0x107   :  { %5326 = vmatpush1.bf16.msra.mxu0 %v8019_v2  ;;  %v8099_v2 = vld [vmem:[#allocation5 + $0x13b4] ss:$24 sps:$4 sm:$0xff]  }
 0x108   :  { %5369 = vmatpush1.bf16.msra.mxu1 %v8022_v3  ;;  %5327 = vmatprep.subr.bf16.mxu0 %v8027_v4  ;;  %v8102_v3 = vld [vmem:[#allocation5 + $0x16b4] ss:$24 sps:$4 sm:$0xff]   ;;  %v8097_v4 = vld [vmem:[#allocation5 + $0x13b0] ss:$24 sps:$4 sm:$0xff]  }
 0x109   :  { %5370 = vmatprep.subr.bf16.mxu1 %v8030_v5  ;;  %v8100_v5 = vld [vmem:[#allocation5 + $0x16b0] ss:$24 sps:$4 sm:$0xff]  }
 0x10b   :  { %5328 = vmatpush1.bf16.msra.mxu0 %v8025_v6  ;;  %v8105_v6 = vld [vmem:[#allocation5 + $0x1384] ss:$24 sps:$4 sm:$0xff]  }
 0x10c   :  { %5371 = vmatpush1.bf16.msra.mxu1 %v8028_v7  ;;  %5329 = vmatprep.subr.bf16.mxu0 %v8033_v8  ;;  %v8108_v7 = vld [vmem:[#allocation5 + $0x1684] ss:$24 sps:$4 sm:$0xff]   ;;  %v8103_v8 = vld [vmem:[#allocation5 + $0x1380] ss:$24 sps:$4 sm:$0xff]  }
 0x10d   :  { %5372 = vmatprep.subr.bf16.mxu1 %v8036_v9  ;;  %v8106_v9 = vld [vmem:[#allocation5 + $0x1680] ss:$24 sps:$4 sm:$0xff]  }
 0x10f   :  { %5330 = vmatpush1.bf16.msra.mxu0 %v8031_v10  ;;  %v98_v10 = vld [vmem:[#allocation2 + $0x60] sm:$0xff] }
 0x110   :  { %5373 = vmatpush1.bf16.msra.mxu1 %v8034_v11  ;;  %5331 = vmatprep.subr.bf16.mxu0 %v8039_v13  ;;  %v115_v11 = vld [vmem:[#allocation2 + $0xe8] sm:$0xff]  ;;  %v8111_v13 = vld [vmem:[#allocation5 + $0x1954] ss:$24 sps:$4 sm:$0xff]  }
 0x111   :  { %5374 = vmatprep.subr.bf16.mxu1 %v8042_v14  ;;  %v100_v14 = vld [vmem:[#allocation2 + $0x70] sm:$0xff] }
 0x113   :  { %5332 = vmatpush1.bf16.msra.mxu0 %v8037_v16  ;;  %v117_v16 = vld [vmem:[#allocation2 + $0xf8] sm:$0xff] }
 0x114   :  { %5375 = vmatpush1.bf16.msra.mxu1 %v8040_v17  ;;  %5333 = vmatprep.subr.bf16.mxu0 %v8045_v18  ;;  %v8114_v17 = vld [vmem:[#allocation5 + $0x15c] ss:$24 sps:$4 sm:$0xff]   ;;  %v9227_v18 = vpack.c.bf16 %v115_v11, %v98_v10 }
 0x115   :  { %5376 = vmatprep.subr.bf16.mxu1 %v8048_v19  ;;  %v8109_v19 = vld [vmem:[#allocation5 + $0x1950] ss:$24 sps:$4 sm:$0xff]   ;;  %v8171_v10 = vld [vmem:[#allocation5 + $0x27c] ss:$24 sps:$4 sm:$0xff]  }
 0x116   :  { %v8174_v11 = vld [vmem:[#allocation5 + $0x3fc] ss:$24 sps:$4 sm:$0xff]  }
 0x117   :  { %5334 = vmatpush1.bf16.msra.mxu0 %v8043_v20  ;;  %v9229_v20 = vpack.c.bf16 %v117_v16, %v100_v14  ;;  %v8172_v14 = vld [vmem:[#allocation5 + $0x3f8] ss:$24 sps:$4 sm:$0xff]   ;;  %v8177_v16 = vld [vmem:[#allocation5 + $0x24c] ss:$24 sps:$4 sm:$0xff]  }
 0x118   :  { %5377 = vmatpush1.bf16.msra.mxu1 %v8046_v21  ;;  %5335 = vmatprep.subr.bf16.mxu0 %v8051_v22  ;;  %v8112_v21 = vld [vmem:[#allocation5 + $0x158] ss:$24 sps:$4 sm:$0xff]   ;;  %v8117_v22 = vld [vmem:[#allocation5 + $0x1924] ss:$24 sps:$4 sm:$0xff]  }
 0x119   :  { %5378 = vmatprep.subr.bf16.mxu1 %v8054_v23  ;;  %v8120_v23 = vld [vmem:[#allocation5 + $0x12c] ss:$24 sps:$4 sm:$0xff]  }
 0x11b   :  { %5336 = vmatpush1.bf16.msra.mxu0 %v8049_v24  ;;  %v8115_v24 = vld [vmem:[#allocation5 + $0x1920] ss:$24 sps:$4 sm:$0xff]  }
 0x11c   :  { %5379 = vmatpush1.bf16.msra.mxu1 %v8052_v25  ;;  %5337 = vmatprep.subr.bf16.mxu0 %v8057_v26  ;;  %v8118_v25 = vld [vmem:[#allocation5 + $0x128] ss:$24 sps:$4 sm:$0xff]   ;;  %v8123_v26 = vld [vmem:[#allocation5 + $0x18f4] ss:$24 sps:$4 sm:$0xff]  }
 0x11d   :  { %5380 = vmatprep.subr.bf16.mxu1 %v8060_v27  ;;  %v8126_v27 = vld [vmem:[#allocation5 + $0xfc] ss:$24 sps:$4 sm:$0xff]  }
 0x11f   :  { %5338 = vmatpush1.bf16.msra.mxu0 %v8055_v29  ;;  %v9496_v29 = vmov 0  }
 0x120   :  { %5381 = vmatpush1.bf16.msra.mxu1 %v8058_v30  ;;  %5339 = vmatprep.subr.bf16.mxu0 %v8063_v32  ;;  %v8121_v30 = vld [vmem:[#allocation5 + $0x18f0] ss:$24 sps:$4 sm:$0xff]  }
 0x121   :  { %5382 = vmatprep.subr.bf16.mxu1 %v8066_v33  ;;  %v8124_v32 = vld [vmem:[#allocation5 + $0xf8] ss:$24 sps:$4 sm:$0xff]   ;;  %v8129_v33 = vld [vmem:[#allocation5 + $0x18c4] ss:$24 sps:$4 sm:$0xff]  }
 0x123   :  { %5340 = vmatpush2.bf16.msra.mxu0 %v8061_v34  ;;  %v8132_v34 = vld [vmem:[#allocation5 + $0xcc] ss:$24 sps:$4 sm:$0xff]  }
 0x124   :  { %5383 = vmatpush2.bf16.msra.mxu1 %v8064_v35  ;;  %5341 = vmatprep.subr.bf16.mxu0 %v8069_v36  ;;  %v8127_v35 = vld [vmem:[#allocation5 + $0x18c0] ss:$24 sps:$4 sm:$0xff]  }
 0x125   :  { %5384 = vmatprep.subr.bf16.mxu1 %v8072_v37  ;;  %v8130_v36 = vld [vmem:[#allocation5 + $0xc8] ss:$24 sps:$4 sm:$0xff]   ;;  %v8135_v37 = vld [vmem:[#allocation5 + $0x1894] ss:$24 sps:$4 sm:$0xff]  }
 0x127   :  { %5342 = vmatpush2.bf16.msra.mxu0 %v8067_v38  ;;  %v8138_v38 = vld [vmem:[#allocation5 + $0x9c] ss:$24 sps:$4 sm:$0xff]  }
 0x128   :  { %5385 = vmatpush2.bf16.msra.mxu1 %v8070_v39  ;;  %5343 = vmatprep.subr.bf16.mxu0 %v8075_v41  ;;  %v8133_v39 = vld [vmem:[#allocation5 + $0x1890] ss:$24 sps:$4 sm:$0xff]  }
 0x129   :  { %5386 = vmatprep.subr.bf16.mxu1 %v8078_v42  ;;  %v8136_v41 = vld [vmem:[#allocation5 + $0x98] ss:$24 sps:$4 sm:$0xff]   ;;  %v8141_v42 = vld [vmem:[#allocation5 + $0x1864] ss:$24 sps:$4 sm:$0xff]  }
 0x12b   :  { %5344 = vmatpush2.bf16.msra.mxu0 %v8073_v43  ;;  %v8144_v43 = vld [vmem:[#allocation5 + $0x6c] ss:$24 sps:$4 sm:$0xff]  }
 0x12c   :  { %5387 = vmatpush2.bf16.msra.mxu1 %v8076_v45  ;;  %5345 = vmatprep.subr.bf16.mxu0 %v8081_v48  ;;  %v8139_v45 = vld [vmem:[#allocation5 + $0x1860] ss:$24 sps:$4 sm:$0xff]  }
 0x12d   :  { %5388 = vmatprep.subr.bf16.mxu1 %v8084_v49  ;;  %v8142_v48 = vld [vmem:[#allocation5 + $0x68] ss:$24 sps:$4 sm:$0xff]   ;;  %v8147_v49 = vld [vmem:[#allocation5 + $0x1834] ss:$24 sps:$4 sm:$0xff]  }
 0x12f   :  { %5346 = vmatpush2.bf16.msra.mxu0 %v8079_v51  ;;  %v8150_v51 = vld [vmem:[#allocation5 + $0x3c] ss:$24 sps:$4 sm:$0xff]  }
 0x130   :  { %5389 = vmatpush2.bf16.msra.mxu1 %v8082_v52  ;;  %5347 = vmatprep.subr.bf16.mxu0 %v8087_v53  ;;  %v8145_v52 = vld [vmem:[#allocation5 + $0x1830] ss:$24 sps:$4 sm:$0xff]  }
 0x131   :  { %5390 = vmatprep.subr.bf16.mxu1 %v8090_v54  ;;  %v8148_v53 = vld [vmem:[#allocation5 + $0x38] ss:$24 sps:$4 sm:$0xff]   ;;  %v8153_v54 = vld [vmem:[#allocation5 + $0x1804] ss:$24 sps:$4 sm:$0xff]  }
 0x133   :  { %5348 = vmatpush2.bf16.msra.mxu0 %v8085_v56  ;;  %v8156_v56 = vld [vmem:[#allocation5 + $0xc] ss:$24 sps:$4 sm:$0xff]  }
 0x134   :  { %5391 = vmatpush2.bf16.msra.mxu1 %v8088_v57  ;;  %5349 = vmatprep.subr.bf16.mxu0 %v8093_v60  ;;  %v8151_v57 = vld [vmem:[#allocation5 + $0x1800] ss:$24 sps:$4 sm:$0xff]  }
 0x135   :  { %5392 = vmatprep.subr.bf16.mxu1 %v8096_v61  ;;  %v8154_v60 = vld [vmem:[#allocation5 + $0x8] ss:$24 sps:$4 sm:$0xff]   ;;  %v102_v61 = vld [vmem:[#allocation2 + $0x80] sm:$0xff] }
 0x137   :  { %5350 = vmatpush2.bf16.msra.mxu0 %v8091_v62  ;;  %v119_v62 = vld [vmem:[#allocation2 + $0x108] sm:$0xff] }
 0x138   :  { %5393 = vmatpush2.bf16.msra.mxu1 %v8094_v63  ;;  %5351 = vmatprep.subr.bf16.mxu0 %v8099_v2  ;;  %v8159_v63 = vld [vmem:[#allocation5 + $0x2dc] ss:$24 sps:$4 sm:$0xff]  }
 0x139   :  { %5394 = vmatprep.subr.bf16.mxu1 %v8102_v3  ;;  %v8162_v2 = vld [vmem:[#allocation5 + $0x45c] ss:$24 sps:$4 sm:$0xff]   ;;  %v9235_v3 = vpack.c.bf16 %v119_v62, %v102_v61  ;;  %v8225_v61 = vld [vmem:[#allocation5 + $0x54c] ss:$24 sps:$4 sm:$0xff]  }
 0x13a   :  { %v8228_v62 = vld [vmem:[#allocation5 + $0x6cc] ss:$24 sps:$4 sm:$0xff]  }
 0x13b   :  { %5352 = vmatpush2.bf16.msra.mxu0 %v8097_v4  ;;  %v8157_v4 = vld [vmem:[#allocation5 + $0x2d8] ss:$24 sps:$4 sm:$0xff]  }
 0x13c   :  { %5395 = vmatpush2.bf16.msra.mxu1 %v8100_v5  ;;  %5353 = vmatprep.subr.bf16.mxu0 %v8105_v6  ;;  %v8160_v5 = vld [vmem:[#allocation5 + $0x458] ss:$24 sps:$4 sm:$0xff]   ;;  %v8165_v6 = vld [vmem:[#allocation5 + $0x2ac] ss:$24 sps:$4 sm:$0xff]  }
 0x13d   :  { %5396 = vmatprep.subr.bf16.mxu1 %v8108_v7  ;;  %v8168_v7 = vld [vmem:[#allocation5 + $0x42c] ss:$24 sps:$4 sm:$0xff]  }
 0x13f   :  { %5354 = vmatpush2.bf16.msra.mxu0 %v8103_v8  ;;  %v8163_v8 = vld [vmem:[#allocation5 + $0x2a8] ss:$24 sps:$4 sm:$0xff]  }
 0x140   :  { %5397 = vmatpush2.bf16.msra.mxu1 %v8106_v9  ;;  %5409 = vmatprep.subr.bf16.mxu0 %v8111_v13  ;;  %v8166_v9 = vld [vmem:[#allocation5 + $0x428] ss:$24 sps:$4 sm:$0xff]   ;;  %v8169_v13 = vld [vmem:[#allocation5 + $0x278] ss:$24 sps:$4 sm:$0xff]  }
 0x141   :  { %5452 = vmatprep.subr.bf16.mxu1 %v8114_v17  ;;  %v8180_v17 = vld [vmem:[#allocation5 + $0x3cc] ss:$24 sps:$4 sm:$0xff]  }
 0x142   :  { %5356 = vmatmul.mubr.bf16.vlgmr.msra.gmra.mxu0 %v9227_v18 }
 0x143   :  { %5399 = vmatmul.mubr.bf16.vlgmr.msra.gmra.mxu1 %v9229_v20  ;;  %5410 = vmatpush1.bf16.msra.mxu0 %v8109_v19  ;;  %v8175_v19 = vld [vmem:[#allocation5 + $0x248] ss:$24 sps:$4 sm:$0xff]  }
 0x144   :  { %5453 = vmatpush1.bf16.msra.mxu1 %v8112_v21  ;;  %5411 = vmatprep.subr.bf16.mxu0 %v8117_v22  ;;  %v8178_v21 = vld [vmem:[#allocation5 + $0x3c8] ss:$24 sps:$4 sm:$0xff]   ;;  %v8183_v22 = vld [vmem:[#allocation5 + $0x21c] ss:$24 sps:$4 sm:$0xff]  }
 0x145   :  { %5454 = vmatprep.subr.bf16.mxu1 %v8120_v23  ;;  %5441 = vmatprep.mubr.bf16.mxu0 %v9496_v29  ;;  %v8186_v23 = vld [vmem:[#allocation5 + $0x39c] ss:$24 sps:$4 sm:$0xff]  }
 0x146   :  { %5484 = vmatprep.mubr.bf16.mxu1 %v9185_v50 }
 0x147   :  { %5412 = vmatpush1.bf16.msra.mxu0 %v8115_v24  ;;  %v8181_v24 = vld [vmem:[#allocation5 + $0x218] ss:$24 sps:$4 sm:$0xff]  }
 0x148   :  { %5455 = vmatpush1.bf16.msra.mxu1 %v8118_v25  ;;  %5413 = vmatprep.subr.bf16.mxu0 %v8123_v26  ;;  %v8184_v25 = vld [vmem:[#allocation5 + $0x398] ss:$24 sps:$4 sm:$0xff]   ;;  %v8189_v26 = vld [vmem:[#allocation5 + $0x1ec] ss:$24 sps:$4 sm:$0xff]  }
 0x149   :  { %5456 = vmatprep.subr.bf16.mxu1 %v8126_v27  ;;  %v8192_v27 = vld [vmem:[#allocation5 + $0x36c] ss:$24 sps:$4 sm:$0xff]  }
 0x14b   :  { %5414 = vmatpush1.bf16.msra.mxu0 %v8121_v30  ;;  %v8187_v30 = vld [vmem:[#allocation5 + $0x1e8] ss:$24 sps:$4 sm:$0xff]  }
 0x14c   :  { %5457 = vmatpush1.bf16.msra.mxu1 %v8124_v32  ;;  %5415 = vmatprep.subr.bf16.mxu0 %v8129_v33  ;;  %v8190_v32 = vld [vmem:[#allocation5 + $0x368] ss:$24 sps:$4 sm:$0xff]   ;;  %v8195_v33 = vld [vmem:[#allocation5 + $0x1bc] ss:$24 sps:$4 sm:$0xff]  }
 0x14d   :  { %5458 = vmatprep.subr.bf16.mxu1 %v8132_v34  ;;  %v8198_v34 = vld [vmem:[#allocation5 + $0x33c] ss:$24 sps:$4 sm:$0xff]  }
 0x14f   :  { %5416 = vmatpush1.bf16.msra.mxu0 %v8127_v35  ;;  %v8193_v35 = vld [vmem:[#allocation5 + $0x1b8] ss:$24 sps:$4 sm:$0xff]  }
 0x150   :  { %5459 = vmatpush1.bf16.msra.mxu1 %v8130_v36  ;;  %5417 = vmatprep.subr.bf16.mxu0 %v8135_v37  ;;  %v8196_v36 = vld [vmem:[#allocation5 + $0x338] ss:$24 sps:$4 sm:$0xff]   ;;  %v8201_v37 = vld [vmem:[#allocation5 + $0x18c] ss:$24 sps:$4 sm:$0xff]  }
 0x151   :  { %5460 = vmatprep.subr.bf16.mxu1 %v8138_v38  ;;  %v8204_v38 = vld [vmem:[#allocation5 + $0x30c] ss:$24 sps:$4 sm:$0xff]  }
 0x153   :  { %5418 = vmatpush1.bf16.msra.mxu0 %v8133_v39  ;;  %v8199_v39 = vld [vmem:[#allocation5 + $0x188] ss:$24 sps:$4 sm:$0xff]  }
 0x154   :  { %5461 = vmatpush1.bf16.msra.mxu1 %v8136_v41  ;;  %5419 = vmatprep.subr.bf16.mxu0 %v8141_v42  ;;  %v8202_v41 = vld [vmem:[#allocation5 + $0x308] ss:$24 sps:$4 sm:$0xff]   ;;  %v8207_v42 = vld [vmem:[#allocation5 + $0x5dc] ss:$24 sps:$4 sm:$0xff]  }
 0x155   :  { %5462 = vmatprep.subr.bf16.mxu1 %v8144_v43  ;;  %v8210_v43 = vld [vmem:[#allocation5 + $0x75c] ss:$24 sps:$4 sm:$0xff]  }
 0x157   :  { %5420 = vmatpush1.bf16.msra.mxu0 %v8139_v45  ;;  %v8205_v45 = vld [vmem:[#allocation5 + $0x5d8] ss:$24 sps:$4 sm:$0xff]  }
 0x158   :  { %5463 = vmatpush1.bf16.msra.mxu1 %v8142_v48  ;;  %5421 = vmatprep.subr.bf16.mxu0 %v8147_v49  ;;  %v8208_v48 = vld [vmem:[#allocation5 + $0x758] ss:$24 sps:$4 sm:$0xff]   ;;  %v8213_v49 = vld [vmem:[#allocation5 + $0x5ac] ss:$24 sps:$4 sm:$0xff]  }
 0x159   :  { %5464 = vmatprep.subr.bf16.mxu1 %v8150_v51  ;;  %v8216_v51 = vld [vmem:[#allocation5 + $0x72c] ss:$24 sps:$4 sm:$0xff]  }
 0x15b   :  { %5422 = vmatpush1.bf16.msra.mxu0 %v8145_v52  ;;  %v8211_v52 = vld [vmem:[#allocation5 + $0x5a8] ss:$24 sps:$4 sm:$0xff]  }
 0x15c   :  { %5465 = vmatpush1.bf16.msra.mxu1 %v8148_v53  ;;  %5423 = vmatprep.subr.bf16.mxu0 %v8153_v54  ;;  %v8214_v53 = vld [vmem:[#allocation5 + $0x728] ss:$24 sps:$4 sm:$0xff]   ;;  %v8219_v54 = vld [vmem:[#allocation5 + $0x57c] ss:$24 sps:$4 sm:$0xff]  }
 0x15d   :  { %5466 = vmatprep.subr.bf16.mxu1 %v8156_v56  ;;  %v8222_v56 = vld [vmem:[#allocation5 + $0x6fc] ss:$24 sps:$4 sm:$0xff]  }
 0x15f   :  { %5424 = vmatpush1.bf16.msra.mxu0 %v8151_v57  ;;  %v8217_v57 = vld [vmem:[#allocation5 + $0x578] ss:$24 sps:$4 sm:$0xff]  }
 0x160   :  { %5467 = vmatpush1.bf16.msra.mxu1 %v8154_v60  ;;  %5495 = vmatprep.subr.bf16.mxu0 %v8162_v2  ;;  %v8220_v60 = vld [vmem:[#allocation5 + $0x6f8] ss:$24 sps:$4 sm:$0xff]   ;;  %v8226_v2 = vld [vmem:[#allocation5 + $0x6c8] ss:$24 sps:$4 sm:$0xff]  }
 0x161   :  { %5468 = vmatprep.subr.bf16.mxu1 %v8159_v63  ;;  %v8223_v63 = vld [vmem:[#allocation5 + $0x548] ss:$24 sps:$4 sm:$0xff]  }
 0x162   :  { %5442 = vmatmul.mubr.bf16.vlgmr.msra.gmra.mxu0 %v9235_v3 }
 0x163   :  { %5496 = vmatpush1.bf16.msra.mxu0 %v8160_v5  ;;  %5527 = vmatprep.mubr.bf16.mxu0 %v9187_v55  ;;  %v8234_v5 = vld [vmem:[#allocation5 + $0x69c] ss:$24 sps:$4 sm:$0xff]  }
 0x164   :  { %5469 = vmatpush2.bf16.msra.mxu1 %v8157_v4  ;;  %5497 = vmatprep.subr.bf16.mxu0 %v8168_v7  ;;  %v8231_v4 = vld [vmem:[#allocation5 + $0x51c] ss:$24 sps:$4 sm:$0xff]   ;;  %v8232_v7 = vld [vmem:[#allocation5 + $0x698] ss:$24 sps:$4 sm:$0xff]  }
 0x165   :  { %5470 = vmatprep.subr.bf16.mxu1 %v8165_v6  ;;  %v8229_v6 = vld [vmem:[#allocation5 + $0x518] ss:$24 sps:$4 sm:$0xff]  }
 0x167   :  { %5498 = vmatpush1.bf16.msra.mxu0 %v8166_v9  ;;  %v8240_v9 = vld [vmem:[#allocation5 + $0x66c] ss:$24 sps:$4 sm:$0xff]  }
 0x168   :  { %5471 = vmatpush2.bf16.msra.mxu1 %v8163_v8  ;;  %5499 = vmatprep.subr.bf16.mxu0 %v8174_v11  ;;  %v8237_v8 = vld [vmem:[#allocation5 + $0x4ec] ss:$24 sps:$4 sm:$0xff]   ;;  %v8238_v11 = vld [vmem:[#allocation5 + $0x668] ss:$24 sps:$4 sm:$0xff]  }
 0x169   :  { %5472 = vmatprep.subr.bf16.mxu1 %v8171_v10  ;;  %v8235_v10 = vld [vmem:[#allocation5 + $0x4e8] ss:$24 sps:$4 sm:$0xff]  }
 0x16b   :  { %5500 = vmatpush1.bf16.msra.mxu0 %v8172_v14  ;;  %v8246_v14 = vld [vmem:[#allocation5 + $0x63c] ss:$24 sps:$4 sm:$0xff]  }
 0x16c   :  { %5473 = vmatpush2.bf16.msra.mxu1 %v8169_v13  ;;  %5501 = vmatprep.subr.bf16.mxu0 %v8180_v17  ;;  %v8243_v13 = vld [vmem:[#allocation5 + $0x4bc] ss:$24 sps:$4 sm:$0xff]   ;;  %v8244_v17 = vld [vmem:[#allocation5 + $0x638] ss:$24 sps:$4 sm:$0xff]  }
 0x16d   :  { %5474 = vmatprep.subr.bf16.mxu1 %v8177_v16  ;;  %v8241_v16 = vld [vmem:[#allocation5 + $0x4b8] ss:$24 sps:$4 sm:$0xff]  }
 0x16f   :  { %5502 = vmatpush1.bf16.msra.mxu0 %v8178_v21  ;;  %v8252_v21 = vld [vmem:[#allocation5 + $0x60c] ss:$24 sps:$4 sm:$0xff]  }
 0x170   :  { %5475 = vmatpush2.bf16.msra.mxu1 %v8175_v19  ;;  %5503 = vmatprep.subr.bf16.mxu0 %v8186_v23  ;;  %v8249_v19 = vld [vmem:[#allocation5 + $0x48c] ss:$24 sps:$4 sm:$0xff]   ;;  %v8250_v23 = vld [vmem:[#allocation5 + $0x608] ss:$24 sps:$4 sm:$0xff]  }
 0x171   :  { %5476 = vmatprep.subr.bf16.mxu1 %v8183_v22  ;;  %v8247_v22 = vld [vmem:[#allocation5 + $0x488] ss:$24 sps:$4 sm:$0xff]  }
 0x173   :  { %5504 = vmatpush1.bf16.msra.mxu0 %v8184_v25  ;;  %v8258_v25 = vld [vmem:[#allocation5 + $0xa5c] ss:$24 sps:$4 sm:$0xff]  }
 0x174   :  { %5477 = vmatpush2.bf16.msra.mxu1 %v8181_v24  ;;  %5505 = vmatprep.subr.bf16.mxu0 %v8192_v27  ;;  %v8255_v24 = vld [vmem:[#allocation5 + $0x8dc] ss:$24 sps:$4 sm:$0xff]   ;;  %v8256_v27 = vld [vmem:[#allocation5 + $0xa58] ss:$24 sps:$4 sm:$0xff]  }
 0x175   :  { %5478 = vmatprep.subr.bf16.mxu1 %v8189_v26  ;;  %v8253_v26 = vld [vmem:[#allocation5 + $0x8d8] ss:$24 sps:$4 sm:$0xff]  }
 0x177   :  { %5506 = vmatpush1.bf16.msra.mxu0 %v8190_v32  ;;  %v8264_v32 = vld [vmem:[#allocation5 + $0xa2c] ss:$24 sps:$4 sm:$0xff]  }
 0x178   :  { %5479 = vmatpush2.bf16.msra.mxu1 %v8187_v30  ;;  %5507 = vmatprep.subr.bf16.mxu0 %v8198_v34  ;;  %v8261_v30 = vld [vmem:[#allocation5 + $0x8ac] ss:$24 sps:$4 sm:$0xff]   ;;  %v8262_v34 = vld [vmem:[#allocation5 + $0xa28] ss:$24 sps:$4 sm:$0xff]  }
 0x179   :  { %5480 = vmatprep.subr.bf16.mxu1 %v8195_v33  ;;  %v8259_v33 = vld [vmem:[#allocation5 + $0x8a8] ss:$24 sps:$4 sm:$0xff]  }
 0x17b   :  { %5508 = vmatpush1.bf16.msra.mxu0 %v8196_v36  ;;  %v8270_v36 = vld [vmem:[#allocation5 + $0x9fc] ss:$24 sps:$4 sm:$0xff]  }
 0x17c   :  { %5481 = vmatpush2.bf16.msra.mxu1 %v8193_v35  ;;  %5509 = vmatprep.subr.bf16.mxu0 %v8204_v38  ;;  %v8267_v35 = vld [vmem:[#allocation5 + $0x87c] ss:$24 sps:$4 sm:$0xff]   ;;  %v8268_v38 = vld [vmem:[#allocation5 + $0x9f8] ss:$24 sps:$4 sm:$0xff]  }
 0x17d   :  { %5482 = vmatprep.subr.bf16.mxu1 %v8201_v37  ;;  %v8265_v37 = vld [vmem:[#allocation5 + $0x878] ss:$24 sps:$4 sm:$0xff]  }
 0x17f   :  { %5510 = vmatpush1.bf16.msra.mxu0 %v8202_v41  ;;  %v8276_v41 = vld [vmem:[#allocation5 + $0x9cc] ss:$24 sps:$4 sm:$0xff]  }
 0x180   :  { %5483 = vmatpush2.bf16.msra.mxu1 %v8199_v39  ;;  %5511 = vmatprep.subr.bf16.mxu0 %v8207_v42  ;;  %v8273_v39 = vld [vmem:[#allocation5 + $0x84c] ss:$24 sps:$4 sm:$0xff]   ;;  %v8271_v42 = vld [vmem:[#allocation5 + $0x848] ss:$24 sps:$4 sm:$0xff]  }
 0x181   :  { %5538 = vmatprep.subr.bf16.mxu1 %v8210_v43  ;;  %v8274_v43 = vld [vmem:[#allocation5 + $0x9c8] ss:$24 sps:$4 sm:$0xff]  }
 0x183   :  { %5485 = vmatmul.mubr.bf16.vlgmr.msra.gmra.mxu1 %v9191_v12  ;;  %5512 = vmatpush2.bf16.msra.mxu0 %v8205_v45  ;;  %v8279_v45 = vld [vmem:[#allocation5 + $0x81c] ss:$24 sps:$4 sm:$0xff]  }
 0x184   :  { %5539 = vmatpush1.bf16.msra.mxu1 %v8208_v48  ;;  %5513 = vmatprep.subr.bf16.mxu0 %v8213_v49  ;;  %v8282_v48 = vld [vmem:[#allocation5 + $0x99c] ss:$24 sps:$4 sm:$0xff]   ;;  %v8277_v49 = vld [vmem:[#allocation5 + $0x818] ss:$24 sps:$4 sm:$0xff]  }
 0x185   :  { %5540 = vmatprep.subr.bf16.mxu1 %v8216_v51  ;;  %5570 = vmatprep.mubr.bf16.mxu1 %v9197_v44  ;;  %v8280_v51 = vld [vmem:[#allocation5 + $0x998] ss:$24 sps:$4 sm:$0xff]  }
 0x187   :  { %5514 = vmatpush2.bf16.msra.mxu0 %v8211_v52  ;;  %v8285_v52 = vld [vmem:[#allocation5 + $0x7ec] ss:$24 sps:$4 sm:$0xff]  }
 0x188   :  { %5541 = vmatpush1.bf16.msra.mxu1 %v8214_v53  ;;  %5515 = vmatprep.subr.bf16.mxu0 %v8219_v54  ;;  %v8288_v53 = vld [vmem:[#allocation5 + $0x96c] ss:$24 sps:$4 sm:$0xff]   ;;  %v8283_v54 = vld [vmem:[#allocation5 + $0x7e8] ss:$24 sps:$4 sm:$0xff]  }
 0x189   :  { %5542 = vmatprep.subr.bf16.mxu1 %v8222_v56  ;;  %v8286_v56 = vld [vmem:[#allocation5 + $0x968] ss:$24 sps:$4 sm:$0xff]  }
 0x18b   :  { %5516 = vmatpush2.bf16.msra.mxu0 %v8217_v57  ;;  %v8291_v57 = vld [vmem:[#allocation5 + $0x7bc] ss:$24 sps:$4 sm:$0xff]  }
 0x18c   :  { %5543 = vmatpush1.bf16.msra.mxu1 %v8220_v60  ;;  %5517 = vmatprep.subr.bf16.mxu0 %v8225_v61  ;;  %v8294_v60 = vld [vmem:[#allocation5 + $0x93c] ss:$24 sps:$4 sm:$0xff]   ;;  %v8289_v61 = vld [vmem:[#allocation5 + $0x7b8] ss:$24 sps:$4 sm:$0xff]  }
 0x18d   :  { %5544 = vmatprep.subr.bf16.mxu1 %v8228_v62  ;;  %v8292_v62 = vld [vmem:[#allocation5 + $0x938] ss:$24 sps:$4 sm:$0xff]  }
 0x18f   :  { %5518 = vmatpush2.bf16.msra.mxu0 %v8223_v63  ;;  %v8297_v63 = vld [vmem:[#allocation5 + $0x78c] ss:$24 sps:$4 sm:$0xff]  }
 0x190   :  { %5545 = vmatpush1.bf16.msra.mxu1 %v8226_v2  ;;  %5519 = vmatprep.subr.bf16.mxu0 %v8231_v4  ;;  %v8300_v2 = vld [vmem:[#allocation5 + $0x90c] ss:$24 sps:$4 sm:$0xff]   ;;  %v8295_v4 = vld [vmem:[#allocation5 + $0x788] ss:$24 sps:$4 sm:$0xff]  }
 0x191   :  { %5546 = vmatprep.subr.bf16.mxu1 %v8234_v5  ;;  %v8298_v5 = vld [vmem:[#allocation5 + $0x908] ss:$24 sps:$4 sm:$0xff]  }
 0x193   :  { %5520 = vmatpush2.bf16.msra.mxu0 %v8229_v6  ;;  %v8303_v6 = vld [vmem:[#allocation5 + $0xbdc] ss:$24 sps:$4 sm:$0xff]  }
 0x194   :  { %5547 = vmatpush1.bf16.msra.mxu1 %v8232_v7  ;;  %5521 = vmatprep.subr.bf16.mxu0 %v8237_v8  ;;  %v8306_v7 = vld [vmem:[#allocation5 + $0xd5c] ss:$24 sps:$4 sm:$0xff]   ;;  %v8301_v8 = vld [vmem:[#allocation5 + $0xbd8] ss:$24 sps:$4 sm:$0xff]  }
 0x195   :  { %5548 = vmatprep.subr.bf16.mxu1 %v8240_v9  ;;  %v8304_v9 = vld [vmem:[#allocation5 + $0xd58] ss:$24 sps:$4 sm:$0xff]  }
 0x197   :  { %5522 = vmatpush2.bf16.msra.mxu0 %v8235_v10  ;;  %v8309_v10 = vld [vmem:[#allocation5 + $0xbac] ss:$24 sps:$4 sm:$0xff]  }
 0x198   :  { %5549 = vmatpush1.bf16.msra.mxu1 %v8238_v11  ;;  %5523 = vmatprep.subr.bf16.mxu0 %v8243_v13  ;;  %v8312_v11 = vld [vmem:[#allocation5 + $0xd2c] ss:$24 sps:$4 sm:$0xff]   ;;  %v8307_v13 = vld [vmem:[#allocation5 + $0xba8] ss:$24 sps:$4 sm:$0xff]  }
 0x199   :  { %5550 = vmatprep.subr.bf16.mxu1 %v8246_v14  ;;  %v8310_v14 = vld [vmem:[#allocation5 + $0xd28] ss:$24 sps:$4 sm:$0xff]  }
 0x19b   :  { %5524 = vmatpush2.bf16.msra.mxu0 %v8241_v16  ;;  %v8315_v16 = vld [vmem:[#allocation5 + $0xb7c] ss:$24 sps:$4 sm:$0xff]  }
 0x19c   :  { %5551 = vmatpush1.bf16.msra.mxu1 %v8244_v17  ;;  %5525 = vmatprep.subr.bf16.mxu0 %v8249_v19  ;;  %v8318_v17 = vld [vmem:[#allocation5 + $0xcfc] ss:$24 sps:$4 sm:$0xff]   ;;  %v8313_v19 = vld [vmem:[#allocation5 + $0xb78] ss:$24 sps:$4 sm:$0xff]  }
 0x19d   :  { %5552 = vmatprep.subr.bf16.mxu1 %v8252_v21  ;;  %v8316_v21 = vld [vmem:[#allocation5 + $0xcf8] ss:$24 sps:$4 sm:$0xff]  }
 0x19f   :  { %5526 = vmatpush2.bf16.msra.mxu0 %v8247_v22  ;;  %v8321_v22 = vld [vmem:[#allocation5 + $0xb4c] ss:$24 sps:$4 sm:$0xff]  }
 0x1a0   :  { %5553 = vmatpush1.bf16.msra.mxu1 %v8250_v23  ;;  %5581 = vmatprep.subr.bf16.mxu0 %v8258_v25  ;;  %v8324_v23 = vld [vmem:[#allocation5 + $0xccc] ss:$24 sps:$4 sm:$0xff]   ;;  %v8322_v25 = vld [vmem:[#allocation5 + $0xcc8] ss:$24 sps:$4 sm:$0xff]  }
 0x1a1   :  { %5554 = vmatprep.subr.bf16.mxu1 %v8255_v24  ;;  %v8319_v24 = vld [vmem:[#allocation5 + $0xb48] ss:$24 sps:$4 sm:$0xff]  }
 0x1a2   :  { %5528 = vmatmul.mubr.bf16.vlgmr.msra.gmra.mxu0 %v9193_v15 }
 0x1a3   :  { %5582 = vmatpush1.bf16.msra.mxu0 %v8256_v27  ;;  %5613 = vmatprep.mubr.bf16.mxu0 %v9199_v47  ;;  %v8330_v27 = vld [vmem:[#allocation5 + $0xc9c] ss:$24 sps:$4 sm:$0xff]  }
 0x1a4   :  { %5555 = vmatpush2.bf16.msra.mxu1 %v8253_v26  ;;  %5583 = vmatprep.subr.bf16.mxu0 %v8264_v32  ;;  %v8327_v26 = vld [vmem:[#allocation5 + $0xb1c] ss:$24 sps:$4 sm:$0xff]   ;;  %v8328_v32 = vld [vmem:[#allocation5 + $0xc98] ss:$24 sps:$4 sm:$0xff]  }
 0x1a5   :  { %5556 = vmatprep.subr.bf16.mxu1 %v8261_v30  ;;  %v8325_v30 = vld [vmem:[#allocation5 + $0xb18] ss:$24 sps:$4 sm:$0xff]  }
 0x1a7   :  { %5584 = vmatpush1.bf16.msra.mxu0 %v8262_v34  ;;  %v8336_v34 = vld [vmem:[#allocation5 + $0xc6c] ss:$24 sps:$4 sm:$0xff]  }
 0x1a8   :  { %5557 = vmatpush2.bf16.msra.mxu1 %v8259_v33  ;;  %5585 = vmatprep.subr.bf16.mxu0 %v8270_v36  ;;  %v8333_v33 = vld [vmem:[#allocation5 + $0xaec] ss:$24 sps:$4 sm:$0xff]   ;;  %v8334_v36 = vld [vmem:[#allocation5 + $0xc68] ss:$24 sps:$4 sm:$0xff]  }
 0x1a9   :  { %5558 = vmatprep.subr.bf16.mxu1 %v8267_v35  ;;  %v8331_v35 = vld [vmem:[#allocation5 + $0xae8] ss:$24 sps:$4 sm:$0xff]  }
 0x1ab   :  { %5586 = vmatpush1.bf16.msra.mxu0 %v8268_v38  ;;  %v8342_v38 = vld [vmem:[#allocation5 + $0xc3c] ss:$24 sps:$4 sm:$0xff]  }
 0x1ac   :  { %5559 = vmatpush2.bf16.msra.mxu1 %v8265_v37  ;;  %5587 = vmatprep.subr.bf16.mxu0 %v8276_v41  ;;  %v8339_v37 = vld [vmem:[#allocation5 + $0xabc] ss:$24 sps:$4 sm:$0xff]   ;;  %v8340_v41 = vld [vmem:[#allocation5 + $0xc38] ss:$24 sps:$4 sm:$0xff]  }
 0x1ad   :  { %5560 = vmatprep.subr.bf16.mxu1 %v8273_v39  ;;  %v8337_v39 = vld [vmem:[#allocation5 + $0xab8] ss:$24 sps:$4 sm:$0xff]  }
 0x1af   :  { %5588 = vmatpush1.bf16.msra.mxu0 %v8274_v43  ;;  %v8348_v43 = vld [vmem:[#allocation5 + $0xc0c] ss:$24 sps:$4 sm:$0xff]  }
 0x1b0   :  { %5561 = vmatpush2.bf16.msra.mxu1 %v8271_v42  ;;  %5589 = vmatprep.subr.bf16.mxu0 %v8282_v48  ;;  %v8345_v42 = vld [vmem:[#allocation5 + $0xa8c] ss:$24 sps:$4 sm:$0xff]   ;;  %v8346_v48 = vld [vmem:[#allocation5 + $0xc08] ss:$24 sps:$4 sm:$0xff]  }
 0x1b1   :  { %5562 = vmatprep.subr.bf16.mxu1 %v8279_v45  ;;  %v8343_v45 = vld [vmem:[#allocation5 + $0xa88] ss:$24 sps:$4 sm:$0xff]  }
 0x1b3   :  { %5590 = vmatpush1.bf16.msra.mxu0 %v8280_v51  ;;  %v8354_v51 = vld [vmem:[#allocation5 + $0x105c] ss:$24 sps:$4 sm:$0xff]  }
 0x1b4   :  { %5563 = vmatpush2.bf16.msra.mxu1 %v8277_v49  ;;  %5591 = vmatprep.subr.bf16.mxu0 %v8288_v53  ;;  %v8351_v49 = vld [vmem:[#allocation5 + $0xedc] ss:$24 sps:$4 sm:$0xff]   ;;  %v8352_v53 = vld [vmem:[#allocation5 + $0x1058] ss:$24 sps:$4 sm:$0xff]  }
 0x1b5   :  { %5564 = vmatprep.subr.bf16.mxu1 %v8285_v52  ;;  %v8349_v52 = vld [vmem:[#allocation5 + $0xed8] ss:$24 sps:$4 sm:$0xff]  }
 0x1b7   :  { %5592 = vmatpush1.bf16.msra.mxu0 %v8286_v56  ;;  %v8360_v56 = vld [vmem:[#allocation5 + $0x102c] ss:$24 sps:$4 sm:$0xff]  }
 0x1b8   :  { %5565 = vmatpush2.bf16.msra.mxu1 %v8283_v54  ;;  %5593 = vmatprep.subr.bf16.mxu0 %v8294_v60  ;;  %v8357_v54 = vld [vmem:[#allocation5 + $0xeac] ss:$24 sps:$4 sm:$0xff]   ;;  %v8358_v60 = vld [vmem:[#allocation5 + $0x1028] ss:$24 sps:$4 sm:$0xff]  }
 0x1b9   :  { %5566 = vmatprep.subr.bf16.mxu1 %v8291_v57  ;;  %v8355_v57 = vld [vmem:[#allocation5 + $0xea8] ss:$24 sps:$4 sm:$0xff]  }
 0x1bb   :  { %5594 = vmatpush1.bf16.msra.mxu0 %v8292_v62  ;;  %v8366_v62 = vld [vmem:[#allocation5 + $0xffc] ss:$24 sps:$4 sm:$0xff]  }
 0x1bc   :  { %5567 = vmatpush2.bf16.msra.mxu1 %v8289_v61  ;;  %5595 = vmatprep.subr.bf16.mxu0 %v8300_v2  ;;  %v8363_v61 = vld [vmem:[#allocation5 + $0xe7c] ss:$24 sps:$4 sm:$0xff]   ;;  %v8364_v2 = vld [vmem:[#allocation5 + $0xff8] ss:$24 sps:$4 sm:$0xff]  }
 0x1bd   :  { %5568 = vmatprep.subr.bf16.mxu1 %v8297_v63  ;;  %v8361_v63 = vld [vmem:[#allocation5 + $0xe78] ss:$24 sps:$4 sm:$0xff]  }
 0x1bf   :  { %5596 = vmatpush1.bf16.msra.mxu0 %v8298_v5  ;;  %v8372_v5 = vld [vmem:[#allocation5 + $0xfcc] ss:$24 sps:$4 sm:$0xff]  }
 0x1c0   :  { %5569 = vmatpush2.bf16.msra.mxu1 %v8295_v4  ;;  %5597 = vmatprep.subr.bf16.mxu0 %v8303_v6  ;;  %v8369_v4 = vld [vmem:[#allocation5 + $0xe4c] ss:$24 sps:$4 sm:$0xff]   ;;  %v8367_v6 = vld [vmem:[#allocation5 + $0xe48] ss:$24 sps:$4 sm:$0xff]  }
 0x1c1   :  { %5624 = vmatprep.subr.bf16.mxu1 %v8306_v7  ;;  %v8370_v7 = vld [vmem:[#allocation5 + $0xfc8] ss:$24 sps:$4 sm:$0xff]  }
 0x1c3   :  { %5571 = vmatmul.mubr.bf16.vlgmr.msra.gmra.mxu1 %v9203_v28  ;;  %5598 = vmatpush2.bf16.msra.mxu0 %v8301_v8  ;;  %v8375_v8 = vld [vmem:[#allocation5 + $0xe1c] ss:$24 sps:$4 sm:$0xff]  }
 0x1c4   :  { %5625 = vmatpush1.bf16.msra.mxu1 %v8304_v9  ;;  %5599 = vmatprep.subr.bf16.mxu0 %v8309_v10  ;;  %v8378_v9 = vld [vmem:[#allocation5 + $0xf9c] ss:$24 sps:$4 sm:$0xff]   ;;  %v8373_v10 = vld [vmem:[#allocation5 + $0xe18] ss:$24 sps:$4 sm:$0xff]  }
 0x1c5   :  { %5626 = vmatprep.subr.bf16.mxu1 %v8312_v11  ;;  %5656 = vmatprep.mubr.bf16.mxu1 %v9209_v40  ;;  %v8376_v11 = vld [vmem:[#allocation5 + $0xf98] ss:$24 sps:$4 sm:$0xff]  }
 0x1c7   :  { %5600 = vmatpush2.bf16.msra.mxu0 %v8307_v13  ;;  %v8381_v13 = vld [vmem:[#allocation5 + $0xdec] ss:$24 sps:$4 sm:$0xff]  }
 0x1c8   :  { %5627 = vmatpush1.bf16.msra.mxu1 %v8310_v14  ;;  %5601 = vmatprep.subr.bf16.mxu0 %v8315_v16  ;;  %v8384_v14 = vld [vmem:[#allocation5 + $0xf6c] ss:$24 sps:$4 sm:$0xff]   ;;  %v8379_v16 = vld [vmem:[#allocation5 + $0xde8] ss:$24 sps:$4 sm:$0xff]  }
 0x1c9   :  { %5628 = vmatprep.subr.bf16.mxu1 %v8318_v17  ;;  %v8382_v17 = vld [vmem:[#allocation5 + $0xf68] ss:$24 sps:$4 sm:$0xff]  }
 0x1cb   :  { %5602 = vmatpush2.bf16.msra.mxu0 %v8313_v19  ;;  %v8387_v19 = vld [vmem:[#allocation5 + $0xdbc] ss:$24 sps:$4 sm:$0xff]  }
 0x1cc   :  { %5629 = vmatpush1.bf16.msra.mxu1 %v8316_v21  ;;  %5603 = vmatprep.subr.bf16.mxu0 %v8321_v22  ;;  %v8390_v21 = vld [vmem:[#allocation5 + $0xf3c] ss:$24 sps:$4 sm:$0xff]   ;;  %v8385_v22 = vld [vmem:[#allocation5 + $0xdb8] ss:$24 sps:$4 sm:$0xff]  }
 0x1cd   :  { %5630 = vmatprep.subr.bf16.mxu1 %v8324_v23  ;;  %v8388_v23 = vld [vmem:[#allocation5 + $0xf38] ss:$24 sps:$4 sm:$0xff]  }
 0x1cf   :  { %5604 = vmatpush2.bf16.msra.mxu0 %v8319_v24  ;;  %v8393_v24 = vld [vmem:[#allocation5 + $0xd8c] ss:$24 sps:$4 sm:$0xff]  }
 0x1d0   :  { %5631 = vmatpush1.bf16.msra.mxu1 %v8322_v25  ;;  %5605 = vmatprep.subr.bf16.mxu0 %v8327_v26  ;;  %v8396_v25 = vld [vmem:[#allocation5 + $0xf0c] ss:$24 sps:$4 sm:$0xff]   ;;  %v8391_v26 = vld [vmem:[#allocation5 + $0xd88] ss:$24 sps:$4 sm:$0xff]  }
 0x1d1   :  { %5632 = vmatprep.subr.bf16.mxu1 %v8330_v27  ;;  %v8394_v27 = vld [vmem:[#allocation5 + $0xf08] ss:$24 sps:$4 sm:$0xff]  }
 0x1d3   :  { %5606 = vmatpush2.bf16.msra.mxu0 %v8325_v30  ;;  %v8399_v30 = vld [vmem:[#allocation5 + $0x11dc] ss:$24 sps:$4 sm:$0xff]  }
 0x1d4   :  { %5633 = vmatpush1.bf16.msra.mxu1 %v8328_v32  ;;  %5607 = vmatprep.subr.bf16.mxu0 %v8333_v33  ;;  %v8402_v32 = vld [vmem:[#allocation5 + $0x135c] ss:$24 sps:$4 sm:$0xff]   ;;  %v8397_v33 = vld [vmem:[#allocation5 + $0x11d8] ss:$24 sps:$4 sm:$0xff]  }
 0x1d5   :  { %5634 = vmatprep.subr.bf16.mxu1 %v8336_v34  ;;  %v8400_v34 = vld [vmem:[#allocation5 + $0x1358] ss:$24 sps:$4 sm:$0xff]  }
 0x1d7   :  { %5608 = vmatpush2.bf16.msra.mxu0 %v8331_v35  ;;  %v8405_v35 = vld [vmem:[#allocation5 + $0x11ac] ss:$24 sps:$4 sm:$0xff]  }
 0x1d8   :  { %5635 = vmatpush1.bf16.msra.mxu1 %v8334_v36  ;;  %5609 = vmatprep.subr.bf16.mxu0 %v8339_v37  ;;  %v8408_v36 = vld [vmem:[#allocation5 + $0x132c] ss:$24 sps:$4 sm:$0xff]   ;;  %v8403_v37 = vld [vmem:[#allocation5 + $0x11a8] ss:$24 sps:$4 sm:$0xff]  }
 0x1d9   :  { %5636 = vmatprep.subr.bf16.mxu1 %v8342_v38  ;;  %v8406_v38 = vld [vmem:[#allocation5 + $0x1328] ss:$24 sps:$4 sm:$0xff]  }
 0x1db   :  { %5610 = vmatpush2.bf16.msra.mxu0 %v8337_v39  ;;  %v8411_v39 = vld [vmem:[#allocation5 + $0x117c] ss:$24 sps:$4 sm:$0xff]  }
 0x1dc   :  { %5637 = vmatpush1.bf16.msra.mxu1 %v8340_v41  ;;  %5611 = vmatprep.subr.bf16.mxu0 %v8345_v42  ;;  %v8414_v41 = vld [vmem:[#allocation5 + $0x12fc] ss:$24 sps:$4 sm:$0xff]   ;;  %v8409_v42 = vld [vmem:[#allocation5 + $0x1178] ss:$24 sps:$4 sm:$0xff]  }
 0x1dd   :  { %5638 = vmatprep.subr.bf16.mxu1 %v8348_v43  ;;  %v8412_v43 = vld [vmem:[#allocation5 + $0x12f8] ss:$24 sps:$4 sm:$0xff]  }
 0x1df   :  { %5612 = vmatpush2.bf16.msra.mxu0 %v8343_v45  ;;  %v8417_v45 = vld [vmem:[#allocation5 + $0x114c] ss:$24 sps:$4 sm:$0xff]  }
 0x1e0   :  { %5639 = vmatpush1.bf16.msra.mxu1 %v8346_v48  ;;  %5667 = vmatprep.subr.bf16.mxu0 %v8354_v51  ;;  %v8420_v48 = vld [vmem:[#allocation5 + $0x12cc] ss:$24 sps:$4 sm:$0xff]   ;;  %v8418_v51 = vld [vmem:[#allocation5 + $0x12c8] ss:$24 sps:$4 sm:$0xff]  }
 0x1e1   :  { %5640 = vmatprep.subr.bf16.mxu1 %v8351_v49  ;;  %v8415_v49 = vld [vmem:[#allocation5 + $0x1148] ss:$24 sps:$4 sm:$0xff]  }
 0x1e2   :  { %5614 = vmatmul.mubr.bf16.vlgmr.msra.gmra.mxu0 %v9205_v31 }
 0x1e3   :  { %5668 = vmatpush1.bf16.msra.mxu0 %v8352_v53  ;;  %5699 = vmatprep.mubr.bf16.mxu0 %v9211_v46  ;;  %v8426_v53 = vld [vmem:[#allocation5 + $0x129c] ss:$24 sps:$4 sm:$0xff]  }
 0x1e4   :  { %5641 = vmatpush2.bf16.msra.mxu1 %v8349_v52  ;;  %5669 = vmatprep.subr.bf16.mxu0 %v8360_v56  ;;  %v8423_v52 = vld [vmem:[#allocation5 + $0x111c] ss:$24 sps:$4 sm:$0xff]   ;;  %v8424_v56 = vld [vmem:[#allocation5 + $0x1298] ss:$24 sps:$4 sm:$0xff]  }
 0x1e5   :  { %5642 = vmatprep.subr.bf16.mxu1 %v8357_v54  ;;  %v8421_v54 = vld [vmem:[#allocation5 + $0x1118] ss:$24 sps:$4 sm:$0xff]  }
 0x1e7   :  { %5670 = vmatpush1.bf16.msra.mxu0 %v8358_v60  ;;  %v8432_v60 = vld [vmem:[#allocation5 + $0x126c] ss:$24 sps:$4 sm:$0xff]  }
 0x1e8   :  { %5643 = vmatpush2.bf16.msra.mxu1 %v8355_v57  ;;  %5671 = vmatprep.subr.bf16.mxu0 %v8366_v62  ;;  %v8429_v57 = vld [vmem:[#allocation5 + $0x10ec] ss:$24 sps:$4 sm:$0xff]   ;;  %v8430_v62 = vld [vmem:[#allocation5 + $0x1268] ss:$24 sps:$4 sm:$0xff]  }
 0x1e9   :  { %5644 = vmatprep.subr.bf16.mxu1 %v8363_v61  ;;  %v8427_v61 = vld [vmem:[#allocation5 + $0x10e8] ss:$24 sps:$4 sm:$0xff]  }
 0x1eb   :  { %5672 = vmatpush1.bf16.msra.mxu0 %v8364_v2  ;;  %v8438_v2 = vld [vmem:[#allocation5 + $0x123c] ss:$24 sps:$4 sm:$0xff]  }
 0x1ec   :  { %5645 = vmatpush2.bf16.msra.mxu1 %v8361_v63  ;;  %5673 = vmatprep.subr.bf16.mxu0 %v8372_v5  ;;  %v8435_v63 = vld [vmem:[#allocation5 + $0x10bc] ss:$24 sps:$4 sm:$0xff]   ;;  %v8436_v5 = vld [vmem:[#allocation5 + $0x1238] ss:$24 sps:$4 sm:$0xff]  }
 0x1ed   :  { %5646 = vmatprep.subr.bf16.mxu1 %v8369_v4  ;;  %v8433_v4 = vld [vmem:[#allocation5 + $0x10b8] ss:$24 sps:$4 sm:$0xff]  }
 0x1ef   :  { %5674 = vmatpush1.bf16.msra.mxu0 %v8370_v7  ;;  %v8444_v7 = vld [vmem:[#allocation5 + $0x120c] ss:$24 sps:$4 sm:$0xff]  }
 0x1f0   :  { %5647 = vmatpush2.bf16.msra.mxu1 %v8367_v6  ;;  %5675 = vmatprep.subr.bf16.mxu0 %v8378_v9  ;;  %v8441_v6 = vld [vmem:[#allocation5 + $0x108c] ss:$24 sps:$4 sm:$0xff]   ;;  %v8442_v9 = vld [vmem:[#allocation5 + $0x1208] ss:$24 sps:$4 sm:$0xff]  }
 0x1f1   :  { %5648 = vmatprep.subr.bf16.mxu1 %v8375_v8  ;;  %v8439_v8 = vld [vmem:[#allocation5 + $0x1088] ss:$24 sps:$4 sm:$0xff]  }
 0x1f3   :  { %5676 = vmatpush1.bf16.msra.mxu0 %v8376_v11  ;;  %v8450_v11 = vld [vmem:[#allocation5 + $0x165c] ss:$24 sps:$4 sm:$0xff]  }
 0x1f4   :  { %5649 = vmatpush2.bf16.msra.mxu1 %v8373_v10  ;;  %5677 = vmatprep.subr.bf16.mxu0 %v8384_v14  ;;  %v8447_v10 = vld [vmem:[#allocation5 + $0x14dc] ss:$24 sps:$4 sm:$0xff]   ;;  %v8448_v14 = vld [vmem:[#allocation5 + $0x1658] ss:$24 sps:$4 sm:$0xff]  }
 0x1f5   :  { %5650 = vmatprep.subr.bf16.mxu1 %v8381_v13  ;;  %v8445_v13 = vld [vmem:[#allocation5 + $0x14d8] ss:$24 sps:$4 sm:$0xff]  }
 0x1f7   :  { %5678 = vmatpush1.bf16.msra.mxu0 %v8382_v17  ;;  %v8456_v17 = vld [vmem:[#allocation5 + $0x162c] ss:$24 sps:$4 sm:$0xff]  }
 0x1f8   :  { %5651 = vmatpush2.bf16.msra.mxu1 %v8379_v16  ;;  %5679 = vmatprep.subr.bf16.mxu0 %v8390_v21  ;;  %v8453_v16 = vld [vmem:[#allocation5 + $0x14ac] ss:$24 sps:$4 sm:$0xff]   ;;  %v8454_v21 = vld [vmem:[#allocation5 + $0x1628] ss:$24 sps:$4 sm:$0xff]  }
 0x1f9   :  { %5652 = vmatprep.subr.bf16.mxu1 %v8387_v19  ;;  %v8451_v19 = vld [vmem:[#allocation5 + $0x14a8] ss:$24 sps:$4 sm:$0xff]  }
 0x1fb   :  { %5680 = vmatpush1.bf16.msra.mxu0 %v8388_v23  ;;  %v8462_v23 = vld [vmem:[#allocation5 + $0x15fc] ss:$24 sps:$4 sm:$0xff]  }
 0x1fc   :  { %5653 = vmatpush2.bf16.msra.mxu1 %v8385_v22  ;;  %5681 = vmatprep.subr.bf16.mxu0 %v8396_v25  ;;  %v8459_v22 = vld [vmem:[#allocation5 + $0x147c] ss:$24 sps:$4 sm:$0xff]   ;;  %v8460_v25 = vld [vmem:[#allocation5 + $0x15f8] ss:$24 sps:$4 sm:$0xff]  }
 0x1fd   :  { %5654 = vmatprep.subr.bf16.mxu1 %v8393_v24  ;;  %v8457_v24 = vld [vmem:[#allocation5 + $0x1478] ss:$24 sps:$4 sm:$0xff]  }
 0x1ff   :  { %5682 = vmatpush1.bf16.msra.mxu0 %v8394_v27  ;;  %v8468_v27 = vld [vmem:[#allocation5 + $0x15cc] ss:$24 sps:$4 sm:$0xff]  }
 0x200   :  { %5655 = vmatpush2.bf16.msra.mxu1 %v8391_v26  ;;  %5683 = vmatprep.subr.bf16.mxu0 %v8399_v30  ;;  %v8465_v26 = vld [vmem:[#allocation5 + $0x144c] ss:$24 sps:$4 sm:$0xff]   ;;  %v8463_v30 = vld [vmem:[#allocation5 + $0x1448] ss:$24 sps:$4 sm:$0xff]  }
 0x201   :  { %5710 = vmatprep.subr.bf16.mxu1 %v8402_v32  ;;  %v8466_v32 = vld [vmem:[#allocation5 + $0x15c8] ss:$24 sps:$4 sm:$0xff]  }
 0x203   :  { %5657 = vmatmul.mubr.bf16.vlgmr.msra.gmra.mxu1 %v9215_v58  ;;  %5684 = vmatpush2.bf16.msra.mxu0 %v8397_v33  ;;  %v8471_v33 = vld [vmem:[#allocation5 + $0x141c] ss:$24 sps:$4 sm:$0xff]  }
 0x204   :  { %5711 = vmatpush1.bf16.msra.mxu1 %v8400_v34  ;;  %5685 = vmatprep.subr.bf16.mxu0 %v8405_v35  ;;  %v8474_v34 = vld [vmem:[#allocation5 + $0x159c] ss:$24 sps:$4 sm:$0xff]   ;;  %v8469_v35 = vld [vmem:[#allocation5 + $0x1418] ss:$24 sps:$4 sm:$0xff]  }
 0x205   :  { %5712 = vmatprep.subr.bf16.mxu1 %v8408_v36  ;;  %5742 = vmatprep.mubr.bf16.mxu1 %v9219_v0  ;;  %v8472_v36 = vld [vmem:[#allocation5 + $0x1598] ss:$24 sps:$4 sm:$0xff]  }
 0x207   :  { %5686 = vmatpush2.bf16.msra.mxu0 %v8403_v37  ;;  %v8477_v37 = vld [vmem:[#allocation5 + $0x13ec] ss:$24 sps:$4 sm:$0xff]  }
 0x208   :  { %5713 = vmatpush1.bf16.msra.mxu1 %v8406_v38  ;;  %5687 = vmatprep.subr.bf16.mxu0 %v8411_v39  ;;  %v8480_v38 = vld [vmem:[#allocation5 + $0x156c] ss:$24 sps:$4 sm:$0xff]   ;;  %v8475_v39 = vld [vmem:[#allocation5 + $0x13e8] ss:$24 sps:$4 sm:$0xff]  }
 0x209   :  { %5714 = vmatprep.subr.bf16.mxu1 %v8414_v41  ;;  %v8478_v41 = vld [vmem:[#allocation5 + $0x1568] ss:$24 sps:$4 sm:$0xff]  }
 0x20b   :  { %5688 = vmatpush2.bf16.msra.mxu0 %v8409_v42  ;;  %v8483_v42 = vld [vmem:[#allocation5 + $0x13bc] ss:$24 sps:$4 sm:$0xff]  }
 0x20c   :  { %5715 = vmatpush1.bf16.msra.mxu1 %v8412_v43  ;;  %5689 = vmatprep.subr.bf16.mxu0 %v8417_v45  ;;  %v8486_v43 = vld [vmem:[#allocation5 + $0x153c] ss:$24 sps:$4 sm:$0xff]   ;;  %v8481_v45 = vld [vmem:[#allocation5 + $0x13b8] ss:$24 sps:$4 sm:$0xff]  }
 0x20d   :  { %5716 = vmatprep.subr.bf16.mxu1 %v8420_v48  ;;  %v8484_v48 = vld [vmem:[#allocation5 + $0x1538] ss:$24 sps:$4 sm:$0xff]  }
 0x20f   :  { %5690 = vmatpush2.bf16.msra.mxu0 %v8415_v49  ;;  %v8489_v49 = vld [vmem:[#allocation5 + $0x138c] ss:$24 sps:$4 sm:$0xff]  }
 0x210   :  { %5717 = vmatpush1.bf16.msra.mxu1 %v8418_v51  ;;  %5691 = vmatprep.subr.bf16.mxu0 %v8423_v52  ;;  %v8492_v51 = vld [vmem:[#allocation5 + $0x150c] ss:$24 sps:$4 sm:$0xff]   ;;  %v8487_v52 = vld [vmem:[#allocation5 + $0x1388] ss:$24 sps:$4 sm:$0xff]  }
 0x211   :  { %5718 = vmatprep.subr.bf16.mxu1 %v8426_v53  ;;  %v8490_v53 = vld [vmem:[#allocation5 + $0x1508] ss:$24 sps:$4 sm:$0xff]  }
 0x213   :  { %5692 = vmatpush2.bf16.msra.mxu0 %v8421_v54  ;;  %v8495_v54 = vld [vmem:[#allocation5 + $0x17dc] ss:$24 sps:$4 sm:$0xff]  }
 0x214   :  { %5719 = vmatpush1.bf16.msra.mxu1 %v8424_v56  ;;  %5693 = vmatprep.subr.bf16.mxu0 %v8429_v57  ;;  %v8498_v56 = vld [vmem:[#allocation5 + $0x195c] ss:$24 sps:$4 sm:$0xff]   ;;  %v8493_v57 = vld [vmem:[#allocation5 + $0x17d8] ss:$24 sps:$4 sm:$0xff]  }
 0x215   :  { %5720 = vmatprep.subr.bf16.mxu1 %v8432_v60  ;;  %v8496_v60 = vld [vmem:[#allocation5 + $0x1958] ss:$24 sps:$4 sm:$0xff]  }
 0x217   :  { %5694 = vmatpush2.bf16.msra.mxu0 %v8427_v61  ;;  %v8501_v61 = vld [vmem:[#allocation5 + $0x17ac] ss:$24 sps:$4 sm:$0xff]  }
 0x218   :  { %5721 = vmatpush1.bf16.msra.mxu1 %v8430_v62  ;;  %5695 = vmatprep.subr.bf16.mxu0 %v8435_v63  ;;  %v8504_v62 = vld [vmem:[#allocation5 + $0x192c] ss:$24 sps:$4 sm:$0xff]   ;;  %v8499_v63 = vld [vmem:[#allocation5 + $0x17a8] ss:$24 sps:$4 sm:$0xff]  }
 0x219   :  { %5722 = vmatprep.subr.bf16.mxu1 %v8438_v2  ;;  %v8502_v2 = vld [vmem:[#allocation5 + $0x1928] ss:$24 sps:$4 sm:$0xff]  }
 0x21b   :  { %5696 = vmatpush2.bf16.msra.mxu0 %v8433_v4  ;;  %v8507_v4 = vld [vmem:[#allocation5 + $0x177c] ss:$24 sps:$4 sm:$0xff]  }
 0x21c   :  { %5723 = vmatpush1.bf16.msra.mxu1 %v8436_v5  ;;  %5697 = vmatprep.subr.bf16.mxu0 %v8441_v6  ;;  %v8510_v5 = vld [vmem:[#allocation5 + $0x18fc] ss:$24 sps:$4 sm:$0xff]   ;;  %v8505_v6 = vld [vmem:[#allocation5 + $0x1778] ss:$24 sps:$4 sm:$0xff]  }
 0x21d   :  { %5724 = vmatprep.subr.bf16.mxu1 %v8444_v7  ;;  %v8508_v7 = vld [vmem:[#allocation5 + $0x18f8] ss:$24 sps:$4 sm:$0xff]  }
 0x21f   :  { %5698 = vmatpush2.bf16.msra.mxu0 %v8439_v8  ;;  %v8513_v8 = vld [vmem:[#allocation5 + $0x174c] ss:$24 sps:$4 sm:$0xff]  }
 0x220   :  { %5725 = vmatpush1.bf16.msra.mxu1 %v8442_v9  ;;  %5753 = vmatprep.subr.bf16.mxu0 %v8450_v11  ;;  %v8516_v9 = vld [vmem:[#allocation5 + $0x18cc] ss:$24 sps:$4 sm:$0xff]   ;;  %v8514_v11 = vld [vmem:[#allocation5 + $0x18c8] ss:$24 sps:$4 sm:$0xff]  }
 0x221   :  { %5726 = vmatprep.subr.bf16.mxu1 %v8447_v10  ;;  %v8511_v10 = vld [vmem:[#allocation5 + $0x1748] ss:$24 sps:$4 sm:$0xff]  }
 0x222   :  { %5700 = vmatmul.mubr.bf16.vlgmr.msra.gmra.mxu0 %v9217_v59 }
 0x223   :  { %5754 = vmatpush1.bf16.msra.mxu0 %v8448_v14  ;;  %5785 = vmatprep.mubr.bf16.mxu0 %v9221_v1  ;;  %v8522_v14 = vld [vmem:[#allocation5 + $0x189c] ss:$24 sps:$4 sm:$0xff]  }
 0x224   :  { %5727 = vmatpush2.bf16.msra.mxu1 %v8445_v13  ;;  %5755 = vmatprep.subr.bf16.mxu0 %v8456_v17  ;;  %v8519_v13 = vld [vmem:[#allocation5 + $0x171c] ss:$24 sps:$4 sm:$0xff]   ;;  %v8520_v17 = vld [vmem:[#allocation5 + $0x1898] ss:$24 sps:$4 sm:$0xff]  }
 0x225   :  { %5728 = vmatprep.subr.bf16.mxu1 %v8453_v16  ;;  %v8517_v16 = vld [vmem:[#allocation5 + $0x1718] ss:$24 sps:$4 sm:$0xff]  }
 0x227   :  { %5756 = vmatpush1.bf16.msra.mxu0 %v8454_v21  ;;  %v8528_v21 = vld [vmem:[#allocation5 + $0x186c] ss:$24 sps:$4 sm:$0xff]  }
 0x228   :  { %5729 = vmatpush2.bf16.msra.mxu1 %v8451_v19  ;;  %5757 = vmatprep.subr.bf16.mxu0 %v8462_v23  ;;  %v8525_v19 = vld [vmem:[#allocation5 + $0x16ec] ss:$24 sps:$4 sm:$0xff]   ;;  %v8526_v23 = vld [vmem:[#allocation5 + $0x1868] ss:$24 sps:$4 sm:$0xff]  }
 0x229   :  { %5730 = vmatprep.subr.bf16.mxu1 %v8459_v22  ;;  %v8523_v22 = vld [vmem:[#allocation5 + $0x16e8] ss:$24 sps:$4 sm:$0xff]  }
 0x22b   :  { %5758 = vmatpush1.bf16.msra.mxu0 %v8460_v25  ;;  %v8534_v25 = vld [vmem:[#allocation5 + $0x183c] ss:$24 sps:$4 sm:$0xff]  }
 0x22c   :  { %5731 = vmatpush2.bf16.msra.mxu1 %v8457_v24  ;;  %5759 = vmatprep.subr.bf16.mxu0 %v8468_v27  ;;  %v8531_v24 = vld [vmem:[#allocation5 + $0x16bc] ss:$24 sps:$4 sm:$0xff]   ;;  %v8532_v27 = vld [vmem:[#allocation5 + $0x1838] ss:$24 sps:$4 sm:$0xff]  }
 0x22d   :  { %5732 = vmatprep.subr.bf16.mxu1 %v8465_v26  ;;  %v8529_v26 = vld [vmem:[#allocation5 + $0x16b8] ss:$24 sps:$4 sm:$0xff]  }
 0x22f   :  { %5760 = vmatpush1.bf16.msra.mxu0 %v8466_v32  ;;  %v8540_v32 = vld [vmem:[#allocation5 + $0x180c] ss:$24 sps:$4 sm:$0xff]  }
 0x230   :  { %5733 = vmatpush2.bf16.msra.mxu1 %v8463_v30  ;;  %5761 = vmatprep.subr.bf16.mxu0 %v8474_v34  ;;  %v8537_v30 = vld [vmem:[#allocation5 + $0x168c] ss:$24 sps:$4 sm:$0xff]   ;;  %v8538_v34 = vld [vmem:[#allocation5 + $0x1808] ss:$24 sps:$4 sm:$0xff]  }
 0x231   :  { %5734 = vmatprep.subr.bf16.mxu1 %v8471_v33  ;;  %v8535_v33 = vld [vmem:[#allocation5 + $0x1688] ss:$24 sps:$4 sm:$0xff]  }
 0x233   :  { %5762 = vmatpush1.bf16.msra.mxu0 %v8472_v36  ;;  %v8546_v36 = vld [vmem:[#allocation5 + $0x464] ss:$24 sps:$4 sm:$0xff]  }
 0x234   :  { %5735 = vmatpush2.bf16.msra.mxu1 %v8469_v35  ;;  %5763 = vmatprep.subr.bf16.mxu0 %v8480_v38  ;;  %v8543_v35 = vld [vmem:[#allocation5 + $0x164] ss:$24 sps:$4 sm:$0xff]   ;;  %v8544_v38 = vld [vmem:[#allocation5 + $0x460] ss:$24 sps:$4 sm:$0xff]  }
 0x235   :  { %5736 = vmatprep.subr.bf16.mxu1 %v8477_v37  ;;  %v8541_v37 = vld [vmem:[#allocation5 + $0x160] ss:$24 sps:$4 sm:$0xff]  }
 0x237   :  { %5764 = vmatpush1.bf16.msra.mxu0 %v8478_v41  ;;  %v8552_v41 = vld [vmem:[#allocation5 + $0x434] ss:$24 sps:$4 sm:$0xff]  }
 0x238   :  { %5737 = vmatpush2.bf16.msra.mxu1 %v8475_v39  ;;  %5765 = vmatprep.subr.bf16.mxu0 %v8486_v43  ;;  %v8549_v39 = vld [vmem:[#allocation5 + $0x134] ss:$24 sps:$4 sm:$0xff]   ;;  %v8550_v43 = vld [vmem:[#allocation5 + $0x430] ss:$24 sps:$4 sm:$0xff]  }
 0x239   :  { %5738 = vmatprep.subr.bf16.mxu1 %v8483_v42  ;;  %v8547_v42 = vld [vmem:[#allocation5 + $0x130] ss:$24 sps:$4 sm:$0xff]  }
 0x23b   :  { %5766 = vmatpush1.bf16.msra.mxu0 %v8484_v48  ;;  %v8558_v48 = vld [vmem:[#allocation5 + $0x404] ss:$24 sps:$4 sm:$0xff]  }
 0x23c   :  { %5739 = vmatpush2.bf16.msra.mxu1 %v8481_v45  ;;  %5767 = vmatprep.subr.bf16.mxu0 %v8492_v51  ;;  %v8555_v45 = vld [vmem:[#allocation5 + $0x104] ss:$24 sps:$4 sm:$0xff]   ;;  %v8556_v51 = vld [vmem:[#allocation5 + $0x400] ss:$24 sps:$4 sm:$0xff]  }
 0x23d   :  { %5740 = vmatprep.subr.bf16.mxu1 %v8489_v49  ;;  %v8553_v49 = vld [vmem:[#allocation5 + $0x100] ss:$24 sps:$4 sm:$0xff]  }
 0x23f   :  { %5768 = vmatpush1.bf16.msra.mxu0 %v8490_v53  ;;  %v8564_v53 = vld [vmem:[#allocation5 + $0x3d4] ss:$24 sps:$4 sm:$0xff]  }
 0x240   :  { %5741 = vmatpush2.bf16.msra.mxu1 %v8487_v52  ;;  %5769 = vmatprep.subr.bf16.mxu0 %v8495_v54  ;;  %v8561_v52 = vld [vmem:[#allocation5 + $0xd4] ss:$24 sps:$4 sm:$0xff]   ;;  %v8559_v54 = vld [vmem:[#allocation5 + $0xd0] ss:$24 sps:$4 sm:$0xff]  }
 0x241   :  { %5796 = vmatprep.subr.bf16.mxu1 %v8498_v56  ;;  %v8562_v56 = vld [vmem:[#allocation5 + $0x3d0] ss:$24 sps:$4 sm:$0xff]  }
 0x243   :  { %5743 = vmatmul.mubr.bf16.vlgmr.msra.gmra.mxu1 %v9227_v18  ;;  %5770 = vmatpush2.bf16.msra.mxu0 %v8493_v57  ;;  %v8567_v57 = vld [vmem:[#allocation5 + $0xa4] ss:$24 sps:$4 sm:$0xff]  }
 0x244   :  { %5797 = vmatpush1.bf16.msra.mxu1 %v8496_v60  ;;  %5771 = vmatprep.subr.bf16.mxu0 %v8501_v61  ;;  %v8570_v60 = vld [vmem:[#allocation5 + $0x3a4] ss:$24 sps:$4 sm:$0xff]   ;;  %v8573_v61 = vld [vmem:[#allocation5 + $0x74] ss:$24 sps:$4 sm:$0xff]  }
 0x245   :  { %5798 = vmatprep.subr.bf16.mxu1 %v8504_v62  ;;  %5828 = vmatprep.mubr.bf16.mxu1 %v9496_v29  ;;  %v8576_v62 = vld [vmem:[#allocation5 + $0x374] ss:$24 sps:$4 sm:$0xff]  }
 0x247   :  { %5772 = vmatpush2.bf16.msra.mxu0 %v8499_v63  ;;  %v8571_v63 = vld [vmem:[#allocation5 + $0x70] ss:$24 sps:$4 sm:$0xff]  }
 0x248   :  { %5799 = vmatpush1.bf16.msra.mxu1 %v8502_v2  ;;  %5773 = vmatprep.subr.bf16.mxu0 %v8507_v4  ;;  %v8574_v2 = vld [vmem:[#allocation5 + $0x370] ss:$24 sps:$4 sm:$0xff]   ;;  %v8579_v4 = vld [vmem:[#allocation5 + $0x44] ss:$24 sps:$4 sm:$0xff]  }
 0x249   :  { %5800 = vmatprep.subr.bf16.mxu1 %v8510_v5  ;;  %v8582_v5 = vld [vmem:[#allocation5 + $0x344] ss:$24 sps:$4 sm:$0xff]  }
 0x24b   :  { %5774 = vmatpush2.bf16.msra.mxu0 %v8505_v6  ;;  %v8577_v6 = vld [vmem:[#allocation5 + $0x40] ss:$24 sps:$4 sm:$0xff]  }
 0x24c   :  { %5801 = vmatpush1.bf16.msra.mxu1 %v8508_v7  ;;  %5775 = vmatprep.subr.bf16.mxu0 %v8513_v8  ;;  %v8580_v7 = vld [vmem:[#allocation5 + $0x340] ss:$24 sps:$4 sm:$0xff]   ;;  %v8585_v8 = vld [vmem:[#allocation5 + $0x14] ss:$24 sps:$4 sm:$0xff]  }
 0x24d   :  { %5802 = vmatprep.subr.bf16.mxu1 %v8516_v9  ;;  %v8588_v9 = vld [vmem:[#allocation5 + $0x314] ss:$24 sps:$4 sm:$0xff]  }
 0x24f   :  { %5776 = vmatpush2.bf16.msra.mxu0 %v8511_v10  ;;  %v8583_v10 = vld [vmem:[#allocation5 + $0x10] ss:$24 sps:$4 sm:$0xff]  }
 0x250   :  { %5803 = vmatpush1.bf16.msra.mxu1 %v8514_v11  ;;  %5777 = vmatprep.subr.bf16.mxu0 %v8519_v13  ;;  %v8586_v11 = vld [vmem:[#allocation5 + $0x310] ss:$24 sps:$4 sm:$0xff]   ;;  %v8591_v13 = vld [vmem:[#allocation5 + $0x2e4] ss:$24 sps:$4 sm:$0xff]  }
 0x251   :  { %5804 = vmatprep.subr.bf16.mxu1 %v8522_v14  ;;  %v8594_v14 = vld [vmem:[#allocation5 + $0x5e4] ss:$24 sps:$4 sm:$0xff]  }
 0x253   :  { %5778 = vmatpush2.bf16.msra.mxu0 %v8517_v16  ;;  %v8589_v16 = vld [vmem:[#allocation5 + $0x2e0] ss:$24 sps:$4 sm:$0xff]  }
 0x254   :  { %5805 = vmatpush1.bf16.msra.mxu1 %v8520_v17  ;;  %5779 = vmatprep.subr.bf16.mxu0 %v8525_v19  ;;  %v8592_v17 = vld [vmem:[#allocation5 + $0x5e0] ss:$24 sps:$4 sm:$0xff]   ;;  %v8597_v19 = vld [vmem:[#allocation5 + $0x2b4] ss:$24 sps:$4 sm:$0xff]  }
 0x255   :  { %5806 = vmatprep.subr.bf16.mxu1 %v8528_v21  ;;  %v8600_v21 = vld [vmem:[#allocation5 + $0x5b4] ss:$24 sps:$4 sm:$0xff]  }
 0x257   :  { %5780 = vmatpush2.bf16.msra.mxu0 %v8523_v22  ;;  %v8595_v22 = vld [vmem:[#allocation5 + $0x2b0] ss:$24 sps:$4 sm:$0xff]  }
 0x258   :  { %5807 = vmatpush1.bf16.msra.mxu1 %v8526_v23  ;;  %5781 = vmatprep.subr.bf16.mxu0 %v8531_v24  ;;  %v8598_v23 = vld [vmem:[#allocation5 + $0x5b0] ss:$24 sps:$4 sm:$0xff]   ;;  %v8603_v24 = vld [vmem:[#allocation5 + $0x284] ss:$24 sps:$4 sm:$0xff]  }
 0x259   :  { %5808 = vmatprep.subr.bf16.mxu1 %v8534_v25  ;;  %v8606_v25 = vld [vmem:[#allocation5 + $0x584] ss:$24 sps:$4 sm:$0xff]  }
 0x25b   :  { %5782 = vmatpush2.bf16.msra.mxu0 %v8529_v26  ;;  %v8601_v26 = vld [vmem:[#allocation5 + $0x280] ss:$24 sps:$4 sm:$0xff]  }
 0x25c   :  { %5809 = vmatpush1.bf16.msra.mxu1 %v8532_v27  ;;  %5783 = vmatprep.subr.bf16.mxu0 %v8537_v30  ;;  %v8604_v27 = vld [vmem:[#allocation5 + $0x580] ss:$24 sps:$4 sm:$0xff]   ;;  %v8609_v30 = vld [vmem:[#allocation5 + $0x254] ss:$24 sps:$4 sm:$0xff]  }
 0x25d   :  { %5810 = vmatprep.subr.bf16.mxu1 %v8540_v32  ;;  %v8612_v32 = vld [vmem:[#allocation5 + $0x554] ss:$24 sps:$4 sm:$0xff]  }
 0x25f   :  { %5784 = vmatpush2.bf16.msra.mxu0 %v8535_v33  ;;  %v8607_v33 = vld [vmem:[#allocation5 + $0x250] ss:$24 sps:$4 sm:$0xff]  }
 0x260   :  { %5811 = vmatpush1.bf16.msra.mxu1 %v8538_v34  ;;  %5839 = vmatprep.subr.bf16.mxu0 %v8543_v35  ;;  %v8610_v34 = vld [vmem:[#allocation5 + $0x550] ss:$24 sps:$4 sm:$0xff]   ;;  %v8615_v35 = vld [vmem:[#allocation5 + $0x224] ss:$24 sps:$4 sm:$0xff]  }
 0x261   :  { %5882 = vmatprep.subr.bf16.mxu1 %v8546_v36  ;;  %v8618_v36 = vld [vmem:[#allocation5 + $0x524] ss:$24 sps:$4 sm:$0xff]  }
 0x262   :  { %5786 = vmatmul.mubr.bf16.vlgmr.msra.gmra.mxu0 %v9229_v20 }
 0x263   :  { %5829 = vmatmul.mubr.bf16.vlgmr.msra.gmra.mxu1 %v9235_v3  ;;  %5840 = vmatpush1.bf16.msra.mxu0 %v8541_v37  ;;  %v8613_v37 = vld [vmem:[#allocation5 + $0x220] ss:$24 sps:$4 sm:$0xff]  }
 0x264   :  { %5883 = vmatpush1.bf16.msra.mxu1 %v8544_v38  ;;  %5841 = vmatprep.subr.bf16.mxu0 %v8549_v39  ;;  %v8616_v38 = vld [vmem:[#allocation5 + $0x520] ss:$24 sps:$4 sm:$0xff]   ;;  %v8621_v39 = vld [vmem:[#allocation5 + $0x1f4] ss:$24 sps:$4 sm:$0xff]  }
 0x265   :  { %5884 = vmatprep.subr.bf16.mxu1 %v8552_v41  ;;  %5871 = vmatprep.mubr.bf16.mxu0 %v9185_v50  ;;  %v8565_v50 = vld [vmem:[#allocation5 + $0xa0] ss:$24 sps:$4 sm:$0xff]   ;;  %v8624_v41 = vld [vmem:[#allocation5 + $0x4f4] ss:$24 sps:$4 sm:$0xff]  }
 0x266   :  { %5914 = vmatprep.mubr.bf16.mxu1 %v9187_v55  ;;  %v8568_v55 = vld [vmem:[#allocation5 + $0x3a0] ss:$24 sps:$4 sm:$0xff]  }
 0x267   :  { %5842 = vmatpush1.bf16.msra.mxu0 %v8547_v42  ;;  %v8619_v42 = vld [vmem:[#allocation5 + $0x1f0] ss:$24 sps:$4 sm:$0xff]  }
 0x268   :  { %5885 = vmatpush1.bf16.msra.mxu1 %v8550_v43  ;;  %5843 = vmatprep.subr.bf16.mxu0 %v8555_v45  ;;  %v8622_v43 = vld [vmem:[#allocation5 + $0x4f0] ss:$24 sps:$4 sm:$0xff]   ;;  %v8627_v45 = vld [vmem:[#allocation5 + $0x1c4] ss:$24 sps:$4 sm:$0xff]  }
 0x269   :  { %5886 = vmatprep.subr.bf16.mxu1 %v8558_v48  ;;  %v8630_v48 = vld [vmem:[#allocation5 + $0x4c4] ss:$24 sps:$4 sm:$0xff]  }
 0x26b   :  { %5844 = vmatpush1.bf16.msra.mxu0 %v8553_v49  ;;  %v8625_v49 = vld [vmem:[#allocation5 + $0x1c0] ss:$24 sps:$4 sm:$0xff]  }
 0x26c   :  { %5887 = vmatpush1.bf16.msra.mxu1 %v8556_v51  ;;  %5845 = vmatprep.subr.bf16.mxu0 %v8561_v52  ;;  %v8628_v51 = vld [vmem:[#allocation5 + $0x4c0] ss:$24 sps:$4 sm:$0xff]   ;;  %v8633_v52 = vld [vmem:[#allocation5 + $0x194] ss:$24 sps:$4 sm:$0xff]  }
 0x26d   :  { %5888 = vmatprep.subr.bf16.mxu1 %v8564_v53  ;;  %v8636_v53 = vld [vmem:[#allocation5 + $0x494] ss:$24 sps:$4 sm:$0xff]  }
 0x26f   :  { %5846 = vmatpush1.bf16.msra.mxu0 %v8559_v54  ;;  %v8631_v54 = vld [vmem:[#allocation5 + $0x190] ss:$24 sps:$4 sm:$0xff]  }
 0x270   :  { %5889 = vmatpush1.bf16.msra.mxu1 %v8562_v56  ;;  %5847 = vmatprep.subr.bf16.mxu0 %v8567_v57  ;;  %v8634_v56 = vld [vmem:[#allocation5 + $0x490] ss:$24 sps:$4 sm:$0xff]   ;;  %v8639_v57 = vld [vmem:[#allocation5 + $0x764] ss:$24 sps:$4 sm:$0xff]  }
 0x271   :  { %5890 = vmatprep.subr.bf16.mxu1 %v8570_v60  ;;  %v8642_v60 = vld [vmem:[#allocation5 + $0xa64] ss:$24 sps:$4 sm:$0xff]  }
 0x273   :  { %5848 = vmatpush1.bf16.msra.mxu0 %v8565_v50  ;;  %v8637_v50 = vld [vmem:[#allocation5 + $0x760] ss:$24 sps:$4 sm:$0xff]  }
 0x274   :  { %5891 = vmatpush1.bf16.msra.mxu1 %v8568_v55  ;;  %5849 = vmatprep.subr.bf16.mxu0 %v8573_v61  ;;  %v8640_v55 = vld [vmem:[#allocation5 + $0xa60] ss:$24 sps:$4 sm:$0xff]   ;;  %v8645_v61 = vld [vmem:[#allocation5 + $0x734] ss:$24 sps:$4 sm:$0xff]  }
 0x275   :  { %5892 = vmatprep.subr.bf16.mxu1 %v8576_v62  ;;  %v8648_v62 = vld [vmem:[#allocation5 + $0xa34] ss:$24 sps:$4 sm:$0xff]  }
 0x277   :  { %5850 = vmatpush1.bf16.msra.mxu0 %v8571_v63  ;;  %v8643_v63 = vld [vmem:[#allocation5 + $0x730] ss:$24 sps:$4 sm:$0xff]  }
 0x278   :  { %5893 = vmatpush1.bf16.msra.mxu1 %v8574_v2  ;;  %5851 = vmatprep.subr.bf16.mxu0 %v8579_v4  ;;  %v8646_v2 = vld [vmem:[#allocation5 + $0xa30] ss:$24 sps:$4 sm:$0xff]   ;;  %v8651_v4 = vld [vmem:[#allocation5 + $0x704] ss:$24 sps:$4 sm:$0xff]  }
 0x279   :  { %5894 = vmatprep.subr.bf16.mxu1 %v8582_v5  ;;  %v8654_v5 = vld [vmem:[#allocation5 + $0xa04] ss:$24 sps:$4 sm:$0xff]  }
 0x27b   :  { %5852 = vmatpush1.bf16.msra.mxu0 %v8577_v6  ;;  %v8649_v6 = vld [vmem:[#allocation5 + $0x700] ss:$24 sps:$4 sm:$0xff]  }
 0x27c   :  { %5895 = vmatpush1.bf16.msra.mxu1 %v8580_v7  ;;  %5853 = vmatprep.subr.bf16.mxu0 %v8585_v8  ;;  %v8652_v7 = vld [vmem:[#allocation5 + $0xa00] ss:$24 sps:$4 sm:$0xff]   ;;  %v8655_v8 = vld [vmem:[#allocation5 + $0x6d0] ss:$24 sps:$4 sm:$0xff]  }
 0x27d   :  { %5896 = vmatprep.subr.bf16.mxu1 %v8588_v9  ;;  %v8658_v9 = vld [vmem:[#allocation5 + $0x9d0] ss:$24 sps:$4 sm:$0xff]  }
 0x27f   :  { %5854 = vmatpush1.bf16.msra.mxu0 %v8583_v10  ;;  %v8663_v10 = vld [vmem:[#allocation5 + $0x6a4] ss:$24 sps:$4 sm:$0xff]  }
 0x280   :  { %5897 = vmatpush1.bf16.msra.mxu1 %v8586_v11  ;;  %5855 = vmatprep.subr.bf16.mxu0 %v8591_v13  ;;  %v8666_v11 = vld [vmem:[#allocation5 + $0x9a4] ss:$24 sps:$4 sm:$0xff]   ;;  %v8669_v13 = vld [vmem:[#allocation5 + $0x674] ss:$24 sps:$4 sm:$0xff]  }
 0x281   :  { %5898 = vmatprep.subr.bf16.mxu1 %v8594_v14  ;;  %v8672_v14 = vld [vmem:[#allocation5 + $0x974] ss:$24 sps:$4 sm:$0xff]  }
 0x283   :  { %5856 = vmatpush2.bf16.msra.mxu0 %v8589_v16  ;;  %v8667_v16 = vld [vmem:[#allocation5 + $0x670] ss:$24 sps:$4 sm:$0xff]  }
 0x284   :  { %5899 = vmatpush2.bf16.msra.mxu1 %v8592_v17  ;;  %5857 = vmatprep.subr.bf16.mxu0 %v8597_v19  ;;  %v8670_v17 = vld [vmem:[#allocation5 + $0x970] ss:$24 sps:$4 sm:$0xff]   ;;  %v8675_v19 = vld [vmem:[#allocation5 + $0x644] ss:$24 sps:$4 sm:$0xff]  }
 0x285   :  { %5900 = vmatprep.subr.bf16.mxu1 %v8600_v21  ;;  %v8678_v21 = vld [vmem:[#allocation5 + $0x944] ss:$24 sps:$4 sm:$0xff]  }
 0x287   :  { %5858 = vmatpush2.bf16.msra.mxu0 %v8595_v22  ;;  %v8673_v22 = vld [vmem:[#allocation5 + $0x640] ss:$24 sps:$4 sm:$0xff]  }
 0x288   :  { %5901 = vmatpush2.bf16.msra.mxu1 %v8598_v23  ;;  %5859 = vmatprep.subr.bf16.mxu0 %v8603_v24  ;;  %v8676_v23 = vld [vmem:[#allocation5 + $0x940] ss:$24 sps:$4 sm:$0xff]   ;;  %v8681_v24 = vld [vmem:[#allocation5 + $0x614] ss:$24 sps:$4 sm:$0xff]  }
 0x289   :  { %5902 = vmatprep.subr.bf16.mxu1 %v8606_v25  ;;  %v8684_v25 = vld [vmem:[#allocation5 + $0x914] ss:$24 sps:$4 sm:$0xff]  }
 0x28b   :  { %5860 = vmatpush2.bf16.msra.mxu0 %v8601_v26  ;;  %v8679_v26 = vld [vmem:[#allocation5 + $0x610] ss:$24 sps:$4 sm:$0xff]  }
 0x28c   :  { %5903 = vmatpush2.bf16.msra.mxu1 %v8604_v27  ;;  %5861 = vmatprep.subr.bf16.mxu0 %v8609_v30  ;;  %v8682_v27 = vld [vmem:[#allocation5 + $0x910] ss:$24 sps:$4 sm:$0xff]   ;;  %v8687_v30 = vld [vmem:[#allocation5 + $0x8e4] ss:$24 sps:$4 sm:$0xff]  }
 0x28d   :  { %5904 = vmatprep.subr.bf16.mxu1 %v8612_v32  ;;  %v8690_v32 = vld [vmem:[#allocation5 + $0xbe4] ss:$24 sps:$4 sm:$0xff]  }
 0x28f   :  { %5862 = vmatpush2.bf16.msra.mxu0 %v8607_v33  ;;  %v8685_v33 = vld [vmem:[#allocation5 + $0x8e0] ss:$24 sps:$4 sm:$0xff]  }
 0x290   :  { %5905 = vmatpush2.bf16.msra.mxu1 %v8610_v34  ;;  %5863 = vmatprep.subr.bf16.mxu0 %v8615_v35  ;;  %v8688_v34 = vld [vmem:[#allocation5 + $0xbe0] ss:$24 sps:$4 sm:$0xff]   ;;  %v8693_v35 = vld [vmem:[#allocation5 + $0x8b4] ss:$24 sps:$4 sm:$0xff]  }
 0x291   :  { %5906 = vmatprep.subr.bf16.mxu1 %v8618_v36  ;;  %v8696_v36 = vld [vmem:[#allocation5 + $0xbb4] ss:$24 sps:$4 sm:$0xff]  }
 0x293   :  { %5864 = vmatpush2.bf16.msra.mxu0 %v8613_v37  ;;  %v8691_v37 = vld [vmem:[#allocation5 + $0x8b0] ss:$24 sps:$4 sm:$0xff]  }
 0x294   :  { %5907 = vmatpush2.bf16.msra.mxu1 %v8616_v38  ;;  %5865 = vmatprep.subr.bf16.mxu0 %v8621_v39  ;;  %v8694_v38 = vld [vmem:[#allocation5 + $0xbb0] ss:$24 sps:$4 sm:$0xff]   ;;  %v8699_v39 = vld [vmem:[#allocation5 + $0x884] ss:$24 sps:$4 sm:$0xff]  }
 0x295   :  { %5908 = vmatprep.subr.bf16.mxu1 %v8624_v41  ;;  %v8702_v41 = vld [vmem:[#allocation5 + $0xb84] ss:$24 sps:$4 sm:$0xff]  }
 0x297   :  { %5866 = vmatpush2.bf16.msra.mxu0 %v8619_v42  ;;  %v8697_v42 = vld [vmem:[#allocation5 + $0x880] ss:$24 sps:$4 sm:$0xff]  }
 0x298   :  { %5909 = vmatpush2.bf16.msra.mxu1 %v8622_v43  ;;  %5867 = vmatprep.subr.bf16.mxu0 %v8627_v45  ;;  %v8700_v43 = vld [vmem:[#allocation5 + $0xb80] ss:$24 sps:$4 sm:$0xff]   ;;  %v8705_v45 = vld [vmem:[#allocation5 + $0x854] ss:$24 sps:$4 sm:$0xff]  }
 0x299   :  { %5910 = vmatprep.subr.bf16.mxu1 %v8630_v48  ;;  %v8708_v48 = vld [vmem:[#allocation5 + $0xb54] ss:$24 sps:$4 sm:$0xff]  }
 0x29b   :  { %5868 = vmatpush2.bf16.msra.mxu0 %v8625_v49  ;;  %v8703_v49 = vld [vmem:[#allocation5 + $0x850] ss:$24 sps:$4 sm:$0xff]  }
 0x29c   :  { %5911 = vmatpush2.bf16.msra.mxu1 %v8628_v51  ;;  %5869 = vmatprep.subr.bf16.mxu0 %v8633_v52  ;;  %v8706_v51 = vld [vmem:[#allocation5 + $0xb50] ss:$24 sps:$4 sm:$0xff]   ;;  %v8711_v52 = vld [vmem:[#allocation5 + $0x824] ss:$24 sps:$4 sm:$0xff]  }
 0x29d   :  { %5912 = vmatprep.subr.bf16.mxu1 %v8636_v53  ;;  %v8714_v53 = vld [vmem:[#allocation5 + $0xb24] ss:$24 sps:$4 sm:$0xff]  }
 0x29f   :  { %5870 = vmatpush2.bf16.msra.mxu0 %v8631_v54  ;;  %v8709_v54 = vld [vmem:[#allocation5 + $0x820] ss:$24 sps:$4 sm:$0xff]  }
 0x2a0   :  { %5913 = vmatpush2.bf16.msra.mxu1 %v8634_v56  ;;  %5925 = vmatprep.subr.bf16.mxu0 %v8639_v57  ;;  %v8712_v56 = vld [vmem:[#allocation5 + $0xb20] ss:$24 sps:$4 sm:$0xff]   ;;  %v8717_v57 = vld [vmem:[#allocation5 + $0x7f4] ss:$24 sps:$4 sm:$0xff]  }
 0x2a1   :  { %5968 = vmatprep.subr.bf16.mxu1 %v8642_v60  ;;  %v8720_v60 = vld [vmem:[#allocation5 + $0xaf4] ss:$24 sps:$4 sm:$0xff]  }
 0x2a2   :  { %5872 = vmatmul.mubr.bf16.vlgmr.msra.gmra.mxu0 %v9191_v12  ;;  %v8657_v12 = vld [vmem:[#allocation5 + $0x6d4] ss:$24 sps:$4 sm:$0xff]  }
 0x2a3   :  { %5915 = vmatmul.mubr.bf16.vlgmr.msra.gmra.mxu1 %v9193_v15  ;;  %5926 = vmatpush1.bf16.msra.mxu0 %v8637_v50  ;;  %v8660_v15 = vld [vmem:[#allocation5 + $0x9d4] ss:$24 sps:$4 sm:$0xff]   ;;  %v8715_v50 = vld [vmem:[#allocation5 + $0x7f0] ss:$24 sps:$4 sm:$0xff]  }
 0x2a4   :  { %5969 = vmatpush1.bf16.msra.mxu1 %v8640_v55  ;;  %5927 = vmatprep.subr.bf16.mxu0 %v8645_v61  ;;  %v8718_v55 = vld [vmem:[#allocation5 + $0xaf0] ss:$24 sps:$4 sm:$0xff]   ;;  %v8723_v61 = vld [vmem:[#allocation5 + $0x7c4] ss:$24 sps:$4 sm:$0xff]  }
 0x2a5   :  { %5970 = vmatprep.subr.bf16.mxu1 %v8648_v62  ;;  %5957 = vmatprep.mubr.bf16.mxu0 %v9197_v44  ;;  %v8661_v44 = vld [vmem:[#allocation5 + $0x6a0] ss:$24 sps:$4 sm:$0xff]   ;;  %v8726_v62 = vld [vmem:[#allocation5 + $0xac4] ss:$24 sps:$4 sm:$0xff]  }
 0x2a6   :  { %6000 = vmatprep.mubr.bf16.mxu1 %v9199_v47  ;;  %v8664_v47 = vld [vmem:[#allocation5 + $0x9a0] ss:$24 sps:$4 sm:$0xff]  }
 0x2a7   :  { %5928 = vmatpush1.bf16.msra.mxu0 %v8643_v63  ;;  %v8721_v63 = vld [vmem:[#allocation5 + $0x7c0] ss:$24 sps:$4 sm:$0xff]  }
 0x2a8   :  { %5971 = vmatpush1.bf16.msra.mxu1 %v8646_v2  ;;  %5929 = vmatprep.subr.bf16.mxu0 %v8651_v4  ;;  %v8724_v2 = vld [vmem:[#allocation5 + $0xac0] ss:$24 sps:$4 sm:$0xff]   ;;  %v8729_v4 = vld [vmem:[#allocation5 + $0x794] ss:$24 sps:$4 sm:$0xff]  }
 0x2a9   :  { %5972 = vmatprep.subr.bf16.mxu1 %v8654_v5  ;;  %v8732_v5 = vld [vmem:[#allocation5 + $0xa94] ss:$24 sps:$4 sm:$0xff]  }
 0x2ab   :  { %5930 = vmatpush1.bf16.msra.mxu0 %v8649_v6  ;;  %v8727_v6 = vld [vmem:[#allocation5 + $0x790] ss:$24 sps:$4 sm:$0xff]  }
 0x2ac   :  { %5973 = vmatpush1.bf16.msra.mxu1 %v8652_v7  ;;  %5931 = vmatprep.subr.bf16.mxu0 %v8657_v12  ;;  %v8730_v7 = vld [vmem:[#allocation5 + $0xa90] ss:$24 sps:$4 sm:$0xff]   ;;  %v8735_v12 = vld [vmem:[#allocation5 + $0xd64] ss:$24 sps:$4 sm:$0xff]  }
 0x2ad   :  { %5974 = vmatprep.subr.bf16.mxu1 %v8660_v15  ;;  %v8738_v15 = vld [vmem:[#allocation5 + $0x1064] ss:$24 sps:$4 sm:$0xff]  }
 0x2af   :  { %5932 = vmatpush1.bf16.msra.mxu0 %v8655_v8  ;;  %v8733_v8 = vld [vmem:[#allocation5 + $0xd60] ss:$24 sps:$4 sm:$0xff]  }
 0x2b0   :  { %5975 = vmatpush1.bf16.msra.mxu1 %v8658_v9  ;;  %5933 = vmatprep.subr.bf16.mxu0 %v8663_v10  ;;  %v8736_v9 = vld [vmem:[#allocation5 + $0x1060] ss:$24 sps:$4 sm:$0xff]   ;;  %v8741_v10 = vld [vmem:[#allocation5 + $0xd34] ss:$24 sps:$4 sm:$0xff]  }
 0x2b1   :  { %5976 = vmatprep.subr.bf16.mxu1 %v8666_v11  ;;  %v8744_v11 = vld [vmem:[#allocation5 + $0x1034] ss:$24 sps:$4 sm:$0xff]  }
 0x2b3   :  { %5934 = vmatpush1.bf16.msra.mxu0 %v8661_v44  ;;  %v8739_v44 = vld [vmem:[#allocation5 + $0xd30] ss:$24 sps:$4 sm:$0xff]  }
 0x2b4   :  { %5977 = vmatpush1.bf16.msra.mxu1 %v8664_v47  ;;  %5935 = vmatprep.subr.bf16.mxu0 %v8669_v13  ;;  %v8742_v47 = vld [vmem:[#allocation5 + $0x1030] ss:$24 sps:$4 sm:$0xff]   ;;  %v8747_v13 = vld [vmem:[#allocation5 + $0xd04] ss:$24 sps:$4 sm:$0xff]  }
 0x2b5   :  { %5978 = vmatprep.subr.bf16.mxu1 %v8672_v14  ;;  %v8750_v14 = vld [vmem:[#allocation5 + $0x1004] ss:$24 sps:$4 sm:$0xff]  }
 0x2b7   :  { %5936 = vmatpush1.bf16.msra.mxu0 %v8667_v16  ;;  %v8745_v16 = vld [vmem:[#allocation5 + $0xd00] ss:$24 sps:$4 sm:$0xff]  }
 0x2b8   :  { %5979 = vmatpush1.bf16.msra.mxu1 %v8670_v17  ;;  %5937 = vmatprep.subr.bf16.mxu0 %v8675_v19  ;;  %v8748_v17 = vld [vmem:[#allocation5 + $0x1000] ss:$24 sps:$4 sm:$0xff]   ;;  %v8751_v19 = vld [vmem:[#allocation5 + $0xcd0] ss:$24 sps:$4 sm:$0xff]  }
 0x2b9   :  { %5980 = vmatprep.subr.bf16.mxu1 %v8678_v21  ;;  %v8754_v21 = vld [vmem:[#allocation5 + $0xfd0] ss:$24 sps:$4 sm:$0xff]  }
 0x2bb   :  { %5938 = vmatpush1.bf16.msra.mxu0 %v8673_v22  ;;  %v8759_v22 = vld [vmem:[#allocation5 + $0xca4] ss:$24 sps:$4 sm:$0xff]  }
 0x2bc   :  { %5981 = vmatpush1.bf16.msra.mxu1 %v8676_v23  ;;  %5939 = vmatprep.subr.bf16.mxu0 %v8681_v24  ;;  %v8762_v23 = vld [vmem:[#allocation5 + $0xfa4] ss:$24 sps:$4 sm:$0xff]   ;;  %v8765_v24 = vld [vmem:[#allocation5 + $0xc74] ss:$24 sps:$4 sm:$0xff]  }
 0x2bd   :  { %5982 = vmatprep.subr.bf16.mxu1 %v8684_v25  ;;  %v8768_v25 = vld [vmem:[#allocation5 + $0xf74] ss:$24 sps:$4 sm:$0xff]  }
 0x2bf   :  { %5940 = vmatpush1.bf16.msra.mxu0 %v8679_v26  ;;  %v8763_v26 = vld [vmem:[#allocation5 + $0xc70] ss:$24 sps:$4 sm:$0xff]  }
 0x2c0   :  { %5983 = vmatpush1.bf16.msra.mxu1 %v8682_v27  ;;  %5941 = vmatprep.subr.bf16.mxu0 %v8687_v30  ;;  %v8766_v27 = vld [vmem:[#allocation5 + $0xf70] ss:$24 sps:$4 sm:$0xff]   ;;  %v8771_v30 = vld [vmem:[#allocation5 + $0xc44] ss:$24 sps:$4 sm:$0xff]  }
 0x2c1   :  { %5984 = vmatprep.subr.bf16.mxu1 %v8690_v32  ;;  %v8774_v32 = vld [vmem:[#allocation5 + $0xf44] ss:$24 sps:$4 sm:$0xff]  }
 0x2c3   :  { %5942 = vmatpush2.bf16.msra.mxu0 %v8685_v33  ;;  %v9265_v33 = vpop.f32.mrf.mxu0 }
 0x2c4   :  { %5985 = vmatpush2.bf16.msra.mxu1 %v8688_v34  ;;  %5943 = vmatprep.subr.bf16.mxu0 %v8693_v35  ;;  %v8769_v34 = vld [vmem:[#allocation5 + $0xc40] ss:$24 sps:$4 sm:$0xff]  }
 0x2c5   :  { %5986 = vmatprep.subr.bf16.mxu1 %v8696_v36  ;;  %v8772_v35 = vld [vmem:[#allocation5 + $0xf40] ss:$24 sps:$4 sm:$0xff]   ;;  %v8777_v36 = vld [vmem:[#allocation5 + $0xc14] ss:$24 sps:$4 sm:$0xff]  }
 0x2c7   :  { %5944 = vmatpush2.bf16.msra.mxu0 %v8691_v37  ;;  %v8780_v37 = vld [vmem:[#allocation5 + $0xf14] ss:$24 sps:$4 sm:$0xff]  }
 0x2c8   :  { %5987 = vmatpush2.bf16.msra.mxu1 %v8694_v38  ;;  %5945 = vmatprep.subr.bf16.mxu0 %v8699_v39  ;;  %v9267_v38 = vpop.f32.mrf.mxu0  ;;  %v9269_v39 = vpop.f32.mrf.mxu1 }
 0x2c9   :  { %5988 = vmatprep.subr.bf16.mxu1 %v8702_v41  ;;  %v8775_v41 = vld [vmem:[#allocation5 + $0xc10] ss:$24 sps:$4 sm:$0xff]  }
 0x2cb   :  { %5946 = vmatpush2.bf16.msra.mxu0 %v8697_v42  ;;  %v8778_v42 = vld [vmem:[#allocation5 + $0xf10] ss:$24 sps:$4 sm:$0xff]  }
 0x2cc   :  { %5989 = vmatpush2.bf16.msra.mxu1 %v8700_v43  ;;  %5947 = vmatprep.subr.bf16.mxu0 %v8705_v45  ;;  %v8783_v43 = vld [vmem:[#allocation5 + $0xee4] ss:$24 sps:$4 sm:$0xff]  }
 0x2cd   :  { %5990 = vmatprep.subr.bf16.mxu1 %v8708_v48  ;;  %v8786_v45 = vld [vmem:[#allocation5 + $0x11e4] ss:$24 sps:$4 sm:$0xff]   ;;  %v9271_v48 = vpop.f32.mrf.mxu0 }
 0x2cf   :  { %5948 = vmatpush2.bf16.msra.mxu0 %v8703_v49  ;;  %v9273_v49 = vpop.f32.mrf.mxu1 }
 0x2d0   :  { %5991 = vmatpush2.bf16.msra.mxu1 %v8706_v51  ;;  %5949 = vmatprep.subr.bf16.mxu0 %v8711_v52  ;;  %v8781_v51 = vld [vmem:[#allocation5 + $0xee0] ss:$24 sps:$4 sm:$0xff]  }
 0x2d1   :  { %5992 = vmatprep.subr.bf16.mxu1 %v8714_v53  ;;  %v8784_v52 = vld [vmem:[#allocation5 + $0x11e0] ss:$24 sps:$4 sm:$0xff]   ;;  %v8789_v53 = vld [vmem:[#allocation5 + $0xeb4] ss:$24 sps:$4 sm:$0xff]  }
 0x2d3   :  { %5950 = vmatpush2.bf16.msra.mxu0 %v8709_v54  ;;  %v8792_v54 = vld [vmem:[#allocation5 + $0x11b4] ss:$24 sps:$4 sm:$0xff]  }
 0x2d4   :  { %5993 = vmatpush2.bf16.msra.mxu1 %v8712_v56  ;;  %5951 = vmatprep.subr.bf16.mxu0 %v8717_v57  ;;  %v9275_v56 = vpop.f32.mrf.mxu0  ;;  %v9277_v57 = vpop.f32.mrf.mxu1 }
 0x2d5   :  { %5994 = vmatprep.subr.bf16.mxu1 %v8720_v60  ;;  %v8787_v60 = vld [vmem:[#allocation5 + $0xeb0] ss:$24 sps:$4 sm:$0xff]  }
 0x2d7   :  { %5952 = vmatpush2.bf16.msra.mxu0 %v8715_v50  ;;  %v8790_v50 = vld [vmem:[#allocation5 + $0x11b0] ss:$24 sps:$4 sm:$0xff]  }
 0x2d8   :  { %5995 = vmatpush2.bf16.msra.mxu1 %v8718_v55  ;;  %5953 = vmatprep.subr.bf16.mxu0 %v8723_v61  ;;  %v9279_v55 = vpop.f32.mrf.mxu0  ;;  %v8795_v61 = vld [vmem:[#allocation5 + $0xe84] ss:$24 sps:$4 sm:$0xff]  }
 0x2d9   :  { %5996 = vmatprep.subr.bf16.mxu1 %v8726_v62  ;;  %v8798_v62 = vld [vmem:[#allocation5 + $0x1184] ss:$24 sps:$4 sm:$0xff]  }
 0x2db   :  { %5954 = vmatpush2.bf16.msra.mxu0 %v8721_v63  ;;  %v9281_v63 = vpop.f32.mrf.mxu1 }
 0x2dc   :  { %5997 = vmatpush2.bf16.msra.mxu1 %v8724_v2  ;;  %5955 = vmatprep.subr.bf16.mxu0 %v8729_v4  ;;  %v8793_v2 = vld [vmem:[#allocation5 + $0xe80] ss:$24 sps:$4 sm:$0xff]  }
 0x2dd   :  { %5998 = vmatprep.subr.bf16.mxu1 %v8732_v5  ;;  %v8796_v4 = vld [vmem:[#allocation5 + $0x1180] ss:$24 sps:$4 sm:$0xff]   ;;  %v9283_v5 = vpop.f32.mrf.mxu0 }
 0x2df   :  { %5956 = vmatpush2.bf16.msra.mxu0 %v8727_v6  ;;  %v9285_v6 = vpop.f32.mrf.mxu1 }
 0x2e0   :  { %5999 = vmatpush2.bf16.msra.mxu1 %v8730_v7  ;;  %6011 = vmatprep.subr.bf16.mxu0 %v8735_v12  ;;  %v8801_v7 = vld [vmem:[#allocation5 + $0xe54] ss:$24 sps:$4 sm:$0xff]  }
 0x2e1   :  { %6054 = vmatprep.subr.bf16.mxu1 %v8738_v15  ;;  %v8804_v12 = vld [vmem:[#allocation5 + $0x1154] ss:$24 sps:$4 sm:$0xff]   ;;  %v8799_v15 = vld [vmem:[#allocation5 + $0xe50] ss:$24 sps:$4 sm:$0xff]  }
 0x2e2   :  { %5958 = vmatmul.mubr.bf16.vlgmr.msra.gmra.mxu0 %v9203_v28  ;;  %v8753_v28 = vld [vmem:[#allocation5 + $0xcd4] ss:$24 sps:$4 sm:$0xff]  }
 0x2e3   :  { %6001 = vmatmul.mubr.bf16.vlgmr.msra.gmra.mxu1 %v9205_v31  ;;  %6012 = vmatpush1.bf16.msra.mxu0 %v8733_v8  ;;  %v8756_v31 = vld [vmem:[#allocation5 + $0xfd4] ss:$24 sps:$4 sm:$0xff]   ;;  %v8802_v8 = vld [vmem:[#allocation5 + $0x1150] ss:$24 sps:$4 sm:$0xff]  }
 0x2e4   :  { %6055 = vmatpush1.bf16.msra.mxu1 %v8736_v9  ;;  %6013 = vmatprep.subr.bf16.mxu0 %v8741_v10  ;;  %v9287_v9 = vpop.f32.mrf.mxu0  ;;  %v9289_v10 = vpop.f32.mrf.mxu1 }
 0x2e5   :  { %6056 = vmatprep.subr.bf16.mxu1 %v8744_v11  ;;  %6043 = vmatprep.mubr.bf16.mxu0 %v9209_v40  ;;  %v8757_v40 = vld [vmem:[#allocation5 + $0xca0] ss:$24 sps:$4 sm:$0xff]   ;;  %v8807_v11 = vld [vmem:[#allocation5 + $0xe24] ss:$24 sps:$4 sm:$0xff]  }
 0x2e6   :  { %6086 = vmatprep.mubr.bf16.mxu1 %v9211_v46  ;;  %v8760_v46 = vld [vmem:[#allocation5 + $0xfa0] ss:$24 sps:$4 sm:$0xff]  }
 0x2e7   :  { %6014 = vmatpush1.bf16.msra.mxu0 %v8739_v44  ;;  %v8810_v44 = vld [vmem:[#allocation5 + $0x1124] ss:$24 sps:$4 sm:$0xff]  }
 0x2e8   :  { %6057 = vmatpush1.bf16.msra.mxu1 %v8742_v47  ;;  %6015 = vmatprep.subr.bf16.mxu0 %v8747_v13  ;;  %v8805_v47 = vld [vmem:[#allocation5 + $0xe20] ss:$24 sps:$4 sm:$0xff]  }
 0x2e9   :  { %6058 = vmatprep.subr.bf16.mxu1 %v8750_v14  ;;  %v8808_v13 = vld [vmem:[#allocation5 + $0x1120] ss:$24 sps:$4 sm:$0xff]   ;;  %v9291_v14 = vpop.f32.mrf.mxu0 }
 0x2eb   :  { %6016 = vmatpush1.bf16.msra.mxu0 %v8745_v16  ;;  %v9293_v16 = vpop.f32.mrf.mxu1 }
 0x2ec   :  { %6059 = vmatpush1.bf16.msra.mxu1 %v8748_v17  ;;  %6017 = vmatprep.subr.bf16.mxu0 %v8753_v28  ;;  %v8813_v17 = vld [vmem:[#allocation5 + $0xdf4] ss:$24 sps:$4 sm:$0xff]  }
 0x2ed   :  { %6060 = vmatprep.subr.bf16.mxu1 %v8756_v31  ;;  %v8816_v28 = vld [vmem:[#allocation5 + $0x10f4] ss:$24 sps:$4 sm:$0xff]   ;;  %v9295_v31 = vpop.f32.mrf.mxu0 }
 0x2ef   :  { %6018 = vmatpush1.bf16.msra.mxu0 %v8751_v19  ;;  %v8811_v19 = vld [vmem:[#allocation5 + $0xdf0] ss:$24 sps:$4 sm:$0xff]  }
 0x2f0   :  { %6061 = vmatpush1.bf16.msra.mxu1 %v8754_v21  ;;  %6019 = vmatprep.subr.bf16.mxu0 %v8759_v22  ;;  %v8814_v21 = vld [vmem:[#allocation5 + $0x10f0] ss:$24 sps:$4 sm:$0xff]   ;;  %v9297_v22 = vpop.f32.mrf.mxu1 }
 0x2f1   :  { %6062 = vmatprep.subr.bf16.mxu1 %v8762_v23  ;;  %v8819_v23 = vld [vmem:[#allocation5 + $0xdc4] ss:$24 sps:$4 sm:$0xff]  }
 0x2f3   :  { %6020 = vmatpush1.bf16.msra.mxu0 %v8757_v40  ;;  %v8822_v40 = vld [vmem:[#allocation5 + $0x10c4] ss:$24 sps:$4 sm:$0xff]  }
 0x2f4   :  { %6063 = vmatpush1.bf16.msra.mxu1 %v8760_v46  ;;  %6021 = vmatprep.subr.bf16.mxu0 %v8765_v24  ;;  %v9299_v46 = vpop.f32.mrf.mxu0  ;;  %v9301_v24 = vpop.f32.mrf.mxu1 }
 0x2f5   :  { %6064 = vmatprep.subr.bf16.mxu1 %v8768_v25  ;;  %v8817_v25 = vld [vmem:[#allocation5 + $0xdc0] ss:$24 sps:$4 sm:$0xff]  }
 0x2f7   :  { %6022 = vmatpush1.bf16.msra.mxu0 %v8763_v26  ;;  %v8820_v26 = vld [vmem:[#allocation5 + $0x10c0] ss:$24 sps:$4 sm:$0xff]  }
 0x2f8   :  { %6065 = vmatpush1.bf16.msra.mxu1 %v8766_v27  ;;  %6023 = vmatprep.subr.bf16.mxu0 %v8771_v30  ;;  %v8825_v27 = vld [vmem:[#allocation5 + $0xd94] ss:$24 sps:$4 sm:$0xff]  }
 0x2f9   :  { %6066 = vmatprep.subr.bf16.mxu1 %v8774_v32  ;;  %v8828_v30 = vld [vmem:[#allocation5 + $0x1094] ss:$24 sps:$4 sm:$0xff]   ;;  %v9303_v32 = vpop.f32.mrf.mxu0 }
 0x2fb   :  { %6024 = vmatpush1.bf16.msra.mxu0 %v8769_v34  ;;  %v9305_v34 = vpop.f32.mrf.mxu1 }
 0x2fc   :  { %6067 = vmatpush1.bf16.msra.mxu1 %v8772_v35  ;;  %6025 = vmatprep.subr.bf16.mxu0 %v8777_v36  ;;  %v8823_v35 = vld [vmem:[#allocation5 + $0xd90] ss:$24 sps:$4 sm:$0xff]  }
 0x2fd   :  { %6068 = vmatprep.subr.bf16.mxu1 %v8780_v37  ;;  %v8826_v36 = vld [vmem:[#allocation5 + $0x1090] ss:$24 sps:$4 sm:$0xff]   ;;  %v8831_v37 = vld [vmem:[#allocation5 + $0x1364] ss:$24 sps:$4 sm:$0xff]  }
 0x2ff   :  { %6026 = vmatpush1.bf16.msra.mxu0 %v8775_v41  ;;  %v8834_v41 = vld [vmem:[#allocation5 + $0x1664] ss:$24 sps:$4 sm:$0xff]  }
 0x300   :  { %6069 = vmatpush1.bf16.msra.mxu1 %v8778_v42  ;;  %6027 = vmatprep.subr.bf16.mxu0 %v8783_v43  ;;  %v9307_v42 = vpop.f32.mrf.mxu0  ;;  %v9309_v43 = vpop.f32.mrf.mxu1 }
 0x301   :  { %6070 = vmatprep.subr.bf16.mxu1 %v8786_v45  ;;  %v8829_v45 = vld [vmem:[#allocation5 + $0x1360] ss:$24 sps:$4 sm:$0xff]  }
 0x303   :  { %6028 = vmatpush2.bf16.msra.mxu0 %v8781_v51  ;;  %v8832_v51 = vld [vmem:[#allocation5 + $0x1660] ss:$24 sps:$4 sm:$0xff]  }
 0x304   :  { %6071 = vmatpush2.bf16.msra.mxu1 %v8784_v52  ;;  %6029 = vmatprep.subr.bf16.mxu0 %v8789_v53  ;;  %v9311_v52 = vpop.f32.mrf.mxu0  ;;  %v8837_v53 = vld [vmem:[#allocation5 + $0x1334] ss:$24 sps:$4 sm:$0xff]  }
 0x305   :  { %6072 = vmatprep.subr.bf16.mxu1 %v8792_v54  ;;  %v8840_v54 = vld [vmem:[#allocation5 + $0x1634] ss:$24 sps:$4 sm:$0xff]  }
 0x307   :  { %6030 = vmatpush2.bf16.msra.mxu0 %v8787_v60  ;;  %v9313_v60 = vpop.f32.mrf.mxu1 }
 0x308   :  { %6073 = vmatpush2.bf16.msra.mxu1 %v8790_v50  ;;  %6031 = vmatprep.subr.bf16.mxu0 %v8795_v61  ;;  %v8835_v50 = vld [vmem:[#allocation5 + $0x1330] ss:$24 sps:$4 sm:$0xff]  }
 0x309   :  { %6074 = vmatprep.subr.bf16.mxu1 %v8798_v62  ;;  %v8838_v61 = vld [vmem:[#allocation5 + $0x1630] ss:$24 sps:$4 sm:$0xff]   ;;  %v9317_v62 = vpop.f32.mrf.mxu0 }
 0x30b   :  { %6032 = vmatpush2.bf16.msra.mxu0 %v8793_v2  ;;  %v9319_v2 = vpop.f32.mrf.mxu1 }
 0x30c   :  { %6075 = vmatpush2.bf16.msra.mxu1 %v8796_v4  ;;  %6033 = vmatprep.subr.bf16.mxu0 %v8801_v7  ;;  %v8843_v4 = vld [vmem:[#allocation5 + $0x1304] ss:$24 sps:$4 sm:$0xff]  }
 0x30d   :  { %6076 = vmatprep.subr.bf16.mxu1 %v8804_v12  ;;  %v8846_v7 = vld [vmem:[#allocation5 + $0x1604] ss:$24 sps:$4 sm:$0xff]   ;;  %v9323_v12 = vpop.f32.mrf.mxu0 }
 0x30f   :  { %6034 = vmatpush2.bf16.msra.mxu0 %v8799_v15  ;;  %v9325_v15 = vpop.f32.mrf.mxu1 }
 0x310   :  { %6077 = vmatpush2.bf16.msra.mxu1 %v8802_v8  ;;  %6035 = vmatprep.subr.bf16.mxu0 %v8807_v11  ;;  %v8849_v8 = vld [vmem:[#allocation5 + $0x12d4] ss:$24 sps:$4 sm:$0xff]  }
 0x311   :  { %6078 = vmatprep.subr.bf16.mxu1 %v8810_v44  ;;  %v8852_v11 = vld [vmem:[#allocation5 + $0x15d4] ss:$24 sps:$4 sm:$0xff]   ;;  %v8847_v44 = vld [vmem:[#allocation5 + $0x12d0] ss:$24 sps:$4 sm:$0xff]  }
 0x313   :  { %6036 = vmatpush2.bf16.msra.mxu0 %v8805_v47  ;;  %v8850_v47 = vld [vmem:[#allocation5 + $0x15d0] ss:$24 sps:$4 sm:$0xff]  }
 0x314   :  { %6079 = vmatpush2.bf16.msra.mxu1 %v8808_v13  ;;  %6037 = vmatprep.subr.bf16.mxu0 %v8813_v17  ;;  %v9327_v13 = vpop.f32.mrf.mxu0  ;;  %v8858_v17 = vld [vmem:[#allocation5 + $0x15a4] ss:$24 sps:$4 sm:$0xff]  }
 0x315   :  { %6080 = vmatprep.subr.bf16.mxu1 %v8816_v28 }
 0x316   :  { %v9331_v28 = vpop.f32.mrf.mxu0 }
 0x317   :  { %6038 = vmatpush2.bf16.msra.mxu0 %v8811_v19  ;;  %v8853_v19 = vld [vmem:[#allocation5 + $0x12a0] ss:$24 sps:$4 sm:$0xff]  }
 0x318   :  { %6081 = vmatpush2.bf16.msra.mxu1 %v8814_v21  ;;  %6039 = vmatprep.subr.bf16.mxu0 %v8819_v23  ;;  %v8856_v21 = vld [vmem:[#allocation5 + $0x15a0] ss:$24 sps:$4 sm:$0xff]  }
 0x319   :  { %6082 = vmatprep.subr.bf16.mxu1 %v8822_v40  ;;  %v8861_v40 = vld [vmem:[#allocation5 + $0x1274] ss:$24 sps:$4 sm:$0xff]  }
 0x31b   :  { %6040 = vmatpush2.bf16.msra.mxu0 %v8817_v25  ;;  %v8864_v25 = vld [vmem:[#allocation5 + $0x1574] ss:$24 sps:$4 sm:$0xff]  }
 0x31c   :  { %6083 = vmatpush2.bf16.msra.mxu1 %v8820_v26  ;;  %6041 = vmatprep.subr.bf16.mxu0 %v8825_v27  ;;  %v9335_v26 = vpop.f32.mrf.mxu0 }
 0x31d   :  { %6084 = vmatprep.subr.bf16.mxu1 %v8828_v30  ;;  %v8859_v30 = vld [vmem:[#allocation5 + $0x1270] ss:$24 sps:$4 sm:$0xff]  }
 0x31f   :  { %6042 = vmatpush2.bf16.msra.mxu0 %v8823_v35  ;;  %v8862_v35 = vld [vmem:[#allocation5 + $0x1570] ss:$24 sps:$4 sm:$0xff]  }
 0x320   :  { %6085 = vmatpush2.bf16.msra.mxu1 %v8826_v36  ;;  %6097 = vmatprep.subr.bf16.mxu0 %v8831_v37  ;;  %v955_v36 = vlaneseq  ;;  %v8867_v37 = vld [vmem:[#allocation5 + $0x1244] ss:$24 sps:$4 sm:$0xff]  }
 0x321   :  { %6140 = vmatprep.subr.bf16.mxu1 %v8834_v41  ;;  %v8870_v41 = vld [vmem:[#allocation5 + $0x1544] ss:$24 sps:$4 sm:$0xff]  }
 0x322   :  { %6044 = vmatmul.mubr.bf16.vlgmr.msra.gmra.mxu0 %v9215_v58  ;;  %v8841_v58 = vld [vmem:[#allocation5 + $0x1300] ss:$24 sps:$4 sm:$0xff]  }
 0x323   :  { %6087 = vmatmul.mubr.bf16.vlgmr.msra.gmra.mxu1 %v9217_v59  ;;  %6098 = vmatpush1.bf16.msra.mxu0 %v8829_v45  ;;  %v8844_v59 = vld [vmem:[#allocation5 + $0x1600] ss:$24 sps:$4 sm:$0xff]   ;;  %v9339_v45 = vpop.f32.mrf.mxu0 }
 0x324   :  { %6141 = vmatpush1.bf16.msra.mxu1 %v8832_v51  ;;  %6099 = vmatprep.subr.bf16.mxu0 %v8837_v53  ;;  %v8865_v53 = vld [vmem:[#allocation5 + $0x1240] ss:$24 sps:$4 sm:$0xff]  }
 0x325   :  { %6142 = vmatprep.subr.bf16.mxu1 %v8840_v54  ;;  %6129 = vmatprep.mubr.bf16.mxu0 %v9219_v0  ;;  %v9329_v0 = vpop.f32.mrf.mxu1  ;;  %v8868_v54 = vld [vmem:[#allocation5 + $0x1540] ss:$24 sps:$4 sm:$0xff]  }
 0x326   :  { %6172 = vmatprep.mubr.bf16.mxu1 %v9221_v1  ;;  %v8855_v1 = vld [vmem:[#allocation5 + $0x12a4] ss:$24 sps:$4 sm:$0xff]  }
 0x327   :  { %6100 = vmatpush1.bf16.msra.mxu0 %v8835_v50  ;;  %v9333_v23 = vpop.f32.mrf.mxu1  ;;  %v9343_v50 = vshrl.u32 %v955_v36, 7  ;;  %v8885_v36 = vld [vmem:[#allocation5 + $0x14b4] ss:$24 sps:$4 sm:$0xff]  }
 0x328   :  { %6143 = vmatpush1.bf16.msra.mxu1 %v8838_v61  ;;  %6101 = vmatprep.subr.bf16.mxu0 %v8843_v4  ;;  %v8873_v61 = vld [vmem:[#allocation5 + $0x1214] ss:$24 sps:$4 sm:$0xff]  }
 0x329   :  { %6144 = vmatprep.subr.bf16.mxu1 %v8846_v7  ;;  %v9337_v27 = vpop.f32.mrf.mxu1  ;;  %v8876_v4 = vld [vmem:[#allocation5 + $0x1514] ss:$24 sps:$4 sm:$0xff]   ;;  %v9345_v7 = vpop.f32.mrf.mxu0 }
 0x32b   :  { %6102 = vmatpush1.bf16.msra.mxu0 %v8841_v58  ;;  %v9341_v51 = vpop.f32.mrf.mxu1 }
 0x32c   :  { %6145 = vmatpush1.bf16.msra.mxu1 %v8844_v59  ;;  %6103 = vmatprep.subr.bf16.mxu0 %v8849_v8  ;;  %v8871_v59 = vld [vmem:[#allocation5 + $0x1210] ss:$24 sps:$4 sm:$0xff]  }
 0x32d   :  { %6146 = vmatprep.subr.bf16.mxu1 %v8852_v11  ;;  %v9347_v58 = vpop.f32.mrf.mxu1  ;;  %v8874_v8 = vld [vmem:[#allocation5 + $0x1510] ss:$24 sps:$4 sm:$0xff]   ;;  %v961_v11 = vsub.s32 1, %v9343_v50 }
 0x32f   :  { %6104 = vmatpush1.bf16.msra.mxu0 %v8847_v44  ;;  %v9350_v44 = vpop.f32.mrf.mxu0 }
 0x330   :  { %6147 = vmatpush1.bf16.msra.mxu1 %v8850_v47  ;;  %6105 = vmatprep.subr.bf16.mxu0 %v8855_v1  ;;  %v8879_v47 = vld [vmem:[#allocation5 + $0x14e4] ss:$24 sps:$4 sm:$0xff]  }
 0x331   :  { %6148 = vmatprep.subr.bf16.mxu1 %v8858_v17  ;;  %v8882_v1 = vld [vmem:[#allocation5 + $0x17e4] ss:$24 sps:$4 sm:$0xff]  }
 0x332   :  { %v9352_v17 = vld [vmem:[#allocation7] sm:$0x3f] }
 0x333   :  { %6106 = vmatpush1.bf16.msra.mxu0 %v8853_v19  ;;  %v9354_v19 = vpop.f32.mrf.mxu1 }
 0x334   :  { %6149 = vmatpush1.bf16.msra.mxu1 %v8856_v21  ;;  %6107 = vmatprep.subr.bf16.mxu0 %v8861_v40  ;;  %v8877_v21 = vld [vmem:[#allocation5 + $0x14e0] ss:$24 sps:$4 sm:$0xff]  }
 0x335   :  { %6150 = vmatprep.subr.bf16.mxu1 %v8864_v25  ;;  %v8880_v40 = vld [vmem:[#allocation5 + $0x17e0] ss:$24 sps:$4 sm:$0xff]   ;;  %v962_v25 = vrot.slane %v9352_v17, %v961_v11  ;;  %v8894_v11 = vld [vmem:[#allocation5 + $0x1784] ss:$24 sps:$4 sm:$0xff]  }
 0x337   :  { %6108 = vmatpush1.bf16.msra.mxu0 %v8859_v30  ;;  %v9357_v30 = vpop.f32.mrf.mxu0 }
 0x338   :  { %6151 = vmatpush1.bf16.msra.mxu1 %v8862_v35  ;;  %6109 = vmatprep.subr.bf16.mxu0 %v8867_v37  ;;  %v9359_v35 = vpop.f32.mrf.mxu1  ;;  %v8888_v37 = vld [vmem:[#allocation5 + $0x17b4] ss:$24 sps:$4 sm:$0xff]  }
 0x339   :  { %6152 = vmatprep.subr.bf16.mxu1 %v8870_v41  ;;  %9497 = vst [vmem:[#allocation16_spill] sm:$0xff] %v9359_v35  ;;  %v5106_v41 = vadd.f32 %v9275_v56, %v962_v25  ;;  %v8892_v56 = vld [vmem:[#allocation5 + $0x1780] ss:$24 sps:$4 sm:$0xff]  }
 0x33b   :  { %6110 = vmatpush1.bf16.msra.mxu0 %v8865_v53  ;;  %v8883_v53 = vld [vmem:[#allocation5 + $0x14b0] ss:$24 sps:$4 sm:$0xff]  }
 0x33c   :  { %6153 = vmatpush1.bf16.msra.mxu1 %v8868_v54  ;;  %6111 = vmatprep.subr.bf16.mxu0 %v8873_v61  ;;  %v8886_v54 = vld [vmem:[#allocation5 + $0x17b0] ss:$24 sps:$4 sm:$0xff]   ;;  %v5102_v61 = vadd.f32 %v9267_v38, %v962_v25  ;;  %v8897_v25 = vld [vmem:[#allocation5 + $0x1454] ss:$24 sps:$4 sm:$0xff]  }
 0x33d   :  { %6154 = vmatprep.subr.bf16.mxu1 %v8876_v4  ;;  %v9363_v4 = vpop.f32.mrf.mxu0 }
 0x33f   :  { %6112 = vmatpush1.bf16.msra.mxu0 %v8871_v59  ;;  %v9365_v59 = vpop.f32.mrf.mxu1  ;;  %v9370_v29 = vpop.f32.mrf.mxu0 }
 0x340   :  { %6155 = vmatpush1.bf16.msra.mxu1 %v8874_v8  ;;  %6113 = vmatprep.subr.bf16.mxu0 %v8879_v47  ;;  %v8891_v8 = vld [vmem:[#allocation5 + $0x1484] ss:$24 sps:$4 sm:$0xff]   ;;  %v5149_v47 = vadd.f32 %v9281_v63, %v5106_v41  ;;  %v8895_v63 = vld [vmem:[#allocation5 + $0x1450] ss:$24 sps:$4 sm:$0xff]  }
 0x341   :  { %6156 = vmatprep.subr.bf16.mxu1 %v8882_v1  ;;  %v8889_v1 = vld [vmem:[#allocation5 + $0x1480] ss:$24 sps:$4 sm:$0xff]   ;;  %v9372_v38 = vpop.f32.mrf.mxu1  ;;  %v9375_v35 = vpop.f32.mrf.mxu0  ;;  %v8898_v41 = vld [vmem:[#allocation5 + $0x1750] ss:$24 sps:$4 sm:$0xff]  }
 0x343   :  { %6114 = vmatpush2.bf16.msra.mxu0 %v8877_v21  ;;  %v5145_v21 = vadd.f32 %v9273_v49, %v5102_v61 }
 0x344   :  { %6157 = vmatpush2.bf16.msra.mxu1 %v8880_v40  ;;  %6115 = vmatprep.subr.bf16.mxu0 %v8885_v36  ;;  %v5192_v40 = vadd.f32 %v9291_v14, %v5149_v47  ;;  %v8900_v36 = vld [vmem:[#allocation5 + $0x1754] ss:$24 sps:$4 sm:$0xff]   ;;  %v8903_v14 = vld [vmem:[#allocation5 + $0x1424] ss:$24 sps:$4 sm:$0xff]   ;;  %v8901_v47 = vld [vmem:[#allocation5 + $0x1420] ss:$24 sps:$4 sm:$0xff]  }
 0x345   :  { %6158 = vmatprep.subr.bf16.mxu1 %v8888_v37  ;;  %v5188_v37 = vadd.f32 %v9283_v5, %v5145_v21  ;;  %v8912_v21 = vld [vmem:[#allocation5 + $0x16f4] ss:$24 sps:$4 sm:$0xff]  }
 0x346   :  { %v5235_v49 = vadd.f32 %v9297_v22, %v5192_v40 }
 0x347   :  { %6116 = vmatpush2.bf16.msra.mxu0 %v8883_v53  ;;  %v9378_v53 = vpop.f32.mrf.mxu1  ;;  %v5231_v61 = vadd.f32 %v9289_v10, %v5188_v37 }
 0x348   :  { %6159 = vmatpush2.bf16.msra.mxu1 %v8886_v54  ;;  %6117 = vmatprep.subr.bf16.mxu0 %v8891_v8  ;;  %v8906_v54 = vld [vmem:[#allocation5 + $0x1724] ss:$24 sps:$4 sm:$0xff]   ;;  %v5278_v8 = vadd.f32 %v9307_v42, %v5235_v49  ;;  %v8907_v42 = vld [vmem:[#allocation5 + $0x13f0] ss:$24 sps:$4 sm:$0xff]  }
 0x349   :  { %6160 = vmatprep.subr.bf16.mxu1 %v8894_v11  ;;  %v9382_v11 = vpop.f32.mrf.mxu0  ;;  %v9384_v5 = vpop.f32.mrf.mxu1  ;;  %v5274_v22 = vadd.f32 %v9299_v46, %v5231_v61  ;;  %v8915_v46 = vld [vmem:[#allocation5 + $0x13c4] ss:$24 sps:$4 sm:$0xff]   ;;  %v8916_v61 = vld [vmem:[#allocation5 + $0x16c0] ss:$24 sps:$4 sm:$0xff]  }
 0x34a   :  { %v5321_v40 = vadd.f32 %v9313_v60, %v5278_v8 }
 0x34b   :  { %6118 = vmatpush2.bf16.msra.mxu0 %v8889_v1  ;;  %v8904_v1 = vld [vmem:[#allocation5 + $0x1720] ss:$24 sps:$4 sm:$0xff]   ;;  %v9390_v10 = vpop.f32.mrf.mxu1  ;;  %v5317_v37 = vadd.f32 %v9305_v34, %v5274_v22  ;;  %v8921_v34 = vld [vmem:[#allocation5 + $0x1394] ss:$24 sps:$4 sm:$0xff]  }
 0x34c   :  { %6161 = vmatpush2.bf16.msra.mxu1 %v8892_v56  ;;  %6119 = vmatprep.subr.bf16.mxu0 %v8897_v25  ;;  %v8909_v56 = vld [vmem:[#allocation5 + $0x13f4] ss:$24 sps:$4 sm:$0xff]   ;;  %v9388_v25 = vpop.f32.mrf.mxu0 }
 0x34d   :  { %6162 = vmatprep.subr.bf16.mxu1 %v8900_v36  ;;  %v8910_v36 = vld [vmem:[#allocation5 + $0x16f0] ss:$24 sps:$4 sm:$0xff]   ;;  %v5360_v49 = vadd.f32 %v9317_v62, %v5317_v37  ;;  %v9397_v60 = vpop.f32.mrf.mxu1  ;;  %v8927_v37 = vld [vmem:[#allocation5 + $0x1964] ss:$24 sps:$4 sm:$0xff]  }
 0x34f   :  { %6120 = vmatpush2.bf16.msra.mxu0 %v8895_v63  ;;  %v5364_v63 = vadd.f32 %v9327_v13, %v5321_v40  ;;  %v8924_v13 = vld [vmem:[#allocation5 + $0x1694] ss:$24 sps:$4 sm:$0xff]   ;;  %v5403_v62 = vadd.f32 %v9325_v15, %v5360_v49  ;;  %v8922_v40 = vld [vmem:[#allocation5 + $0x1690] ss:$24 sps:$4 sm:$0xff]   ;;  %v8929_v49 = vld [vmem:[#allocation8 + $0x38] sm:$0xff]  }
 0x350   :  { %6163 = vmatpush2.bf16.msra.mxu1 %v8898_v41  ;;  %6121 = vmatprep.subr.bf16.mxu0 %v8903_v14  ;;  %v8918_v41 = vld [vmem:[#allocation5 + $0x16c4] ss:$24 sps:$4 sm:$0xff]   ;;  %v9395_v14 = vpop.f32.mrf.mxu0 }
 0x351   :  { %6164 = vmatprep.subr.bf16.mxu1 %v8906_v54  ;;  %v8913_v54 = vld [vmem:[#allocation5 + $0x13c0] ss:$24 sps:$4 sm:$0xff]   ;;  %v5407_v8 = vadd.f32 %v9333_v23, %v5364_v63  ;;  %v5446_v23 = vadd.f32 %v9335_v26, %v5403_v62 }
 0x352   :  { %v8928_v63 = vld [vmem:[#allocation8 + $0x78] sm:$0xff]  }
 0x353   :  { %6122 = vmatpush2.bf16.msra.mxu0 %v8901_v47  ;;  %v9400_v47 = vpop.f32.mrf.mxu0  ;;  %v5450_v22 = vadd.f32 %v9345_v7, %v5407_v8  ;;  %v969_v7 = vsub.s32 3, %v9343_v50  ;;  %v6227_v26 = vmax.f32 %v5446_v23, 0.0 }
 0x354   :  { %6165 = vmatpush2.bf16.msra.mxu1 %v8904_v1  ;;  %6123 = vmatprep.subr.bf16.mxu0 %v8909_v56  ;;  %v957_v1 = vsub.s32 0, %v9343_v50  ;;  %v9405_v56 = vpop.f32.mrf.mxu1 }
 0x355   :  { %6166 = vmatprep.subr.bf16.mxu1 %v8912_v21  ;;  %v8919_v21 = vld [vmem:[#allocation5 + $0x1390] ss:$24 sps:$4 sm:$0xff]  }
 0x356   :  { %v958_v15 = vrot.slane %v9352_v17, %v957_v1 }
 0x357   :  { %6124 = vmatpush2.bf16.msra.mxu0 %v8907_v42  ;;  %v9408_v42 = vpop.f32.mrf.mxu0 }
 0x358   :  { %6167 = vmatpush2.bf16.msra.mxu1 %v8910_v36  ;;  %6125 = vmatprep.subr.bf16.mxu0 %v8915_v46  ;;  %v9410_v36 = vpop.f32.mrf.mxu1  ;;  %v6233_v46 = vmax.f32 %v5450_v22, 0.0  ;;  %v5100_v1 = vadd.f32 %v9265_v33, %v958_v15  ;;  %v970_v22 = vrot.slane %v9352_v17, %v969_v7  ;;  %v8938_v33 = vld [vmem:[#allocation8 + $0x68] sm:$0xff]  }
 0x359   :  { %6168 = vmatprep.subr.bf16.mxu1 %v8918_v41  ;;  %v8925_v41 = vld [vmem:[#allocation5 + $0x1960] ss:$24 sps:$4 sm:$0xff]  }
 0x35a   :  { %v9417_v8 = vpop.f32.mrf.mxu1  ;;  %v6239_v62 = vpack.c.bf16 %v6233_v46, %v6227_v26  ;;  %v5489_v7 = vadd.f32 %v9341_v51, %v970_v22 }
 0x35b   :  { %6126 = vmatpush2.bf16.msra.mxu0 %v8913_v54  ;;  %v5104_v54 = vadd.f32 %v9271_v48, %v958_v15  ;;  %v8930_v48 = vld [vmem:[#allocation5 + $0x1930] ss:$24 sps:$4 sm:$0xff]   ;;  %v9498_v15 = vmov 0  }
 0x35c   :  { %6169 = vmatpush2.bf16.msra.mxu1 %v8916_v61  ;;  %6127 = vmatprep.subr.bf16.mxu0 %v8921_v34  ;;  %v9415_v61 = vpop.f32.mrf.mxu0  ;;  %v8932_v34 = vld [vmem:[#allocation5 + $0x1934] ss:$24 sps:$4 sm:$0xff]   ;;  %v5532_v51 = vadd.f32 %v9357_v30, %v5489_v7 }
 0x35d   :  { %6170 = vmatprep.subr.bf16.mxu1 %v8924_v13  ;;  %v8933_v13 = vld [vmem:[#allocation8 + $0x70] sm:$0xff]  }
 0x35e   :  { %v5707_v23 = vpop.f32.mrf.mxu0  ;;  %v8953_v7 = vld [vmem:[#allocation8 + $0x50] sm:$0xff]  }
 0x35f   :  { %6128 = vmatpush2.bf16.msra.mxu0 %v8919_v21  ;;  %v8934_v21 = vld [vmem:[#allocation8 + $0x30] sm:$0xff]  }
 0x360   :  { %6171 = vmatpush2.bf16.msra.mxu1 %v8922_v40  ;;  %6183 = vmatprep.subr.bf16.mxu0 %v8927_v37  ;;  %v5147_v40 = vadd.f32 %v9277_v57, %v5104_v54  ;;  %v9424_v37 = vpop.f32.mrf.mxu1  ;;  %v9429_v46 = vpop.f32.mrf.mxu0  ;;  %v5493_v57 = vadd.f32 %v9354_v19, %v970_v22  ;;  %v8940_v22 = vld [vmem:[#allocation5 + $0x18d0] ss:$24 sps:$4 sm:$0xff]  }
 0x361   :  { %7644 = vmatprep.subr.bf16.mxu1 %v8928_v63  ;;  %v8937_v63 = vld [vmem:[#allocation5 + $0x1904] ss:$24 sps:$4 sm:$0xff]  }
 0x362   :  { %6130 = vmatmul.mubr.bf16.vlgmr.msra.gmra.mxu0 %v9227_v18  ;;  %v5143_v18 = vadd.f32 %v9269_v39, %v5100_v1  ;;  %v5750_v26 = vpop.f32.mrf.mxu1  ;;  %v5536_v39 = vadd.f32 %v9370_v29, %v5493_v57  ;;  %v5789_v1 = vpop.f32.mrf.mxu0  ;;  %v8947_v29 = vld [vmem:[#allocation5 + $0x18a4] ss:$24 sps:$4 sm:$0xff]  }
 0x363   :  { %6173 = vmatmul.mubr.bf16.vlgmr.msra.gmra.mxu1 %v9229_v20  ;;  %6184 = vmatpush1.bf16.msra.mxu0 %v8925_v41  ;;  %v5190_v20 = vadd.f32 %v9287_v9, %v5147_v40  ;;  %v8935_v41 = vld [vmem:[#allocation5 + $0x1900] ss:$24 sps:$4 sm:$0xff]  }
 0x364   :  { %7645 = vmatpush3.bf16.msra.mxu1 %v8929_v49  ;;  %6667 = vmatprep.mubr.bf16.mxu1 %v6239_v62  ;;  %v8939_v49 = vld [vmem:[#allocation8 + $0x28] sm:$0xff]   ;;  %v5186_v54 = vadd.f32 %v9279_v55, %v5143_v18  ;;  %v9436_v62 = vpop.f32.mrf.mxu1  ;;  %v5579_v19 = vadd.f32 %v9378_v53, %v5536_v39  ;;  %v8944_v55 = vld [vmem:[#allocation8 + $0x20] sm:$0xff]   ;;  %v8948_v40 = vld [vmem:[#allocation8 + $0x58] sm:$0xff]  }
 0x365   :  { %6185 = vmatprep.subr.bf16.mxu0 %v8932_v34  ;;  %7646 = vmatprep.subr.bf16.mxu1 %v8933_v13  ;;  %v8942_v34 = vld [vmem:[#allocation5 + $0x18d4] ss:$24 sps:$4 sm:$0xff]   ;;  %v5233_v9 = vadd.f32 %v9293_v16, %v5190_v20  ;;  %v5575_v16 = vadd.f32 %v9365_v59, %v5532_v51 }
 0x366   :  { %6215 = vmatprep.mubr.bf16.mxu0 %v9498_v15  ;;  %v8943_v13 = vld [vmem:[#allocation8 + $0x60] sm:$0xff]   ;;  %v5832_v53 = vpop.f32.mrf.mxu1 }
 0x367   :  { %6186 = vmatpush1.bf16.msra.mxu0 %v8930_v48  ;;  %v5229_v48 = vadd.f32 %v9285_v6, %v5186_v54  ;;  %v5618_v15 = vadd.f32 %v9382_v11, %v5575_v16  ;;  %v8945_v6 = vld [vmem:[#allocation5 + $0x18a0] ss:$24 sps:$4 sm:$0xff]   ;;  %v8952_v59 = vld [vmem:[#allocation5 + $0x1874] ss:$24 sps:$4 sm:$0xff]  }
 0x368   :  { %7647 = vmatpush3.bf16.msra.mxu1 %v8934_v21  ;;  %6187 = vmatprep.subr.bf16.mxu0 %v8937_v63  ;;  %v5276_v21 = vadd.f32 %v9303_v32, %v5233_v9  ;;  %v5622_v63 = vadd.f32 %v9395_v14, %v5579_v19  ;;  %v8949_v32 = vld [vmem:[#allocation8 + $0x18] sm:$0xff]  }
 0x369   :  { %7648 = vmatprep.subr.bf16.mxu1 %v8938_v33  ;;  %v5272_v30 = vadd.f32 %v9295_v31, %v5229_v48  ;;  %v9445_v33 = vpop.f32.mrf.mxu0  ;;  %v5661_v14 = vadd.f32 %v9390_v10, %v5618_v15  ;;  %v8957_v10 = vld [vmem:[#allocation5 + $0x1844] ss:$24 sps:$4 sm:$0xff]  }
 0x36a   :  { %v5665_v18 = vadd.f32 %v9405_v56, %v5622_v63  ;;  %v5319_v20 = vadd.f32 %v9309_v43, %v5276_v21  ;;  %v8950_v43 = vld [vmem:[#allocation5 + $0x1870] ss:$24 sps:$4 sm:$0xff]  }
 0x36b   :  { %6188 = vmatpush1.bf16.msra.mxu0 %v8935_v41  ;;  %v5315_v57 = vadd.f32 %v9301_v24, %v5272_v30  ;;  %v5793_v11 = vpop.f32.mrf.mxu0  ;;  %v5704_v56 = vadd.f32 %v9408_v42, %v5661_v14  ;;  %v8955_v42 = vld [vmem:[#allocation5 + $0x1840] ss:$24 sps:$4 sm:$0xff]  }
 0x36c   :  { %7649 = vmatpush3.bf16.msra.mxu1 %v8939_v49  ;;  %6189 = vmatprep.subr.bf16.mxu0 %v8942_v34  ;;  %v5708_v31 = vadd.f32 %v5707_v23, %v5665_v18  ;;  %v5362_v41 = vadd.f32 %v9323_v12, %v5319_v20  ;;  %v9453_v49 = vpop.f32.mrf.mxu1  ;;  %v8954_v34 = vld [vmem:[#allocation8 + $0x10] sm:$0xff]   ;;  %v8958_v23 = vld [vmem:[#allocation8 + $0x48] sm:$0xff]   ;;  %v8966_v30 = vld [vmem:[#allocation8 + $0xb8] sm:$0xff]  }
 0x36d   :  { %7650 = vmatprep.subr.bf16.mxu1 %v8943_v13  ;;  %v5358_v13 = vadd.f32 %v9311_v52, %v5315_v57  ;;  %v5747_v24 = vadd.f32 %v9417_v8, %v5704_v56  ;;  %v8962_v52 = vld [vmem:[#allocation5 + $0x1814] ss:$24 sps:$4 sm:$0xff]  }
 0x36e   :  { %v5751_v54 = vadd.f32 %v5750_v26, %v5708_v31  ;;  %v5405_v12 = vadd.f32 %v9329_v0, %v5362_v41  ;;  %v5836_v9 = vpop.f32.mrf.mxu1  ;;  %v8959_v26 = vld [vmem:[#allocation8 + $0x8] sm:$0xff]   ;;  %v8971_v31 = vld [vmem:[#allocation8 + $0xe0] sm:$0xff]  }
 0x36f   :  { %6190 = vmatpush1.bf16.msra.mxu0 %v8940_v22  ;;  %v5790_v51 = vadd.f32 %v5789_v1, %v5747_v24  ;;  %v5401_v19 = vadd.f32 %v9319_v2, %v5358_v13  ;;  %v8960_v0 = vld [vmem:[#allocation5 + $0x1810] ss:$24 sps:$4 sm:$0xff]  }
 0x370   :  { %7651 = vmatpush3.bf16.msra.mxu1 %v8944_v55  ;;  %6191 = vmatprep.subr.bf16.mxu0 %v8947_v29  ;;  %v5794_v39 = vadd.f32 %v5793_v11, %v5751_v54  ;;  %v5448_v22 = vadd.f32 %v9339_v45, %v5405_v12  ;;  %v8963_v55 = vld [vmem:[#allocation8 + $0x40] sm:$0xff]   ;;  %v965_v45 = vsub.s32 2, %v9343_v50  ;;  %v9499_v11 = vld [vmem:[#allocation16_spill] sm:$0xff] }
 0x371   :  { %7652 = vmatprep.subr.bf16.mxu1 %v8948_v40  ;;  %v5444_v8 = vadd.f32 %v9331_v28, %v5401_v19  ;;  %v5833_v21 = vadd.f32 %v5832_v53, %v5790_v51  ;;  %v8964_v1 = vld [vmem:[#allocation8] sm:$0xff]   ;;  %v8965_v40 = vld [vmem:[#allocation8 + $0xf8] sm:$0xff]   ;;  %v8967_v28 = vld [vmem:[#allocation8 + $0xf0] sm:$0xff]  }
 0x372   :  { %v5837_v48 = vadd.f32 %v5836_v9, %v5794_v39  ;;  %v6232_v29 = vmax.f32 %v5448_v22, 0.0  ;;  %v966_v18 = vrot.slane %v9352_v17, %v965_v45  ;;  %v8972_v41 = vld [vmem:[#allocation8 + $0xa0] sm:$0xff]   ;;  %v8982_v51 = vld [vmem:[#allocation8 + $0x138] sm:$0xff]  }
 0x373   :  { %6192 = vmatpush1.bf16.msra.mxu0 %v8945_v6  ;;  %v6226_v2 = vmax.f32 %v5444_v8, 0.0  ;;  %v6229_v63 = vmax.f32 %v5833_v21, 0.0  ;;  %v8968_v6 = vld [vmem:[#allocation8 + $0xb0] sm:$0xff]   ;;  %v8979_v39 = vld [vmem:[#allocation8 + $0xc0] sm:$0xff]   ;;  %v8989_v22 = vld [vmem:[#allocation8 + $0x158] sm:$0xff]  }
 0x374   :  { %7653 = vmatpush3.bf16.msra.mxu1 %v8949_v32  ;;  %6193 = vmatprep.subr.bf16.mxu0 %v8952_v59  ;;  %v6235_v16 = vmax.f32 %v5837_v48, 0.0  ;;  %v8969_v32 = vld [vmem:[#allocation8 + $0xe8] sm:$0xff]   ;;  %v5487_v20 = vadd.f32 %v9337_v27, %v966_v18  ;;  %v5491_v59 = vadd.f32 %v9347_v58, %v966_v18  ;;  %v8973_v27 = vld [vmem:[#allocation8 + $0xd8] sm:$0xff]   ;;  %v8988_v19 = vld [vmem:[#allocation8 + $0x120] sm:$0xff]  }
 0x375   :  { %7654 = vmatprep.subr.bf16.mxu1 %v8953_v7  ;;  %v6238_v15 = vpack.c.bf16 %v6232_v29, %v6226_v2  ;;  %v8970_v7 = vld [vmem:[#allocation8 + $0xa8] sm:$0xff]   ;;  %v8992_v48 = vld [vmem:[#allocation8 + $0x110] sm:$0xff]   ;;  %v5873_v29 = vpop.f32.mrf.mxu0 }
 0x376   :  { %v6241_v53 = vpack.c.bf16 %v6235_v16, %v6229_v63  ;;  %v5534_v14 = vadd.f32 %v9363_v4, %v5491_v59  ;;  %v5530_v57 = vadd.f32 %v9350_v44, %v5487_v20  ;;  %v8974_v4 = vld [vmem:[#allocation8 + $0x98] sm:$0xff]   ;;  %v8993_v8 = vld [vmem:[#allocation8 + $0x148] sm:$0xff]   ;;  %v5916_v16 = vpop.f32.mrf.mxu1 }
 0x377   :  { %6194 = vmatpush1.bf16.msra.mxu0 %v8950_v43  ;;  %v8994_v21 = vld [vmem:[#allocation8 + $0x108] sm:$0xff]  }
 0x378   :  { %7655 = vmatpush3.bf16.msra.mxu1 %v8954_v34  ;;  %6195 = vmatprep.subr.bf16.mxu0 %v8957_v10  ;;  %v5573_v56 = vadd.f32 %v9499_v11, %v5530_v57  ;;  %v5918_v45 = vpop.f32.mrf.mxu1 }
 0x379   :  { %7656 = vmatprep.subr.bf16.mxu1 %v8958_v23 }
 0x37a   :  { %v5616_v58 = vadd.f32 %v9375_v35, %v5573_v56 }
 0x37b   :  { %6196 = vmatpush1.bf16.msra.mxu0 %v8955_v42  ;;  %v8983_v42 = vld [vmem:[#allocation8 + $0x170] sm:$0xff]  }
 0x37c   :  { %7657 = vmatpush3.bf16.msra.mxu1 %v8959_v26  ;;  %6197 = vmatprep.subr.bf16.mxu0 %v8962_v52  ;;  %v5659_v34 = vadd.f32 %v9384_v5, %v5616_v58  ;;  %v8978_v5 = vld [vmem:[#allocation8 + $0x88] sm:$0xff]   ;;  %v8990_v52 = vld [vmem:[#allocation8 + $0x118] sm:$0xff]  }
 0x37d   :  { %7658 = vmatprep.subr.bf16.mxu1 %v8963_v55  ;;  %v8986_v26 = vld [vmem:[#allocation8 + $0x128] sm:$0xff]   ;;  %v8991_v55 = vld [vmem:[#allocation8 + $0x150] sm:$0xff]  }
 0x37e   :  { %v5702_v13 = vadd.f32 %v9400_v47, %v5659_v34 }
 0x37f   :  { %6198 = vmatpush1.bf16.msra.mxu0 %v8960_v0  ;;  %v8995_v0 = vld [vmem:[#allocation8 + $0x140] sm:$0xff]  }
 0x380   :  { %7659 = vmatpush3.bf16.msra.mxu1 %v8964_v1  ;;  %7666 = vmatprep.subr.bf16.mxu0 %v8965_v40  ;;  %v5745_v23 = vadd.f32 %v9410_v36, %v5702_v13  ;;  %v8996_v1 = vld [vmem:[#allocation8 + $0x100] sm:$0xff]   ;;  %v5875_v40 = vpop.f32.mrf.mxu0 }
 0x382   :  { %6216 = vmatmul.mubr.bf16.vlgmr.msra.gmra.mxu0 %v9235_v3  ;;  %v5577_v3 = vadd.f32 %v9372_v38, %v5534_v14  ;;  %v8975_v38 = vld [vmem:[#allocation8 + $0xd0] sm:$0xff]   ;;  %v5788_v24 = vadd.f32 %v9429_v46, %v5745_v23  ;;  %v5877_v2 = vpop.f32.mrf.mxu0  ;;  %v977_v14 = vsub.s32 5, %v9343_v50 }
 0x383   :  { %6668 = vmatmul.mubr.bf16.vlgmr.msra.gmra.mxu1 %v6238_v15  ;;  %7667 = vmatpush3.bf16.msra.mxu0 %v8966_v30  ;;  %v8984_v46 = vld [vmem:[#allocation8 + $0x130] sm:$0xff]   ;;  %v5920_v30 = vpop.f32.mrf.mxu1 }
 0x384   :  { %6708 = vmatprep.mubr.bf16.mxu0 %v6241_v53  ;;  %7668 = vmatprep.subr.bf16.mxu0 %v8967_v28  ;;  %v5620_v54 = vadd.f32 %v9388_v25, %v5577_v3  ;;  %v8976_v25 = vld [vmem:[#allocation8 + $0x90] sm:$0xff]   ;;  %v5831_v47 = vadd.f32 %v9436_v62, %v5788_v24  ;;  %v8987_v62 = vld [vmem:[#allocation8 + $0x160] sm:$0xff]   ;;  %v5879_v63 = vpop.f32.mrf.mxu0  ;;  %v978_v11 = vrot.slane %v9352_v17, %v977_v14 }
 0x385   :  { %v5922_v28 = vpop.f32.mrf.mxu1 }
 0x386   :  { %v5663_v43 = vadd.f32 %v9397_v60, %v5620_v54  ;;  %v8977_v60 = vld [vmem:[#allocation8 + $0xc8] sm:$0xff]   ;;  %v6228_v9 = vmax.f32 %v5831_v47, 0.0  ;;  %v5876_v58 = vadd.f32 %v5875_v40, %v978_v11  ;;  %v5880_v34 = vadd.f32 %v5879_v63, %v978_v11 }
 0x387   :  { %7669 = vmatpush3.bf16.msra.mxu0 %v8968_v6 }
 0x388   :  { %7670 = vmatprep.subr.bf16.mxu0 %v8969_v32  ;;  %v5706_v44 = vadd.f32 %v9415_v61, %v5663_v43  ;;  %v5919_v13 = vadd.f32 %v5918_v45, %v5876_v58  ;;  %v7595_v58 = vld [vmem:[#allocation10] ss:$0 sm:$0xff] }
 0x38a   :  { %v5749_v10 = vadd.f32 %v9424_v37, %v5706_v44  ;;  %v8980_v37 = vld [vmem:[#allocation8 + $0x80] sm:$0xff]  }
 0x38b   :  { %7671 = vmatpush3.bf16.msra.mxu0 %v8970_v7 }
 0x38c   :  { %7672 = vmatprep.subr.bf16.mxu0 %v8971_v31  ;;  %v5792_v35 = vadd.f32 %v9445_v33, %v5749_v10  ;;  %v8981_v33 = vld [vmem:[#allocation8 + $0x178] sm:$0xff]   ;;  %v973_v31 = vsub.s32 4, %v9343_v50  ;;  %v5923_v50 = vadd.f32 %v5922_v28, %v5880_v34 }
 0x38d   :  { %7688 = vmatprep.subr.bf16.mxu1 %v8981_v33 }
 0x38e   :  { %v5835_v61 = vadd.f32 %v9453_v49, %v5792_v35  ;;  %7689 = vmatpush3.bf16.msra.mxu1 %v8982_v51  ;;  %v8985_v49 = vld [vmem:[#allocation8 + $0x168] sm:$0xff]   ;;  %v974_v56 = vrot.slane %v9352_v17, %v973_v31 }
 0x38f   :  { %7673 = vmatpush3.bf16.msra.mxu0 %v8972_v41  ;;  %7690 = vmatprep.subr.bf16.mxu1 %v8983_v42 }
 0x390   :  { %7674 = vmatprep.subr.bf16.mxu0 %v8973_v27  ;;  %v6234_v12 = vmax.f32 %v5835_v61, 0.0  ;;  %v5878_v43 = vadd.f32 %v5877_v2, %v974_v56 }
 0x392   :  { %v6240_v36 = vpack.c.bf16 %v6234_v12, %v6228_v9  ;;  %7691 = vmatpush3.bf16.msra.mxu1 %v8984_v46  ;;  %v5921_v10 = vadd.f32 %v5920_v30, %v5878_v43 }
 0x393   :  { %7675 = vmatpush3.bf16.msra.mxu0 %v8974_v4  ;;  %7692 = vmatprep.subr.bf16.mxu1 %v8985_v49  ;;  %v5874_v4 = vadd.f32 %v5873_v29, %v974_v56 }
 0x394   :  { %7676 = vmatprep.subr.bf16.mxu0 %v8975_v38 }
 0x396   :  { %7693 = vmatpush3.bf16.msra.mxu1 %v8986_v26 }
 0x397   :  { %7677 = vmatpush3.bf16.msra.mxu0 %v8976_v25  ;;  %7694 = vmatprep.subr.bf16.mxu1 %v8987_v62  ;;  %v5917_v25 = vadd.f32 %v5916_v16, %v5874_v4 }
 0x398   :  { %7678 = vmatprep.subr.bf16.mxu0 %v8977_v60 }
 0x39a   :  { %7695 = vmatpush3.bf16.msra.mxu1 %v8988_v19 }
 0x39b   :  { %7679 = vmatpush3.bf16.msra.mxu0 %v8978_v5  ;;  %7696 = vmatprep.subr.bf16.mxu1 %v8989_v22 }
 0x39c   :  { %7680 = vmatprep.subr.bf16.mxu0 %v8979_v39 }
 0x39e   :  { %7697 = vmatpush3.bf16.msra.mxu1 %v8990_v52 }
 0x39f   :  { %7681 = vmatpush3.bf16.msra.mxu0 %v8980_v37  ;;  %7698 = vmatprep.subr.bf16.mxu1 %v8991_v55 }
 0x3a2   :  { %6709 = vmatmul.mubr.bf16.vlgmr.msra.gmra.mxu0 %v6240_v36  ;;  %7699 = vmatpush3.bf16.msra.mxu1 %v8992_v48  ;;  %v5959_v15 = vpop.f32.mrf.mxu0 }
 0x3a3   :  { %7700 = vmatprep.subr.bf16.mxu1 %v8993_v8  ;;  %v6002_v18 = vpop.f32.mrf.mxu1  ;;  %v5960_v24 = vadd.f32 %v5959_v15, %v5917_v25 }
 0x3a4   :  { %v5961_v53 = vpop.f32.mrf.mxu0 }
 0x3a5   :  { %v6004_v32 = vpop.f32.mrf.mxu1  ;;  %v5962_v35 = vadd.f32 %v5961_v53, %v5919_v13  ;;  %v6003_v12 = vadd.f32 %v6002_v18, %v5960_v24 }
 0x3a6   :  { %7701 = vmatpush3.bf16.msra.mxu1 %v8994_v21  ;;  %v5963_v6 = vpop.f32.mrf.mxu0 }
 0x3a7   :  { %7702 = vmatprep.subr.bf16.mxu1 %v8995_v0  ;;  %v6006_v59 = vpop.f32.mrf.mxu1  ;;  %v5964_v60 = vadd.f32 %v5963_v6, %v5921_v10  ;;  %v6005_v47 = vadd.f32 %v6004_v32, %v5962_v35 }
 0x3a8   :  { %v5965_v20 = vpop.f32.mrf.mxu0 }
 0x3a9   :  { %v6008_v57 = vpop.f32.mrf.mxu1  ;;  %v5966_v61 = vadd.f32 %v5965_v20, %v5923_v50  ;;  %v6007_v37 = vadd.f32 %v6006_v59, %v5964_v60 }
 0x3aa   :  { %7703 = vmatpush3.bf16.msra.mxu1 %v8996_v1 }
 0x3ab   :  { %v6009_v9 = vadd.f32 %v6008_v57, %v5966_v61 }
 0x3e2   :  { %v6045_v7 = vpop.f32.mrf.mxu0 }
 0x3e3   :  { %v6088_v41 = vpop.f32.mrf.mxu1  ;;  %v6046_v51 = vadd.f32 %v6045_v7, %v6003_v12 }
 0x3e4   :  { %v6047_v3 = vpop.f32.mrf.mxu0 }
 0x3e5   :  { %v6090_v27 = vpop.f32.mrf.mxu1  ;;  %v6048_v36 = vadd.f32 %v6047_v3, %v6005_v47  ;;  %v6089_v19 = vadd.f32 %v6088_v41, %v6046_v51 }
 0x3e6   :  { %v6049_v54 = vpop.f32.mrf.mxu0 }
 0x3e7   :  { %v6092_v38 = vpop.f32.mrf.mxu1  ;;  %v6050_v33 = vadd.f32 %v6049_v54, %v6007_v37  ;;  %v6091_v26 = vadd.f32 %v6090_v27, %v6048_v36 }
 0x3e8   :  { %v6051_v44 = vpop.f32.mrf.mxu0 }
 0x3e9   :  { %v6094_v5 = vpop.f32.mrf.mxu1  ;;  %v6052_v49 = vadd.f32 %v6051_v44, %v6009_v9  ;;  %v6093_v62 = vadd.f32 %v6092_v38, %v6050_v33 }
 0x3eb   :  { %v6095_v55 = vadd.f32 %v6094_v5, %v6052_v49 }
 0x422   :  { %v6131_v23 = vpop.f32.mrf.mxu0 }
 0x423   :  { %v6174_v17 = vpop.f32.mrf.mxu1  ;;  %v6132_v21 = vadd.f32 %v6131_v23, %v6089_v19 }
 0x424   :  { %v6133_v39 = vpop.f32.mrf.mxu0 }
 0x425   :  { %v6176_v46 = vpop.f32.mrf.mxu1  ;;  %v6134_v48 = vadd.f32 %v6133_v39, %v6091_v26  ;;  %v6175_v45 = vadd.f32 %v6174_v17, %v6132_v21 }
 0x426   :  { %v6135_v42 = vpop.f32.mrf.mxu0 }
 0x427   :  { %v6178_v52 = vpop.f32.mrf.mxu1  ;;  %v6136_v8 = vadd.f32 %v6135_v42, %v6093_v62  ;;  %v6177_v16 = vadd.f32 %v6176_v46, %v6134_v48 }
 0x428   :  { %v6137_v22 = vpop.f32.mrf.mxu0 }
 0x429   :  { %v6138_v1 = vadd.f32 %v6137_v22, %v6095_v55  ;;  %v6180_v29 = vpop.f32.mrf.mxu1  ;;  %v6179_v2 = vadd.f32 %v6178_v52, %v6136_v8 }
 0x42b   :  { %v6181_v30 = vadd.f32 %v6180_v29, %v6138_v1 }
 0x442   :  { %v6217_v0 = vpop.f32.mrf.mxu0 }
 0x443   :  { %v6218_v53 = vadd.f32 %v6217_v0, %v6175_v45  ;;  %v7660_v57 = vpop.f32.mrf.mxu1 }
 0x444   :  { %v6219_v40 = vpop.f32.mrf.mxu0 }
 0x445   :  { %v6220_v15 = vadd.f32 %v6219_v40, %v6177_v16  ;;  %v6230_v7 = vmax.f32 %v6218_v53, 0.0  ;;  %v7661_v41 = vpop.f32.mrf.mxu1 }
 0x446   :  { %v6221_v63 = vpop.f32.mrf.mxu0  ;;  %v7662_v27 = vadd.f32 %v7661_v41, %v7660_v57 }
 0x447   :  { %v6222_v28 = vadd.f32 %v6221_v63, %v6179_v2  ;;  %v6231_v20 = vmax.f32 %v6220_v15, 0.0  ;;  %v7663_v56 = vpop.f32.mrf.mxu1 }
 0x448   :  { %v6223_v18 = vpop.f32.mrf.mxu0  ;;  %v6670_v38 = vadd.f32 %v7662_v27, %v7595_v58 }
 0x449   :  { %v6224_v6 = vadd.f32 %v6223_v18, %v6181_v30  ;;  %v6236_v32 = vmax.f32 %v6222_v28, 0.0  ;;  %v7664_v43 = vpop.f32.mrf.mxu1 }
 0x44a   :  { %v7665_v13 = vadd.f32 %v7664_v43, %v7663_v56 }
 0x44b   :  { %v6237_v59 = vmax.f32 %v6224_v6, 0.0  ;;  %v6242_v31 = vpack.c.bf16 %v6236_v32, %v6230_v7 }
 0x44c   :  { %v6673_v60 = vadd.f32 %v7665_v13, %v7595_v58 }
 0x44d   :  { %v6243_v14 = vpack.c.bf16 %v6237_v59, %v6231_v20 }
 0x44f   :  { %6749 = vmatprep.mubr.bf16.mxu1 %v6243_v14 }
 0x450   :  { %6750 = vmatmul.mubr.bf16.vlgmr.msra.gmra.mxu1 %v6242_v31 }
 0x462   :  { %v7682_v3 = vpop.f32.mrf.mxu0 }
 0x464   :  { %v7683_v11 = vpop.f32.mrf.mxu0 }
 0x465   :  { %v7684_v4 = vadd.f32 %v7683_v11, %v7682_v3 }
 0x466   :  { %v7685_v54 = vpop.f32.mrf.mxu0 }
 0x467   :  { %v6711_v25 = vadd.f32 %v7684_v4, %v6670_v38 }
 0x468   :  { %v7686_v34 = vpop.f32.mrf.mxu0 }
 0x469   :  { %v7687_v23 = vadd.f32 %v7686_v34, %v7685_v54 }
 0x46b   :  { %v6714_v61 = vadd.f32 %v7687_v23, %v6673_v60 }
 0x510   :  { %v7704_v44 = vpop.f32.mrf.mxu1 }
 0x512   :  { %v7705_v10 = vpop.f32.mrf.mxu1 }
 0x513   :  { %v7706_v50 = vadd.f32 %v7705_v10, %v7704_v44 }
 0x514   :  { %v7707_v35 = vpop.f32.mrf.mxu1 }
 0x515   :  { %v6752_v24 = vadd.f32 %v7706_v50, %v6711_v25 }
 0x516   :  { %v7708_v5 = vpop.f32.mrf.mxu1 }
 0x517   :  { %6758 = vst [vmem:[#allocation11] sm:$0xff] %v6752_v24  ;;  %v7709_v39 = vadd.f32 %v7708_v5, %v7707_v35 }
 0x519   :  { %v6755_v17 = vadd.f32 %v7709_v39, %v6714_v61 }
 0x51b   :  { %6759 = vst [vmem:[#allocation11 + $0x8] sm:$0xff] %v6755_v17 }
 0x51c   :  { %9108 = shalt.err (!%p9105_p1)
}
 0x51d   :  { %s9138_s23 = smov 128   ;;  %s9139_s24 = smov 8  }
 0x51e   :  { %6771 = dma.vmem_to_hbm [thread:$0]  %s6766_s4, 256, %s9495_s5, [#allocation4], %s9138_s23, %s9138_s23, %s9139_s24  }
 0x51f   :  { %9123 = dma.done.wait [#allocation4], 256  }
 0x520   :  { %9124 = vsyncadd [#allocation4], 4294967040 }
 0x521   :  { %6775 = vsyncpa [#allocation3], 1 }
 0x522   :  { %6776 = vsyncpa [#allocation6], 1 }
 0x523   :  { %6777 = vsyncpa [#allocation9], 1 }
 0x524   :  { %6778 = vsyncpa [#allocation4], 1 }

</bundles_post_ra>
